<compile_context>
chip_gen: v6e
topology: v6e:2x2x1
jax: 0.10.0
libtpu: 0.0.40
codegen_flags: <defaults>
</compile_context>

<pallas_src>
import math

import jax
import jax.numpy as jnp
from jax.experimental import pallas as pl
from jax.experimental.pallas import tpu as pltpu

# ----------------------------- sizes ------------------------------------------
B = 256                       # batch (many samples per call; full batch in one block)
VIS_DIMS = {                  # opt.vis_fc_layers[0]: per-visual-encoder feature dims
    "cnn_2d": 512,
    "cnn_3d": 384,
    "clip_vis": 128,
}
D_IN = sum(VIS_DIMS.values())  # 1024
D_OUT = 512                    # opt.vis_fc_layers[1] (common space dim)
TN = 256                       # output-feature tile (lane-dense, multiple of 128)
BN_EPS = 1e-5


# ----------------------------- Pallas kernel ----------------------------------
def _vis_transform_kernel(x_ref, w_ref, p_ref, out_ref):
    # x_ref: (B, D_IN) bf16   w_ref: (D_IN, TN) bf16   p_ref: (3, TN) f32
    # Single MXU matmul, f32 accumulation.
    y = jnp.dot(x_ref[...], w_ref[...], preferred_element_type=jnp.float32)
    y = y + p_ref[0:1, :]                 # bias (broadcast over batch)

    # activation: tanh (EUP)
    y = jnp.tanh(y)

    # TODO(synk): nn.Dropout is stochastic regularization; treated as identity
    # (eval-mode behaviour) inside the kernel.

    # BatchNorm1d with training-mode (biased) batch statistics over the FULL
    # batch (whole batch lives in this block).  One-pass sum / sum-of-squares.
    inv_b = jnp.float32(1.0 / y.shape[0])
    s = jnp.sum(y, axis=0, keepdims=True)
    ss = jnp.sum(y * y, axis=0, keepdims=True)
    mean = s * inv_b
    var = ss * inv_b - mean * mean
    scale = p_ref[1:2, :] * jax.lax.rsqrt(var + BN_EPS)   # gamma folded in
    out_ref[...] = (y - mean) * scale + p_ref[2:3, :]


# ----------------------------- wrapper -----------------------------------------
def vis_transform_net(vis_feat_dict, w, b, gamma, beta, *, tn=TN):
    """vis_feat_dict: dict of [B, d_k] f32 features.  w: [D_IN, D_OUT] (x @ W)."""
    # torch.cat(list(vis_input.values()), dim=1) -> one contiguous input.
    x = jnp.concatenate(list(vis_feat_dict.values()), axis=1)
    batch, d_in = x.shape
    d_out = w.shape[1]
    assert d_out % tn == 0

    x_bf = x.astype(jnp.bfloat16)            # halve feature DMA, feed bf16 MXU
    w_bf = w.astype(jnp.bfloat16)            # halve weight DMA
    params = jnp.stack([b, gamma, beta], axis=0).astype(jnp.float32)  # (3, D_OUT)

    grid = (d_out // tn,)
    return pl.pallas_call(
        _vis_transform_kernel,
        out_shape=jax.ShapeDtypeStruct((batch, d_out), jnp.float32),
        grid=grid,
        in_specs=[
            # x: constant block index across the grid -> stays resident in VMEM.
            pl.BlockSpec((batch, d_in), lambda j: (0, 0)),
            pl.BlockSpec((d_in, tn), lambda j: (0, j)),
            pl.BlockSpec((3, tn), lambda j: (0, j)),
        ],
        out_specs=pl.BlockSpec((batch, tn), lambda j: (0, j)),
        compiler_params=pltpu.CompilerParams(
            dimension_semantics=("parallel",)),   # output tiles independent -> 2 TCs on v7x
    )(x_bf, w_bf, params)


# ----------------------------- pure-JAX reference ------------------------------
def _reference(vis_feat_dict, w, b, gamma, beta):
    x = jnp.concatenate(list(vis_feat_dict.values()), axis=1)
    # mirror the kernel's bf16 matmul inputs / f32 accumulation
    y = jnp.dot(x.astype(jnp.bfloat16), w.astype(jnp.bfloat16),
                preferred_element_type=jnp.float32)
    y = y + b[None, :]
    y = jnp.tanh(y)
    mean = jnp.mean(y, axis=0, keepdims=True)
    var = jnp.mean((y - mean) ** 2, axis=0, keepdims=True)
    y = (y - mean) / jnp.sqrt(var + BN_EPS)
    return gamma[None, :] * y + beta[None, :]


# ----------------------------- main ---------------------------------------------
if __name__ == "__main__":
    key = jax.random.PRNGKey(0)
    keys = jax.random.split(key, len(VIS_DIMS) + 1)

    # "visual encoder" feature outputs (precomputed features fed to VisTransformNet)
    vis_feat_dict = {
        name: jax.random.normal(k, (B, d), dtype=jnp.float32)
        for (name, d), k in zip(VIS_DIMS.items(), keys[:-1])
    }

    # TransformNet params: xavier_uniform_ on Linear weight (out,in), zero bias;
    # BatchNorm1d weight=1, bias=0  (matches _initialize_weights).
    bound = math.sqrt(6.0 / (D_IN + D_OUT))
    w_torch = jax.random.uniform(keys[-1], (D_OUT, D_IN), dtype=jnp.float32,
                                 minval=-bound, maxval=bound)
    w = w_torch.T                                   # [D_IN, D_OUT] for x @ W
    b = jnp.zeros((D_OUT,), dtype=jnp.float32)
    gamma = jnp.ones((D_OUT,), dtype=jnp.float32)
    beta = jnp.zeros((D_OUT,), dtype=jnp.float32)

    out = vis_transform_net(vis_feat_dict, w, b, gamma, beta)
    out = jax.block_until_ready(out)

    ref = _reference(vis_feat_dict, w, b, gamma, beta)
    assert out.shape == (B, D_OUT)
    assert jnp.allclose(out, ref, atol=2e-3, rtol=2e-3), "mismatch vs reference"

    print("KERNEL_OK")
</pallas_src>

<mosaic_0001>
module attributes {stable_mosaic.version = 11 : i64} {
  func.func @_vis_transform_kernel(%arg0: i32, %arg1: memref<256x1024xbf16, #tpu.memory_space<vmem>>, %arg2: memref<1024x256xbf16, #tpu.memory_space<vmem>>, %arg3: memref<3x256xf32, #tpu.memory_space<vmem>>, %arg4: memref<256x256xf32, #tpu.memory_space<vmem>>) attributes {dimension_semantics = [#tpu.dimension_semantics<parallel>], iteration_bounds = array<i64: 2>, scalar_prefetch = 0 : i64, scratch_operands = 0 : i64, tpu.core_type = #tpu.core_type<tc>, window_params = [{pipeline_mode = #tpu.pipeline_mode<synchronous>, transform_indices = @transform_0, window_bounds = array<i64: 256, 1024>}, {transform_indices = @transform_1, window_bounds = array<i64: 1024, 256>}, {transform_indices = @transform_2, window_bounds = array<i64: 3, 256>}, {transform_indices = @transform_3, window_bounds = array<i64: 256, 256>}]} {
    %c0 = arith.constant 0 : index
    %c0_0 = arith.constant 0 : index
    %0 = vector.load %arg1[%c0, %c0_0] : memref<256x1024xbf16, #tpu.memory_space<vmem>>, vector<256x1024xbf16>
    %c0_1 = arith.constant 0 : index
    %c0_2 = arith.constant 0 : index
    %1 = vector.load %arg2[%c0_1, %c0_2] : memref<1024x256xbf16, #tpu.memory_space<vmem>>, vector<1024x256xbf16>
    %cst = arith.constant dense<0.000000e+00> : vector<256x256xf32>
    %2 = tpu.matmul %0, %1, %cst {dimension_numbers = #tpu.dot_dimension_numbers<[1], [0], [0], [1], [0, 0, 1, 1], [], []>} : vector<256x1024xbf16>, vector<1024x256xbf16>, vector<256x256xf32> -> vector<256x256xf32>
    %c0_3 = arith.constant 0 : index
    %c0_4 = arith.constant 0 : index
    %3 = vector.load %arg3[%c0_3, %c0_4] : memref<3x256xf32, #tpu.memory_space<vmem>>, vector<1x256xf32>
    %4 = vector.broadcast %3 : vector<1x256xf32> to vector<256x256xf32>
    %5 = arith.addf %2, %4 : vector<256x256xf32>
    %6 = math.tanh %5 : vector<256x256xf32>
    %cst_5 = arith.constant dense<0.000000e+00> : vector<256xf32>
    %7 = vector.multi_reduction <add>, %6, %cst_5 [0] : vector<256x256xf32> to vector<256xf32>
    %8 = vector.shape_cast %7 : vector<256xf32> to vector<1x256xf32>
    %9 = arith.mulf %6, %6 : vector<256x256xf32>
    %cst_6 = arith.constant dense<0.000000e+00> : vector<256xf32>
    %10 = vector.multi_reduction <add>, %9, %cst_6 [0] : vector<256x256xf32> to vector<256xf32>
    %11 = vector.shape_cast %10 : vector<256xf32> to vector<1x256xf32>
    %cst_7 = arith.constant 3.906250e-03 : f32
    %12 = vector.broadcast %cst_7 : f32 to vector<1x256xf32>
    %13 = arith.mulf %8, %12 : vector<1x256xf32>
    %cst_8 = arith.constant 3.906250e-03 : f32
    %14 = vector.broadcast %cst_8 : f32 to vector<1x256xf32>
    %15 = arith.mulf %11, %14 : vector<1x256xf32>
    %16 = arith.mulf %13, %13 : vector<1x256xf32>
    %17 = arith.subf %15, %16 : vector<1x256xf32>
    %c1 = arith.constant 1 : index
    %c0_9 = arith.constant 0 : index
    %18 = vector.load %arg3[%c1, %c0_9] : memref<3x256xf32, #tpu.memory_space<vmem>>, vector<1x256xf32>
    %cst_10 = arith.constant 9.99999974E-6 : f32
    %19 = vector.broadcast %cst_10 : f32 to vector<1x256xf32>
    %20 = arith.addf %17, %19 : vector<1x256xf32>
    %21 = math.rsqrt %20 : vector<1x256xf32>
    %22 = arith.mulf %18, %21 : vector<1x256xf32>
    %23 = vector.broadcast %13 : vector<1x256xf32> to vector<256x256xf32>
    %24 = arith.subf %6, %23 : vector<256x256xf32>
    %25 = vector.broadcast %22 : vector<1x256xf32> to vector<256x256xf32>
    %26 = arith.mulf %24, %25 : vector<256x256xf32>
    %c2 = arith.constant 2 : index
    %c0_11 = arith.constant 0 : index
    %27 = vector.load %arg3[%c2, %c0_11] : memref<3x256xf32, #tpu.memory_space<vmem>>, vector<1x256xf32>
    %28 = vector.broadcast %27 : vector<1x256xf32> to vector<256x256xf32>
    %29 = arith.addf %26, %28 : vector<256x256xf32>
    %c0_12 = arith.constant 0 : index
    %c0_13 = arith.constant 0 : index
    %30 = vector.load %arg4[%c0_12, %c0_13] : memref<256x256xf32, #tpu.memory_space<vmem>>, vector<256x256xf32>
    tpu.vector_store %arg4[%c0_12, %c0_13], %29 {strides = array<i32>} : memref<256x256xf32, #tpu.memory_space<vmem>>, vector<256x256xf32>,
    return
  }
  func.func @transform_0(%arg0: i32) -> (i32, i32) {
    %c0_i32 = arith.constant 0 : i32
    %c0_i32_0 = arith.constant 0 : i32
    %c0_i32_1 = arith.constant 0 : i32
    return %c0_i32, %c0_i32_0 : i32, i32
  }
  func.func @transform_1(%arg0: i32) -> (i32, i32) {
    %c0_i32 = arith.constant 0 : i32
    %c0_i32_0 = arith.constant 0 : i32
    return %c0_i32, %arg0 : i32, i32
  }
  func.func @transform_2(%arg0: i32) -> (i32, i32) {
    %c0_i32 = arith.constant 0 : i32
    %c0_i32_0 = arith.constant 0 : i32
    return %c0_i32, %arg0 : i32, i32
  }
  func.func @transform_3(%arg0: i32) -> (i32, i32) {
    %c0_i32 = arith.constant 0 : i32
    %c0_i32_0 = arith.constant 0 : i32
    return %c0_i32, %arg0 : i32, i32
  }
}

</mosaic_0001>

<bundles_post_ra>
// kernel: tpu_custom_call.1
= control target key start
LH: loop header
LB: loop body
LE: loop exit
PB: predicated region body
PF: predicated region fallthrough
CT: control target
= control target key end

     0   :  { %8 = vsyncpa [#allocation3], 0  ;;  %s5670_s0 = inlined_call_operand.hbm [shape: bf16[256,1024], index: 0, kind: input, shape index: {}]   ;;  %s5671_s1 = inlined_call_operand.hbm [shape: bf16[1024,512], index: 1, kind: input, shape index: {}]   ;;  %s5672_s2 = inlined_call_operand.hbm [shape: f32[3,512], index: 2, kind: input, shape index: {}]   ;;  %s5673_s3 = inlined_call_operand.hbm [shape: f32[256,512], index: 3, kind: output, shape index: {}]  }
   0x1   :  { %9 = vsyncpa [#allocation6], 0 }
   0x2   :  { %11 = vsyncpa [#allocation6 + $0x1], 0 }
   0x3   :  { %12 = vsyncpa [#allocation4], 0 }
   0x4   :  { %14 = vsyncpa [#allocation4 + $0x1], 0  ;;  %s4131_s12 = smov 0   ;;  %s4133_s13 = smov 0  }
   0x5   :  { %s4135_s14 = smov 0   ;;  %s4137_s15 = smov 0  }
   0x6 LB: > { %s4152_s16 = sadd.s32 1, %s4096_s15   ;;  %s48_s17 = sadd.s32 1, %s4092_s14  ;;  %s4096_s15 = sphi %s4137_s15, %s5947_s15   ;;  %s4092_s14 = sphi %s4135_s14, %s5946_s14   ;;  %s4088_s13 = sphi %s4133_s13, %s5945_s13   ;;  %s4084_s12 = sphi %s4131_s12, %s5944_s12  }
   0x7   : > { %s45_s18 = ssub.s32 %s4096_s15, %s4152_s16  ;;  %p55_p0 = scmp.ne.s32.totalorder %s4092_s14, %s4088_s13 }
   0x8   : > { %p46_p1 = scmp.eq.s32.totalorder %s45_s18, 0  ;;  %p56_p2 = scmp.eq.s32.totalorder %s4096_s15, 0 }
   0x9   : > { %p3577_p4 = scmp.lt.s32.totalorder %s4096_s15, 2  ;;  %s150_s20 = sand.u32 1, %s4096_s15  }
   0xa   : > { %s4163_s19 = scalar_select %p46_p1, %s4092_s14, %s48_s17  }
   0xb   : > { %p57_p5 = por %p56_p2, %p55_p0  ;;  %s152_s21 = sand.u32 1, %s4092_s14  }
   0xc   : > { %s3274_s22 = sshll.u32 %s152_s21, 10  ;;  %s3548_s23 = sshll.u32 %s4096_s15, 7 }
   0xd   : > { %s4178_s26 = scalar_lea.hbm %s5671_s1, %s3548_s23  ;;  %s154_s27 = scalar_lea.vmem [#allocation5], %s3274_s22 }
   0xe   : > { %s161_s28 = sshll.u32 %s154_s27, 4  ;;  %p4180_p6 = pnand %p3577_p4, %p57_p5  ;;  %s4184_s28 = int_to_ptr.vmem [resolvable:$true] %s161_s28 }
   0xf   : > { %s4186_s30 = scalar_lea.sflag [#allocation6], %s150_s20  ;;  %s3946_s4 = scalar_lea.hbm %s4178_s26, 16384 }
  0x10   : > { %p3947_p7 = scmp.ne.s32.totalorder %s4178_s26, %s3946_s4  ;;  %p5675_p8 = pneg %p4180_p6 }
  0x11   : > { %s3951_s7 = scalar_lea.hbm %s5671_s1, 32768  ;;  %p3952_p11 = scmp.lt.s32.totalorder %s4178_s26, %s5671_s1 }
  0x12   : > { %p3949_p9 = pnand %p5675_p8, %p3947_p7  ;;  %p3953_p12 = scmp.lt.s32.totalorder %s3951_s7, %s3946_s4 }
  0x14   : > { %p3950_p10 = pneg %p3949_p9  ;;  %p3954_p13 = por %p3953_p12, %p3952_p11 }
  0x16   : > { %p3955_p1 = pnand %p3954_p13, %p3950_p10 }
  0x18   : > { %3958 = shalt.err (!%p3955_p1)
}
  0x19   : > { %s3959_s10 = scalar_lea.vmem %s4184_s28, 16384  ;;  %s4098_s11 = smov [#allocation5]  }
  0x1a   : > { %p3960_p2 = scmp.ne.s32.totalorder %s4184_s28, %s3959_s10  ;;  %s3964_s17 = sshll.u32 %s4098_s11, 4  ;;  %s3965_s17 = int_to_ptr.vmem [resolvable:$false] %s3964_s17 }
  0x1b   : > { %s3966_s18 = scalar_lea.vmem %s3965_s17, 32768  ;;  %p3967_p7 = scmp.lt.s32.totalorder %s4184_s28, %s3965_s17 }
  0x1c   : > { %p3962_p4 = pnand %p3960_p2, %p5675_p8  ;;  %p3968_p9 = scmp.lt.s32.totalorder %s3966_s18, %s3959_s10 }
  0x1e   : > { %p3963_p5 = pneg %p3962_p4  ;;  %p3969_p3 = por %p3968_p9, %p3967_p7 }
  0x20   : > { %p3970_p11 = pnand %p3969_p3, %p3963_p5 }
  0x22   : > { %3973 = shalt.err (!%p3970_p11)
}
  0x23   : > { %s4099_s20 = smov 256   ;;  %s4100_s22 = smov 128  }
  0x24   : > { %s4101_s24 = smov 8   ;;  %s4214_s25 = sadd.s32 4294967295, %s4096_s15  }
  0x25   : > { %3568 = dma.hbm_to_vmem [thread:$0]  (!%p4180_p6), %s4178_s26, 16384, %s4184_s28, %s4186_s30, %s4099_s20, %s4100_s22, %s4101_s24  }
  0x26   : > { %s3270_s27 = sadd.s32 4294967294, %s4096_s15   ;;  %p61_p3 = scmp.ne.s32.totalorder %s4088_s13, %s4084_s12 }
  0x27   : > { %p5674_p10 = scmp.eq.s32.totalorder %s4214_s25, 0  ;;  %p111_p12 = scmp.eq.s32.totalorder %s4214_s25, 1 }
  0x28   : > { %p117_p13 = scmp.eq.s32.totalorder %s3270_s27, 1  ;;  %p3271_p1 = scmp.ge.s32.totalorder %s4096_s15, 1 }
  0x29   : > { %p4224_p2 = por %p5674_p10, %p61_p3  ;;  %p4231_p4 = por %p111_p12, %p55_p0 }
  0x2a   : > { %p4235_p5 = por %p117_p13, %p61_p3  ;;  %p124_p7 = scmp.lt.s32.totalorder %s4096_s15, 3 }
  0x2b   : > { %s5729_s4 = scalar_select %p4224_p2, 1, 0 }
  0x2c   : > { %s5730_s26 = scalar_select %p4231_p4, 1, 0 }
  0x2d   : > { %s5731_s28 = scalar_select %p4235_p5, 1, 0 }
  0x2e   : > { %p4240_p9 = pnand %p3271_p1, %p124_p7  ;;  %s4102_s6 = smov [#allocation2]  }
  0x2f   : > { %s136_s7 = sshll.u32 %s4102_s6, 4  ;;  %s3277_s8 = sshll.u32 %s152_s21, 3  ;;  %s137_s7 = int_to_ptr.vmem [resolvable:$true] %s136_s7 }
  0x30   : > { %p3561_p11 = pneg %p4240_p9  ;;  %s4259_s17 = scalar_lea.hbm %s5672_s2, %s3548_s23 }
  0x31   : > { %s175_s18 = scalar_lea.vmem [#allocation7], %s3277_s8  ;;  %s3985_s22 = scalar_lea.vmem %s137_s7, 16384 }
  0x32   : > { %p4250_p0 = pnand %p3561_p11, %p5674_p10  ;;  %s183_s20 = sshll.u32 %s175_s18, 4  ;;  %s4261_s20 = int_to_ptr.vmem [resolvable:$true] %s183_s20 }
  0x33   : > { %p3986_p12 = scmp.ne.s32.totalorder %s137_s7, %s3985_s22  ;;  %p3993_p7 = scmp.lt.s32.totalorder %s137_s7, %s137_s7 }
  0x34   : > { %p3976_p3 = pneg %p4250_p0  ;;  %p3994_p11 = scmp.lt.s32.totalorder %s3985_s22, %s3985_s22 }
  0x36   : > { %p3988_p13 = pnand %p3986_p12, %p3976_p3  ;;  %p3995_p10 = por %p3994_p11, %p3993_p7 }
  0x38   : > { %p3989_p1 = pneg %p3988_p13 }
  0x3a   : > { %p3996_p8 = pnand %p3995_p10, %p3989_p1 }
  0x3c   : > { %3999 = shalt.err (!%p3996_p8)
}
  0x3d   : > { %s4103_s21 = smov 512   ;;  %s4104_s23 = smov 32  }
  0x3e   : > { %3564 = dma.hbm_to_vmem [thread:$0]  (!%p4250_p0), %s5670_s0, 16384, %s137_s7, [#allocation3], %s4103_s21, %s4103_s21, %s4104_s23  }
  0x3f   : > { %s4000_s6 = scalar_lea.hbm %s4259_s17, 128  ;;  %p5734_p12 = pneg %p4180_p6 }
  0x40   : > { %p4001_p3 = scmp.ne.s32.totalorder %s4259_s17, %s4000_s6  ;;  %s4005_s11 = scalar_lea.hbm %s5672_s2, 256 }
  0x41   : > { %p4006_p8 = scmp.lt.s32.totalorder %s4259_s17, %s5672_s2  ;;  %p4007_p10 = scmp.lt.s32.totalorder %s4005_s11, %s4000_s6 }
  0x42   : > { %p4003_p13 = pnand %p4001_p3, %p5734_p12 }
  0x43   : > { %p4008_p1 = por %p4007_p10, %p4006_p8 }
  0x44   : > { %p4004_p7 = pneg %p4003_p13 }
  0x46   : > { %p4009_p11 = pnand %p4008_p1, %p4004_p7 }
  0x48   : > { %4012 = shalt.err (!%p4009_p11)
}
  0x49   : > { %s4013_s7 = scalar_lea.vmem %s4261_s20, 128  ;;  %p5735_p3 = pmov %p5734_p12 }
  0x4a   : > { %p4014_p0 = scmp.ne.s32.totalorder %s4261_s20, %s4013_s7  ;;  %s4105_s9 = smov [#allocation7]  }
  0x4b   : > { %s4018_s21 = sshll.u32 %s4105_s9, 4  ;;  %s4019_s21 = int_to_ptr.vmem [resolvable:$false] %s4018_s21 }
  0x4c   : > { %p4016_p12 = pnand %p4014_p0, %p5735_p3  ;;  %s4020_s23 = scalar_lea.vmem %s4019_s21, 256 }
  0x4d   : > { %p4021_p5 = scmp.lt.s32.totalorder %s4261_s20, %s4019_s21  ;;  %p4022_p4 = scmp.lt.s32.totalorder %s4020_s23, %s4013_s7 }
  0x4e   : > { %p4017_p13 = pneg %p4016_p12 }
  0x4f   : > { %p4023_p2 = por %p4022_p4, %p4021_p5 }
  0x51   : > { %p4024_p8 = pnand %p4023_p2, %p4017_p13 }
  0x53   : > { %4027 = shalt.err (!%p4024_p8)
}
  0x54   : > { %3571 = dma.hbm_to_vmem [thread:$0]  (!%p4180_p6), %s4259_s17, 128, %s4261_s20, %s4186_s30  }
  0x55   : > { %192 = sbr.rel (%p4240_p9) target bundleno = 747 (0x2eb), region = 32 }
  0x5a   : > { %p5736_p7 = scmp.eq.s32.totalorder %s4214_s25, 0 }
  0x5c   : > { %4071 = dma.done.wait (%p5736_p7), [#allocation3], 16384   ;;  %p5737_p10 = pmov %p5736_p7 }
  0x5d   : > { %s198_s24 = sand.u32 1, %s4214_s25   ;;  %s4301_s27 = sand.u32 1, %s4088_s13  }
  0x5e   : > { %4073 = vsyncadd (%p5737_p10), [#allocation3], 4294950912  ;;  %s3282_s29 = sshll.u32 %s4301_s27, 10  ;;  %s199_s6 = scalar_lea.sflag [#allocation6], %s198_s24 }
  0x5f   : > { %s4304_s8 = scalar_lea.vmem [#allocation5], %s3282_s29  ;;  %p5738_p6 = scmp.ne.s32.totalorder %s5729_s4, 0 }
  0x61   : > { %4075 = dma.done.wait (%p5738_p6), %s199_s6, 16512  }
  0x62   : > { %4077 = vsyncadd (%p5738_p6), %s199_s6, 4294950784  ;;  %v3622_v0 = vld [vmem:[%s4304_s8 + $0x74] ss:$8 sps:$4 sm:$0xff]   ;;  %v3626_v2 = vld [vmem:[%s4304_s8 + $0x70] ss:$8 sps:$4 sm:$0xff]   ;;  %s3283_s30 = sshll.u32 %s4301_s27, 3 }
  0x63   : > { %v3624_v1 = vld [vmem:[%s4304_s8 + $0x174] ss:$8 sps:$4 sm:$0xff]   ;;  %1790 = vmatprep.subr.bf16.mxu0 %v3622_v0  ;;  %v3627_v3 = vld [vmem:[%s4304_s8 + $0x170] ss:$8 sps:$4 sm:$0xff]   ;;  %v3628_v4 = vld [vmem:[%s4304_s8 + $0x64] ss:$8 sps:$4 sm:$0xff]  }
  0x64   : > { %1983 = vmatprep.subr.bf16.mxu1 %v3624_v1  ;;  %1791 = vmatpush1.bf16.msra.mxu0 %v3626_v2  ;;  %v3630_v5 = vld [vmem:[%s4304_s8 + $0x164] ss:$8 sps:$4 sm:$0xff]   ;;  %v3632_v6 = vld [vmem:[%s4304_s8 + $0x60] ss:$8 sps:$4 sm:$0xff]   ;;  %v3634_v8 = vld [vmem:[%s4304_s8 + $0x54] ss:$8 sps:$4 sm:$0xff]  }
  0x65   : > { %1984 = vmatpush1.bf16.msra.mxu1 %v3627_v3  ;;  %1792 = vmatprep.subr.bf16.mxu0 %v3628_v4  ;;  %v3633_v7 = vld [vmem:[%s4304_s8 + $0x160] ss:$8 sps:$4 sm:$0xff]   ;;  %v3636_v9 = vld [vmem:[%s4304_s8 + $0x154] ss:$8 sps:$4 sm:$0xff]   ;;  %v3638_v10 = vld [vmem:[%s4304_s8 + $0x50] ss:$8 sps:$4 sm:$0xff]  }
  0x66   : > { %1985 = vmatprep.subr.bf16.mxu1 %v3630_v5  ;;  %v3639_v11 = vld [vmem:[%s4304_s8 + $0x150] ss:$8 sps:$4 sm:$0xff]   ;;  %v3640_v12 = vld [vmem:[%s4304_s8 + $0x44] ss:$8 sps:$4 sm:$0xff]   ;;  %v3644_v14 = vld [vmem:[%s4304_s8 + $0x40] ss:$8 sps:$4 sm:$0xff]  }
  0x67   : > { %v3642_v13 = vld [vmem:[%s4304_s8 + $0x144] ss:$8 sps:$4 sm:$0xff]   ;;  %v3645_v15 = vld [vmem:[%s4304_s8 + $0x140] ss:$8 sps:$4 sm:$0xff]   ;;  %v3646_v16 = vld [vmem:[%s4304_s8 + $0x34] ss:$8 sps:$4 sm:$0xff]  }
  0x68   : > { %1793 = vmatpush1.bf16.msra.mxu0 %v3632_v6  ;;  %v3648_v17 = vld [vmem:[%s4304_s8 + $0x134] ss:$8 sps:$4 sm:$0xff]   ;;  %v3650_v18 = vld [vmem:[%s4304_s8 + $0x30] ss:$8 sps:$4 sm:$0xff]   ;;  %v3652_v20 = vld [vmem:[%s4304_s8 + $0x24] ss:$8 sps:$4 sm:$0xff]  }
  0x69   : > { %1986 = vmatpush1.bf16.msra.mxu1 %v3633_v7  ;;  %1794 = vmatprep.subr.bf16.mxu0 %v3634_v8  ;;  %v3651_v19 = vld [vmem:[%s4304_s8 + $0x130] ss:$8 sps:$4 sm:$0xff]   ;;  %v3654_v21 = vld [vmem:[%s4304_s8 + $0x124] ss:$8 sps:$4 sm:$0xff]   ;;  %v3656_v22 = vld [vmem:[%s4304_s8 + $0x20] ss:$8 sps:$4 sm:$0xff]  }
  0x6a   : > { %1987 = vmatprep.subr.bf16.mxu1 %v3636_v9  ;;  %v3657_v23 = vld [vmem:[%s4304_s8 + $0x120] ss:$8 sps:$4 sm:$0xff]   ;;  %v3658_v24 = vld [vmem:[%s4304_s8 + $0x14] ss:$8 sps:$4 sm:$0xff]   ;;  %v3662_v26 = vld [vmem:[%s4304_s8 + $0x10] ss:$8 sps:$4 sm:$0xff]  }
  0x6b   : > { %v3660_v25 = vld [vmem:[%s4304_s8 + $0x114] ss:$8 sps:$4 sm:$0xff]   ;;  %v3663_v27 = vld [vmem:[%s4304_s8 + $0x110] ss:$8 sps:$4 sm:$0xff]   ;;  %v3664_v28 = vld [vmem:[%s4304_s8 + $0x4] ss:$8 sps:$4 sm:$0xff]  }
  0x6c   : > { %1795 = vmatpush1.bf16.msra.mxu0 %v3638_v10  ;;  %v3666_v29 = vld [vmem:[%s4304_s8 + $0x104] ss:$8 sps:$4 sm:$0xff]   ;;  %v3668_v30 = vld [vmem:[%s4304_s8] ss:$8 sps:$4 sm:$0xff]   ;;  %v3670_v32 = vld [vmem:[%s4304_s8 + $0xf4] ss:$8 sps:$4 sm:$0xff]  }
  0x6d   : > { %1988 = vmatpush1.bf16.msra.mxu1 %v3639_v11  ;;  %1796 = vmatprep.subr.bf16.mxu0 %v3640_v12  ;;  %v3669_v31 = vld [vmem:[%s4304_s8 + $0x100] ss:$8 sps:$4 sm:$0xff]   ;;  %v3672_v33 = vld [vmem:[%s4304_s8 + $0x1f4] ss:$8 sps:$4 sm:$0xff]   ;;  %v3674_v34 = vld [vmem:[%s4304_s8 + $0xf0] ss:$8 sps:$4 sm:$0xff]  }
  0x6e   : > { %1989 = vmatprep.subr.bf16.mxu1 %v3642_v13  ;;  %v3675_v35 = vld [vmem:[%s4304_s8 + $0x1f0] ss:$8 sps:$4 sm:$0xff]   ;;  %v3676_v36 = vld [vmem:[%s4304_s8 + $0xe4] ss:$8 sps:$4 sm:$0xff]   ;;  %v3680_v38 = vld [vmem:[%s4304_s8 + $0xe0] ss:$8 sps:$4 sm:$0xff]  }
  0x6f   : > { %v3678_v37 = vld [vmem:[%s4304_s8 + $0x1e4] ss:$8 sps:$4 sm:$0xff]   ;;  %v3681_v39 = vld [vmem:[%s4304_s8 + $0x1e0] ss:$8 sps:$4 sm:$0xff]   ;;  %v3682_v40 = vld [vmem:[%s4304_s8 + $0xd4] ss:$8 sps:$4 sm:$0xff]  }
  0x70   : > { %1797 = vmatpush1.bf16.msra.mxu0 %v3644_v14  ;;  %v3684_v41 = vld [vmem:[%s4304_s8 + $0x1d4] ss:$8 sps:$4 sm:$0xff]   ;;  %v3686_v42 = vld [vmem:[%s4304_s8 + $0xd0] ss:$8 sps:$4 sm:$0xff]   ;;  %v3688_v44 = vld [vmem:[%s4304_s8 + $0xc4] ss:$8 sps:$4 sm:$0xff]  }
  0x71   : > { %1990 = vmatpush1.bf16.msra.mxu1 %v3645_v15  ;;  %1798 = vmatprep.subr.bf16.mxu0 %v3646_v16  ;;  %v3687_v43 = vld [vmem:[%s4304_s8 + $0x1d0] ss:$8 sps:$4 sm:$0xff]   ;;  %v3690_v45 = vld [vmem:[%s4304_s8 + $0x1c4] ss:$8 sps:$4 sm:$0xff]   ;;  %v3692_v46 = vld [vmem:[%s4304_s8 + $0xc0] ss:$8 sps:$4 sm:$0xff]  }
  0x72   : > { %1991 = vmatprep.subr.bf16.mxu1 %v3648_v17  ;;  %v3693_v47 = vld [vmem:[%s4304_s8 + $0x1c0] ss:$8 sps:$4 sm:$0xff]   ;;  %v3694_v52 = vld [vmem:[%s4304_s8 + $0xb4] ss:$8 sps:$4 sm:$0xff]   ;;  %v3698_v56 = vld [vmem:[%s4304_s8 + $0xb0] ss:$8 sps:$4 sm:$0xff]  }
  0x73   : > { %v4358_v48 = vld [vmem:[#allocation2] sm:$0xff]  ;;  %v4362_v50 = vld [vmem:[#allocation2 + $0x8] sm:$0xff]  ;;  %v3696_v54 = vld [vmem:[%s4304_s8 + $0x1b4] ss:$8 sps:$4 sm:$0xff]   ;;  %s4453_s4 = scalar_lea.vmem [#allocation7], %s3283_s30  ;;  %s3284_s5 = sshll.u32 %s4301_s27, 9 }
  0x74   : > { %1799 = vmatpush1.bf16.msra.mxu0 %v3650_v18  ;;  %v4360_v49 = vld [vmem:[#allocation2 + $0x20] sm:$0xff]  ;;  %v247_v51 = vld [vmem:[#allocation2 + $0x28] sm:$0xff]  ;;  %v3699_v57 = vld [vmem:[%s4304_s8 + $0x1b0] ss:$8 sps:$4 sm:$0xff]   ;;  %s5251_s17 = scalar_lea.vmem [#allocation8], %s3284_s5  ;;  %s3550_s20 = sshll.u32 %s4214_s25, 8 }
  0x75   : > { %1992 = vmatpush1.bf16.msra.mxu1 %v3651_v19  ;;  %1800 = vmatprep.subr.bf16.mxu0 %v3652_v20  ;;  %v3286_v53 = vcombine.high %v4358_v48, %v4360_v49  ;;  %v3288_v55 = vcombine.high %v4362_v50, %v247_v51  ;;  %v3700_v58 = vld [vmem:[%s4304_s8 + $0xa4] ss:$8 sps:$4 sm:$0xff]   ;;  %v3704_v60 = vld [vmem:[%s4304_s8 + $0xa0] ss:$8 sps:$4 sm:$0xff]   ;;  %v3706_v62 = vld [vmem:[%s4304_s8 + $0x94] ss:$8 sps:$4 sm:$0xff]   ;;  %v3285_v12 = vcombine.low %v4358_v48, %v4360_v49  ;;  %s5593_s18 = scalar_lea.hbm %s5673_s3, %s3550_s20 }
  0x76   : > { %1993 = vmatprep.subr.bf16.mxu1 %v3654_v21  ;;  %v3702_v59 = vld [vmem:[%s4304_s8 + $0x1a4] ss:$8 sps:$4 sm:$0xff]   ;;  %v3705_v61 = vld [vmem:[%s4304_s8 + $0x1a0] ss:$8 sps:$4 sm:$0xff]   ;;  %v3708_v63 = vld [vmem:[%s4304_s8 + $0x194] ss:$8 sps:$4 sm:$0xff]   ;;  %v3287_v13 = vcombine.low %v4362_v50, %v247_v51 }
  0x77   : > { %1822 = vmatprep.mubr.bf16.mxu0 %v3286_v53  ;;  %2015 = vmatprep.mubr.bf16.mxu1 %v3288_v55  ;;  %v3710_v0 = vld [vmem:[%s4304_s8 + $0x90] ss:$8 sps:$4 sm:$0xff]   ;;  %v3712_v2 = vld [vmem:[%s4304_s8 + $0x84] ss:$8 sps:$4 sm:$0xff]   ;;  %v3716_v4 = vld [vmem:[%s4304_s8 + $0x80] ss:$8 sps:$4 sm:$0xff]  }
  0x78   : > { %1801 = vmatpush1.bf16.msra.mxu0 %v3656_v22  ;;  %v3711_v1 = vld [vmem:[%s4304_s8 + $0x190] ss:$8 sps:$4 sm:$0xff]   ;;  %v3714_v3 = vld [vmem:[%s4304_s8 + $0x184] ss:$8 sps:$4 sm:$0xff]   ;;  %v3717_v5 = vld [vmem:[%s4304_s8 + $0x180] ss:$8 sps:$4 sm:$0xff]  }
  0x79   : > { %1994 = vmatpush1.bf16.msra.mxu1 %v3657_v23  ;;  %1802 = vmatprep.subr.bf16.mxu0 %v3658_v24  ;;  %v3720_v6 = vld [vmem:[%s4304_s8 + $0x274] ss:$8 sps:$4 sm:$0xff]   ;;  %v250_v8 = vld [vmem:[#allocation2 + $0x40] sm:$0xff]  ;;  %v251_v10 = vld [vmem:[#allocation2 + $0x48] sm:$0xff]  ;;  %s3165_s25 = sshll.u32 %s5251_s17, 4  ;;  %s3152_s22 = scalar_lea.sflag [#allocation4], %s4301_s27  ;;  %s5607_s25 = int_to_ptr.vmem [resolvable:$true] %s3165_s25 }
  0x7a   : > { %1995 = vmatprep.subr.bf16.mxu1 %v3660_v25  ;;  %v3723_v7 = vld [vmem:[%s4304_s8 + $0x374] ss:$8 sps:$4 sm:$0xff]   ;;  %v254_v9 = vld [vmem:[#allocation2 + $0x60] sm:$0xff]  ;;  %v255_v11 = vld [vmem:[#allocation2 + $0x68] sm:$0xff]  ;;  %s4028_s7 = scalar_lea.vmem %s5607_s25, 8192  ;;  %p5941_p4 = scmp.ne.s32.totalorder %s5730_s26, 0 }
  0x7b   : > { %v3718_v14 = vld [vmem:[%s4304_s8 + $0x270] ss:$8 sps:$4 sm:$0xff]   ;;  %v3294_v16 = vcombine.high %v250_v8, %v254_v9  ;;  %v3296_v17 = vcombine.high %v251_v10, %v255_v11  ;;  %v3724_v18 = vld [vmem:[%s4304_s8 + $0x260] ss:$8 sps:$4 sm:$0xff]   ;;  %v3726_v19 = vld [vmem:[%s4304_s8 + $0x264] ss:$8 sps:$4 sm:$0xff]   ;;  %p4029_p2 = scmp.ne.s32.totalorder %s5607_s25, %s4028_s7 }
  0x7c   : > { %1803 = vmatpush1.bf16.msra.mxu0 %v3662_v26  ;;  %v3721_v15 = vld [vmem:[%s4304_s8 + $0x370] ss:$8 sps:$4 sm:$0xff]   ;;  %v3727_v20 = vld [vmem:[%s4304_s8 + $0x360] ss:$8 sps:$4 sm:$0xff]   ;;  %v3729_v21 = vld [vmem:[%s4304_s8 + $0x364] ss:$8 sps:$4 sm:$0xff]  }
  0x7d   : > { %1996 = vmatpush1.bf16.msra.mxu1 %v3663_v27  ;;  %1804 = vmatprep.subr.bf16.mxu0 %v3664_v28  ;;  %v258_v22 = vld [vmem:[#allocation2 + $0x80] sm:$0xff]  ;;  %v259_v24 = vld [vmem:[#allocation2 + $0x88] sm:$0xff]  ;;  %v3732_v26 = vld [vmem:[%s4304_s8 + $0x254] ss:$8 sps:$4 sm:$0xff]   ;;  %v3293_v28 = vcombine.low %v250_v8, %v254_v9  ;;  %p4030_p5 = pnand %p4029_p2, %p5941_p4  ;;  %s4107_s9 = smov [#allocation8]  }
  0x7e   : > { %1997 = vmatprep.subr.bf16.mxu1 %v3666_v29  ;;  %v262_v23 = vld [vmem:[#allocation2 + $0xa0] sm:$0xff]  ;;  %v263_v25 = vld [vmem:[#allocation2 + $0xa8] sm:$0xff]  ;;  %v3735_v27 = vld [vmem:[%s4304_s8 + $0x354] ss:$8 sps:$4 sm:$0xff]   ;;  %v3295_v29 = vcombine.low %v251_v10, %v255_v11  ;;  %s4032_s21 = sshll.u32 %s4107_s9, 4  ;;  %s4033_s21 = int_to_ptr.vmem [resolvable:$false] %s4032_s21 }
  0x7f   : > { %v3742_v48 = vld [vmem:[%s4304_s8 + $0x230] ss:$8 sps:$4 sm:$0xff]   ;;  %v3750_v50 = vld [vmem:[%s4304_s8 + $0x224] ss:$8 sps:$4 sm:$0xff]   ;;  %v3760_v8 = vld [vmem:[%s4304_s8 + $0x200] ss:$8 sps:$4 sm:$0xff]   ;;  %p4031_p9 = pneg %p4030_p5  ;;  %p4035_p1 = scmp.lt.s32.totalorder %s5607_s25, %s4033_s21 }
  0x80   : > { %1805 = vmatpush1.bf16.msra.mxu0 %v3668_v30  ;;  %v3302_v30 = vcombine.high %v258_v22, %v262_v23  ;;  %v3745_v49 = vld [vmem:[%s4304_s8 + $0x330] ss:$8 sps:$4 sm:$0xff]   ;;  %v3753_v51 = vld [vmem:[%s4304_s8 + $0x324] ss:$8 sps:$4 sm:$0xff]   ;;  %v3763_v9 = vld [vmem:[%s4304_s8 + $0x300] ss:$8 sps:$4 sm:$0xff]  }
  0x81   : > { %1998 = vmatpush1.bf16.msra.mxu1 %v3669_v31  ;;  %1806 = vmatprep.subr.bf16.mxu0 %v3670_v32  ;;  %v3304_v31 = vcombine.high %v259_v24, %v263_v25  ;;  %v3730_v32 = vld [vmem:[%s4304_s8 + $0x250] ss:$8 sps:$4 sm:$0xff]   ;;  %v278_v53 = vld [vmem:[#allocation2 + $0x120] sm:$0xff]  ;;  %v279_v55 = vld [vmem:[#allocation2 + $0x128] sm:$0xff]  ;;  %s4034_s23 = scalar_lea.vmem %s4033_s21, 16384 }
  0x82   : > { %1999 = vmatprep.subr.bf16.mxu1 %v3672_v33  ;;  %v3733_v33 = vld [vmem:[%s4304_s8 + $0x350] ss:$8 sps:$4 sm:$0xff]   ;;  %v3768_v10 = vld [vmem:[%s4304_s8 + $0x2f4] ss:$8 sps:$4 sm:$0xff]   ;;  %p4036_p11 = scmp.lt.s32.totalorder %s4034_s23, %s4028_s7 }
  0x83   : > { %v3771_v11 = vld [vmem:[%s4304_s8 + $0x3f4] ss:$8 sps:$4 sm:$0xff]  }
  0x84   : > { %1807 = vmatpush2.bf16.msra.mxu0 %v3674_v34  ;;  %v3738_v34 = vld [vmem:[%s4304_s8 + $0x244] ss:$8 sps:$4 sm:$0xff]   ;;  %p4037_p0 = por %p4036_p11, %p4035_p1 }
  0x85   : > { %2000 = vmatpush2.bf16.msra.mxu1 %v3675_v35  ;;  %1808 = vmatprep.subr.bf16.mxu0 %v3676_v36  ;;  %v3741_v35 = vld [vmem:[%s4304_s8 + $0x344] ss:$8 sps:$4 sm:$0xff]  }
  0x86   : > { %2001 = vmatprep.subr.bf16.mxu1 %v3678_v37  ;;  %v266_v36 = vld [vmem:[#allocation2 + $0xc0] sm:$0xff]  ;;  %p4038_p3 = pnand %p4037_p0, %p4031_p9 }
  0x87   : > { %v270_v37 = vld [vmem:[#allocation2 + $0xe0] sm:$0xff] }
  0x88   : > { %1809 = vmatpush2.bf16.msra.mxu0 %v3680_v38  ;;  %v267_v38 = vld [vmem:[#allocation2 + $0xc8] sm:$0xff] }
  0x89   : > { %2002 = vmatpush2.bf16.msra.mxu1 %v3681_v39  ;;  %1810 = vmatprep.subr.bf16.mxu0 %v3682_v40  ;;  %v271_v39 = vld [vmem:[#allocation2 + $0xe8] sm:$0xff] }
  0x8a   : > { %2003 = vmatprep.subr.bf16.mxu1 %v3684_v41  ;;  %v3736_v40 = vld [vmem:[%s4304_s8 + $0x240] ss:$8 sps:$4 sm:$0xff]  }
  0x8b   : > { %v3739_v41 = vld [vmem:[%s4304_s8 + $0x340] ss:$8 sps:$4 sm:$0xff]  }
  0x8c   : > { %1811 = vmatpush2.bf16.msra.mxu0 %v3686_v42  ;;  %v3744_v42 = vld [vmem:[%s4304_s8 + $0x234] ss:$8 sps:$4 sm:$0xff]  }
  0x8d   : > { %2004 = vmatpush2.bf16.msra.mxu1 %v3687_v43  ;;  %1812 = vmatprep.subr.bf16.mxu0 %v3688_v44  ;;  %v3747_v43 = vld [vmem:[%s4304_s8 + $0x334] ss:$8 sps:$4 sm:$0xff]   ;;  %v3301_v44 = vcombine.low %v258_v22, %v262_v23  ;;  %v291_v22 = vld [vmem:[#allocation2 + $0x188] sm:$0xff] }
  0x8e   : > { %2005 = vmatprep.subr.bf16.mxu1 %v3690_v45  ;;  %v3303_v45 = vcombine.low %v259_v24, %v263_v25  ;;  %v295_v23 = vld [vmem:[#allocation2 + $0x1a8] sm:$0xff] }
  0x8f   : > { %v3772_v24 = vld [vmem:[%s4304_s8 + $0x2e0] ss:$8 sps:$4 sm:$0xff]  }
  0x90   : > { %1813 = vmatpush2.bf16.msra.mxu0 %v3692_v46  ;;  %v3310_v46 = vcombine.high %v266_v36, %v270_v37  ;;  %v3775_v25 = vld [vmem:[%s4304_s8 + $0x3e0] ss:$8 sps:$4 sm:$0xff]  }
  0x91   : > { %2006 = vmatpush2.bf16.msra.mxu1 %v3693_v47  ;;  %1814 = vmatprep.subr.bf16.mxu0 %v3694_v52  ;;  %v3312_v47 = vcombine.high %v267_v38, %v271_v39  ;;  %v274_v52 = vld [vmem:[#allocation2 + $0x100] sm:$0xff] }
  0x92   : > { %2007 = vmatprep.subr.bf16.mxu1 %v3696_v54  ;;  %v275_v54 = vld [vmem:[#allocation2 + $0x108] sm:$0xff] }
  0x94   : > { %1815 = vmatpush2.bf16.msra.mxu0 %v3698_v56  ;;  %v3748_v56 = vld [vmem:[%s4304_s8 + $0x220] ss:$8 sps:$4 sm:$0xff]  }
  0x95   : > { %2008 = vmatpush2.bf16.msra.mxu1 %v3699_v57  ;;  %1816 = vmatprep.subr.bf16.mxu0 %v3700_v58  ;;  %v3751_v57 = vld [vmem:[%s4304_s8 + $0x320] ss:$8 sps:$4 sm:$0xff]   ;;  %v3756_v58 = vld [vmem:[%s4304_s8 + $0x214] ss:$8 sps:$4 sm:$0xff]  }
  0x96   : > { %2009 = vmatprep.subr.bf16.mxu1 %v3702_v59  ;;  %v3759_v59 = vld [vmem:[%s4304_s8 + $0x314] ss:$8 sps:$4 sm:$0xff]  }
  0x98   : > { %1817 = vmatpush2.bf16.msra.mxu0 %v3704_v60  ;;  %v3309_v60 = vcombine.low %v266_v36, %v270_v37  ;;  %v298_v36 = vld [vmem:[#allocation2 + $0x1c0] sm:$0xff] }
  0x99   : > { %2010 = vmatpush2.bf16.msra.mxu1 %v3705_v61  ;;  %1818 = vmatprep.subr.bf16.mxu0 %v3706_v62  ;;  %v3311_v61 = vcombine.low %v267_v38, %v271_v39  ;;  %v3318_v62 = vcombine.high %v274_v52, %v278_v53  ;;  %v302_v37 = vld [vmem:[#allocation2 + $0x1e0] sm:$0xff]  ;;  %v299_v38 = vld [vmem:[#allocation2 + $0x1c8] sm:$0xff] }
  0x9a   : > { %2011 = vmatprep.subr.bf16.mxu1 %v3708_v63  ;;  %v3320_v63 = vcombine.high %v275_v54, %v279_v55  ;;  %v303_v39 = vld [vmem:[#allocation2 + $0x1e8] sm:$0xff] }
  0x9c   : > { %1819 = vmatpush2.bf16.msra.mxu0 %v3710_v0  ;;  %v3754_v0 = vld [vmem:[%s4304_s8 + $0x210] ss:$8 sps:$4 sm:$0xff]  }
  0x9d   : > { %2012 = vmatpush2.bf16.msra.mxu1 %v3711_v1  ;;  %1820 = vmatprep.subr.bf16.mxu0 %v3712_v2  ;;  %v3757_v1 = vld [vmem:[%s4304_s8 + $0x310] ss:$8 sps:$4 sm:$0xff]   ;;  %v3762_v2 = vld [vmem:[%s4304_s8 + $0x204] ss:$8 sps:$4 sm:$0xff]  }
  0x9e   : > { %2013 = vmatprep.subr.bf16.mxu1 %v3714_v3  ;;  %v3765_v3 = vld [vmem:[%s4304_s8 + $0x304] ss:$8 sps:$4 sm:$0xff]  }
  0xa0   : > { %1821 = vmatpush2.bf16.msra.mxu0 %v3716_v4  ;;  %v282_v4 = vld [vmem:[#allocation2 + $0x140] sm:$0xff] }
  0xa1   : > { %2014 = vmatpush2.bf16.msra.mxu1 %v3717_v5  ;;  %2176 = vmatprep.subr.bf16.mxu0 %v3720_v6  ;;  %v286_v5 = vld [vmem:[#allocation2 + $0x160] sm:$0xff]  ;;  %v283_v6 = vld [vmem:[#allocation2 + $0x148] sm:$0xff] }
  0xa2   : > { %2369 = vmatprep.subr.bf16.mxu1 %v3723_v7  ;;  %v287_v7 = vld [vmem:[#allocation2 + $0x168] sm:$0xff] }
  0xa3   : > { %1823 = vmatmul.mubr.bf16.vlgmr.msra.gmra.mxu0 %v3285_v12  ;;  %v3317_v12 = vcombine.low %v274_v52, %v278_v53  ;;  %v306_v52 = vld [vmem:[#allocation2 + $0x200] sm:$0xff] }
  0xa4   : > { %2016 = vmatmul.mubr.bf16.vlgmr.msra.gmra.mxu1 %v3287_v13  ;;  %2177 = vmatpush1.bf16.msra.mxu0 %v3718_v14  ;;  %v3319_v13 = vcombine.low %v275_v54, %v279_v55  ;;  %v3326_v14 = vcombine.high %v282_v4, %v286_v5  ;;  %v310_v53 = vld [vmem:[#allocation2 + $0x220] sm:$0xff]  ;;  %v307_v54 = vld [vmem:[#allocation2 + $0x208] sm:$0xff] }
  0xa5   : > { %2370 = vmatpush1.bf16.msra.mxu1 %v3721_v15  ;;  %1832 = vmatprep.mubr.bf16.mxu0 %v3294_v16  ;;  %v3328_v15 = vcombine.high %v283_v6, %v287_v7  ;;  %v3766_v16 = vld [vmem:[%s4304_s8 + $0x2f0] ss:$8 sps:$4 sm:$0xff]   ;;  %v311_v55 = vld [vmem:[#allocation2 + $0x228] sm:$0xff] }
  0xa6   : > { %2025 = vmatprep.mubr.bf16.mxu1 %v3296_v17  ;;  %2178 = vmatprep.subr.bf16.mxu0 %v3726_v19  ;;  %v3769_v17 = vld [vmem:[%s4304_s8 + $0x3f0] ss:$8 sps:$4 sm:$0xff]   ;;  %v3777_v19 = vld [vmem:[%s4304_s8 + $0x3e4] ss:$8 sps:$4 sm:$0xff]  }
  0xa7   : > { %2371 = vmatprep.subr.bf16.mxu1 %v3729_v21  ;;  %v294_v21 = vld [vmem:[#allocation2 + $0x1a0] sm:$0xff] }
  0xa8   : > { %2179 = vmatpush1.bf16.msra.mxu0 %v3724_v18  ;;  %v3774_v18 = vld [vmem:[%s4304_s8 + $0x2e4] ss:$8 sps:$4 sm:$0xff]  }
  0xa9   : > { %2372 = vmatpush1.bf16.msra.mxu1 %v3727_v20  ;;  %2180 = vmatprep.subr.bf16.mxu0 %v3732_v26  ;;  %v290_v20 = vld [vmem:[#allocation2 + $0x180] sm:$0xff]  ;;  %v3780_v26 = vld [vmem:[%s4304_s8 + $0x2d4] ss:$8 sps:$4 sm:$0xff]  }
  0xaa   : > { %2373 = vmatprep.subr.bf16.mxu1 %v3735_v27  ;;  %v3783_v27 = vld [vmem:[%s4304_s8 + $0x3d4] ss:$8 sps:$4 sm:$0xff]  }
  0xab   : > { %1833 = vmatmul.mubr.bf16.gmra.mxu0 %v3293_v28  ;;  %v3325_v28 = vcombine.low %v282_v4, %v286_v5  ;;  %v314_v4 = vld [vmem:[#allocation2 + $0x240] sm:$0xff] }
  0xac   : > { %2026 = vmatmul.mubr.bf16.gmra.mxu1 %v3295_v29  ;;  %1842 = vmatprep.mubr.bf16.mxu0 %v3302_v30  ;;  %v3327_v29 = vcombine.low %v283_v6, %v287_v7  ;;  %v3334_v30 = vcombine.high %v290_v20, %v294_v21  ;;  %v318_v5 = vld [vmem:[#allocation2 + $0x260] sm:$0xff]  ;;  %v315_v6 = vld [vmem:[#allocation2 + $0x248] sm:$0xff] }
  0xad   : > { %2035 = vmatprep.mubr.bf16.mxu1 %v3304_v31  ;;  %2181 = vmatpush1.bf16.msra.mxu0 %v3730_v32  ;;  %v3336_v31 = vcombine.high %v291_v22, %v295_v23  ;;  %v3778_v32 = vld [vmem:[%s4304_s8 + $0x2d0] ss:$8 sps:$4 sm:$0xff]   ;;  %v319_v7 = vld [vmem:[#allocation2 + $0x268] sm:$0xff] }
  0xae   : > { %2374 = vmatpush1.bf16.msra.mxu1 %v3733_v33  ;;  %2182 = vmatprep.subr.bf16.mxu0 %v3738_v34  ;;  %v3781_v33 = vld [vmem:[%s4304_s8 + $0x3d0] ss:$8 sps:$4 sm:$0xff]   ;;  %v3786_v34 = vld [vmem:[%s4304_s8 + $0x2c4] ss:$8 sps:$4 sm:$0xff]  }
  0xaf   : > { %2375 = vmatprep.subr.bf16.mxu1 %v3741_v35  ;;  %v3789_v35 = vld [vmem:[%s4304_s8 + $0x3c4] ss:$8 sps:$4 sm:$0xff]  }
  0xb1   : > { %2183 = vmatpush1.bf16.msra.mxu0 %v3736_v40  ;;  %v3784_v40 = vld [vmem:[%s4304_s8 + $0x2c0] ss:$8 sps:$4 sm:$0xff]  }
  0xb2   : > { %2376 = vmatpush1.bf16.msra.mxu1 %v3739_v41  ;;  %2184 = vmatprep.subr.bf16.mxu0 %v3744_v42  ;;  %v3787_v41 = vld [vmem:[%s4304_s8 + $0x3c0] ss:$8 sps:$4 sm:$0xff]   ;;  %v3792_v42 = vld [vmem:[%s4304_s8 + $0x2b4] ss:$8 sps:$4 sm:$0xff]  }
  0xb3   : > { %2377 = vmatprep.subr.bf16.mxu1 %v3747_v43  ;;  %1843 = vmatmul.mubr.bf16.gmra.mxu0 %v3301_v44  ;;  %v3795_v43 = vld [vmem:[%s4304_s8 + $0x3b4] ss:$8 sps:$4 sm:$0xff]   ;;  %v3333_v44 = vcombine.low %v290_v20, %v294_v21 }
  0xb4   : > { %2036 = vmatmul.mubr.bf16.gmra.mxu1 %v3303_v45  ;;  %1852 = vmatprep.mubr.bf16.mxu0 %v3310_v46  ;;  %v3335_v45 = vcombine.low %v291_v22, %v295_v23  ;;  %v3342_v46 = vcombine.high %v298_v36, %v302_v37  ;;  %v330_v22 = vld [vmem:[#allocation2 + $0x2c0] sm:$0xff] }
  0xb5   : > { %2045 = vmatprep.mubr.bf16.mxu1 %v3312_v47  ;;  %2185 = vmatpush1.bf16.msra.mxu0 %v3742_v48  ;;  %v3344_v47 = vcombine.high %v299_v38, %v303_v39  ;;  %v3790_v48 = vld [vmem:[%s4304_s8 + $0x2b0] ss:$8 sps:$4 sm:$0xff]   ;;  %v334_v23 = vld [vmem:[#allocation2 + $0x2e0] sm:$0xff] }
  0xb6   : > { %2378 = vmatpush1.bf16.msra.mxu1 %v3745_v49  ;;  %2186 = vmatprep.subr.bf16.mxu0 %v3750_v50  ;;  %v3793_v49 = vld [vmem:[%s4304_s8 + $0x3b0] ss:$8 sps:$4 sm:$0xff]   ;;  %v3798_v50 = vld [vmem:[%s4304_s8 + $0x2a4] ss:$8 sps:$4 sm:$0xff]  }
  0xb7   : > { %2379 = vmatprep.subr.bf16.mxu1 %v3753_v51  ;;  %v3801_v51 = vld [vmem:[%s4304_s8 + $0x3a4] ss:$8 sps:$4 sm:$0xff]  }
  0xb9   : > { %2187 = vmatpush1.bf16.msra.mxu0 %v3748_v56  ;;  %v3796_v56 = vld [vmem:[%s4304_s8 + $0x2a0] ss:$8 sps:$4 sm:$0xff]  }
  0xba   : > { %2380 = vmatpush1.bf16.msra.mxu1 %v3751_v57  ;;  %2188 = vmatprep.subr.bf16.mxu0 %v3756_v58  ;;  %v3799_v57 = vld [vmem:[%s4304_s8 + $0x3a0] ss:$8 sps:$4 sm:$0xff]   ;;  %v3804_v58 = vld [vmem:[%s4304_s8 + $0x294] ss:$8 sps:$4 sm:$0xff]  }
  0xbb   : > { %2381 = vmatprep.subr.bf16.mxu1 %v3759_v59  ;;  %1853 = vmatmul.mubr.bf16.gmra.mxu0 %v3309_v60  ;;  %v3807_v59 = vld [vmem:[%s4304_s8 + $0x394] ss:$8 sps:$4 sm:$0xff]   ;;  %v3341_v60 = vcombine.low %v298_v36, %v302_v37 }
  0xbc   : > { %2046 = vmatmul.mubr.bf16.gmra.mxu1 %v3311_v61  ;;  %1862 = vmatprep.mubr.bf16.mxu0 %v3318_v62  ;;  %v3343_v61 = vcombine.low %v299_v38, %v303_v39  ;;  %v3350_v62 = vcombine.high %v306_v52, %v310_v53  ;;  %v346_v38 = vld [vmem:[#allocation2 + $0x340] sm:$0xff] }
  0xbd   : > { %2055 = vmatprep.mubr.bf16.mxu1 %v3320_v63  ;;  %2189 = vmatpush1.bf16.msra.mxu0 %v3754_v0  ;;  %v3352_v63 = vcombine.high %v307_v54, %v311_v55  ;;  %v3802_v0 = vld [vmem:[%s4304_s8 + $0x290] ss:$8 sps:$4 sm:$0xff]   ;;  %v350_v39 = vld [vmem:[#allocation2 + $0x360] sm:$0xff] }
  0xbe   : > { %2382 = vmatpush1.bf16.msra.mxu1 %v3757_v1  ;;  %2190 = vmatprep.subr.bf16.mxu0 %v3762_v2  ;;  %v3805_v1 = vld [vmem:[%s4304_s8 + $0x390] ss:$8 sps:$4 sm:$0xff]   ;;  %v3810_v2 = vld [vmem:[%s4304_s8 + $0x284] ss:$8 sps:$4 sm:$0xff]  }
  0xbf   : > { %2383 = vmatprep.subr.bf16.mxu1 %v3765_v3  ;;  %v3813_v3 = vld [vmem:[%s4304_s8 + $0x384] ss:$8 sps:$4 sm:$0xff]  }
  0xc1   : > { %2191 = vmatpush1.bf16.msra.mxu0 %v3760_v8  ;;  %v3808_v8 = vld [vmem:[%s4304_s8 + $0x280] ss:$8 sps:$4 sm:$0xff]  }
  0xc2   : > { %2384 = vmatpush1.bf16.msra.mxu1 %v3763_v9  ;;  %2192 = vmatprep.subr.bf16.mxu0 %v3768_v10  ;;  %v3811_v9 = vld [vmem:[%s4304_s8 + $0x380] ss:$8 sps:$4 sm:$0xff]   ;;  %v3349_v10 = vcombine.low %v306_v52, %v310_v53 }
  0xc3   : > { %2385 = vmatprep.subr.bf16.mxu1 %v3771_v11  ;;  %1863 = vmatmul.mubr.bf16.gmra.mxu0 %v3317_v12  ;;  %v3351_v11 = vcombine.low %v307_v54, %v311_v55  ;;  %v3358_v12 = vcombine.high %v314_v4, %v318_v5  ;;  %v362_v54 = vld [vmem:[#allocation2 + $0x3c0] sm:$0xff] }
  0xc4   : > { %2056 = vmatmul.mubr.bf16.gmra.mxu1 %v3319_v13  ;;  %1872 = vmatprep.mubr.bf16.mxu0 %v3326_v14  ;;  %v3360_v13 = vcombine.high %v315_v6, %v319_v7  ;;  %v322_v14 = vld [vmem:[#allocation2 + $0x280] sm:$0xff] }
  0xc5   : > { %2065 = vmatprep.mubr.bf16.mxu1 %v3328_v15  ;;  %2193 = vmatpush2.bf16.msra.mxu0 %v3766_v16  ;;  %v326_v15 = vld [vmem:[#allocation2 + $0x2a0] sm:$0xff]  ;;  %v323_v16 = vld [vmem:[#allocation2 + $0x288] sm:$0xff] }
  0xc6   : > { %2386 = vmatpush2.bf16.msra.mxu1 %v3769_v17  ;;  %2194 = vmatprep.subr.bf16.mxu0 %v3774_v18  ;;  %v327_v17 = vld [vmem:[#allocation2 + $0x2a8] sm:$0xff]  ;;  %v3357_v18 = vcombine.low %v314_v4, %v318_v5  ;;  %v3366_v20 = vcombine.high %v322_v14, %v326_v15  ;;  %v366_v55 = vld [vmem:[#allocation2 + $0x3e0] sm:$0xff] }
  0xc7   : > { %2387 = vmatprep.subr.bf16.mxu1 %v3777_v19  ;;  %v3359_v19 = vcombine.low %v315_v6, %v319_v7  ;;  %v3368_v21 = vcombine.high %v323_v16, %v327_v17  ;;  %v252_v6 = vld [vmem:[#allocation2 + $0x50] sm:$0xff] }
  0xc8   : > { %v256_v7 = vld [vmem:[#allocation2 + $0x70] sm:$0xff] }
  0xc9   : > { %2195 = vmatpush2.bf16.msra.mxu0 %v3772_v24  ;;  %v331_v24 = vld [vmem:[#allocation2 + $0x2c8] sm:$0xff] }
  0xca   : > { %2388 = vmatpush2.bf16.msra.mxu1 %v3775_v25  ;;  %2196 = vmatprep.subr.bf16.mxu0 %v3780_v26  ;;  %v335_v25 = vld [vmem:[#allocation2 + $0x2e8] sm:$0xff]  ;;  %v3365_v26 = vcombine.low %v322_v14, %v326_v15  ;;  %v260_v14 = vld [vmem:[#allocation2 + $0x90] sm:$0xff] }
  0xcb   : > { %2389 = vmatprep.subr.bf16.mxu1 %v3783_v27  ;;  %1873 = vmatmul.mubr.bf16.gmra.mxu0 %v3325_v28  ;;  %v3367_v27 = vcombine.low %v323_v16, %v327_v17  ;;  %v3374_v28 = vcombine.high %v330_v22, %v334_v23  ;;  %v264_v15 = vld [vmem:[#allocation2 + $0xb0] sm:$0xff]  ;;  %v261_v16 = vld [vmem:[#allocation2 + $0x98] sm:$0xff] }
  0xcc   : > { %2066 = vmatmul.mubr.bf16.gmra.mxu1 %v3327_v29  ;;  %1882 = vmatprep.mubr.bf16.mxu0 %v3334_v30  ;;  %v3376_v29 = vcombine.high %v331_v24, %v335_v25  ;;  %v338_v30 = vld [vmem:[#allocation2 + $0x300] sm:$0xff]  ;;  %v265_v17 = vld [vmem:[#allocation2 + $0xb8] sm:$0xff] }
  0xcd   : > { %2075 = vmatprep.mubr.bf16.mxu1 %v3336_v31  ;;  %2197 = vmatpush2.bf16.msra.mxu0 %v3778_v32  ;;  %v342_v31 = vld [vmem:[#allocation2 + $0x320] sm:$0xff]  ;;  %v339_v32 = vld [vmem:[#allocation2 + $0x308] sm:$0xff] }
  0xce   : > { %2390 = vmatpush2.bf16.msra.mxu1 %v3781_v33  ;;  %2198 = vmatprep.subr.bf16.mxu0 %v3786_v34  ;;  %v343_v33 = vld [vmem:[#allocation2 + $0x328] sm:$0xff]  ;;  %v3373_v34 = vcombine.low %v330_v22, %v334_v23  ;;  %v3382_v36 = vcombine.high %v338_v30, %v342_v31  ;;  %v268_v22 = vld [vmem:[#allocation2 + $0xd0] sm:$0xff] }
  0xcf   : > { %2391 = vmatprep.subr.bf16.mxu1 %v3789_v35  ;;  %v3375_v35 = vcombine.low %v331_v24, %v335_v25  ;;  %v3384_v37 = vcombine.high %v339_v32, %v343_v33  ;;  %v272_v23 = vld [vmem:[#allocation2 + $0xf0] sm:$0xff]  ;;  %v269_v24 = vld [vmem:[#allocation2 + $0xd8] sm:$0xff] }
  0xd0   : > { %v273_v25 = vld [vmem:[#allocation2 + $0xf8] sm:$0xff] }
  0xd1   : > { %2199 = vmatpush2.bf16.msra.mxu0 %v3784_v40  ;;  %v347_v40 = vld [vmem:[#allocation2 + $0x348] sm:$0xff] }
  0xd2   : > { %2392 = vmatpush2.bf16.msra.mxu1 %v3787_v41  ;;  %2200 = vmatprep.subr.bf16.mxu0 %v3792_v42  ;;  %v351_v41 = vld [vmem:[#allocation2 + $0x368] sm:$0xff]  ;;  %v3381_v42 = vcombine.low %v338_v30, %v342_v31  ;;  %v276_v30 = vld [vmem:[#allocation2 + $0x110] sm:$0xff] }
  0xd3   : > { %2393 = vmatprep.subr.bf16.mxu1 %v3795_v43  ;;  %1883 = vmatmul.mubr.bf16.gmra.mxu0 %v3333_v44  ;;  %v3383_v43 = vcombine.low %v339_v32, %v343_v33  ;;  %v3390_v44 = vcombine.high %v346_v38, %v350_v39  ;;  %v280_v31 = vld [vmem:[#allocation2 + $0x130] sm:$0xff]  ;;  %v277_v32 = vld [vmem:[#allocation2 + $0x118] sm:$0xff] }
  0xd4   : > { %2076 = vmatmul.mubr.bf16.gmra.mxu1 %v3335_v45  ;;  %1892 = vmatprep.mubr.bf16.mxu0 %v3342_v46  ;;  %v3392_v45 = vcombine.high %v347_v40, %v351_v41  ;;  %v354_v46 = vld [vmem:[#allocation2 + $0x380] sm:$0xff]  ;;  %v281_v33 = vld [vmem:[#allocation2 + $0x138] sm:$0xff] }
  0xd5   : > { %2085 = vmatprep.mubr.bf16.mxu1 %v3344_v47  ;;  %2201 = vmatpush2.bf16.msra.mxu0 %v3790_v48  ;;  %v358_v47 = vld [vmem:[#allocation2 + $0x3a0] sm:$0xff]  ;;  %v355_v48 = vld [vmem:[#allocation2 + $0x388] sm:$0xff] }
  0xd6   : > { %2394 = vmatpush2.bf16.msra.mxu1 %v3793_v49  ;;  %2202 = vmatprep.subr.bf16.mxu0 %v3798_v50  ;;  %v359_v49 = vld [vmem:[#allocation2 + $0x3a8] sm:$0xff]  ;;  %v3389_v50 = vcombine.low %v346_v38, %v350_v39  ;;  %v3398_v52 = vcombine.high %v354_v46, %v358_v47  ;;  %v284_v38 = vld [vmem:[#allocation2 + $0x150] sm:$0xff] }
  0xd7   : > { %2395 = vmatprep.subr.bf16.mxu1 %v3801_v51  ;;  %v3391_v51 = vcombine.low %v347_v40, %v351_v41  ;;  %v3400_v53 = vcombine.high %v355_v48, %v359_v49  ;;  %v288_v39 = vld [vmem:[#allocation2 + $0x170] sm:$0xff]  ;;  %v285_v40 = vld [vmem:[#allocation2 + $0x158] sm:$0xff] }
  0xd8   : > { %v289_v41 = vld [vmem:[#allocation2 + $0x178] sm:$0xff] }
  0xd9   : > { %2203 = vmatpush2.bf16.msra.mxu0 %v3796_v56  ;;  %v363_v56 = vld [vmem:[#allocation2 + $0x3c8] sm:$0xff] }
  0xda   : > { %2396 = vmatpush2.bf16.msra.mxu1 %v3799_v57  ;;  %2204 = vmatprep.subr.bf16.mxu0 %v3804_v58  ;;  %v367_v57 = vld [vmem:[#allocation2 + $0x3e8] sm:$0xff]  ;;  %v3397_v58 = vcombine.low %v354_v46, %v358_v47  ;;  %v292_v46 = vld [vmem:[#allocation2 + $0x190] sm:$0xff] }
  0xdb   : > { %2397 = vmatprep.subr.bf16.mxu1 %v3807_v59  ;;  %1893 = vmatmul.mubr.bf16.gmra.mxu0 %v3341_v60  ;;  %v3399_v59 = vcombine.low %v355_v48, %v359_v49  ;;  %v3406_v60 = vcombine.high %v362_v54, %v366_v55  ;;  %v296_v47 = vld [vmem:[#allocation2 + $0x1b0] sm:$0xff]  ;;  %v293_v48 = vld [vmem:[#allocation2 + $0x198] sm:$0xff] }
  0xdc   : > { %2086 = vmatmul.mubr.bf16.gmra.mxu1 %v3343_v61  ;;  %1902 = vmatprep.mubr.bf16.mxu0 %v3350_v62  ;;  %v3408_v61 = vcombine.high %v363_v56, %v367_v57  ;;  %v244_v62 = vld [vmem:[#allocation2 + $0x10] sm:$0xff]  ;;  %v297_v49 = vld [vmem:[#allocation2 + $0x1b8] sm:$0xff] }
  0xdd   : > { %2095 = vmatprep.mubr.bf16.mxu1 %v3352_v63  ;;  %2205 = vmatpush2.bf16.msra.mxu0 %v3802_v0  ;;  %v248_v63 = vld [vmem:[#allocation2 + $0x30] sm:$0xff]  ;;  %v245_v0 = vld [vmem:[#allocation2 + $0x18] sm:$0xff] }
  0xde   : > { %2398 = vmatpush2.bf16.msra.mxu1 %v3805_v1  ;;  %2206 = vmatprep.subr.bf16.mxu0 %v3810_v2  ;;  %v249_v1 = vld [vmem:[#allocation2 + $0x38] sm:$0xff]  ;;  %v3405_v2 = vcombine.low %v362_v54, %v366_v55  ;;  %v3290_v4 = vcombine.high %v244_v62, %v248_v63  ;;  %v300_v54 = vld [vmem:[#allocation2 + $0x1d0] sm:$0xff] }
  0xdf   : > { %2399 = vmatprep.subr.bf16.mxu1 %v3813_v3  ;;  %v3407_v3 = vcombine.low %v363_v56, %v367_v57  ;;  %v3292_v5 = vcombine.high %v245_v0, %v249_v1  ;;  %v304_v55 = vld [vmem:[#allocation2 + $0x1f0] sm:$0xff]  ;;  %v301_v56 = vld [vmem:[#allocation2 + $0x1d8] sm:$0xff] }
  0xe0   : > { %v305_v57 = vld [vmem:[#allocation2 + $0x1f8] sm:$0xff] }
  0xe1   : > { %2207 = vmatpush2.bf16.msra.mxu0 %v3808_v8  ;;  %v253_v8 = vld [vmem:[#allocation2 + $0x58] sm:$0xff] }
  0xe2   : > { %2400 = vmatpush2.bf16.msra.mxu1 %v3811_v9  ;;  %v257_v9 = vld [vmem:[#allocation2 + $0x78] sm:$0xff] }
  0xe3   : > { %1903 = vmatmul.mubr.bf16.gmra.mxu0 %v3349_v10  ;;  %v3289_v10 = vcombine.low %v244_v62, %v248_v63  ;;  %v308_v62 = vld [vmem:[#allocation2 + $0x210] sm:$0xff]  ;;  %v500_v63 = vlaneseq }
  0xe4   : > { %2096 = vmatmul.mubr.bf16.gmra.mxu1 %v3351_v11  ;;  %1912 = vmatprep.mubr.bf16.mxu0 %v3358_v12  ;;  %v3291_v11 = vcombine.low %v245_v0, %v249_v1  ;;  %v3298_v12 = vcombine.high %v252_v6, %v256_v7  ;;  %v312_v0 = vld [vmem:[#allocation2 + $0x230] sm:$0xff]  ;;  %v309_v1 = vld [vmem:[#allocation2 + $0x218] sm:$0xff] }
  0xe5   : > { %2105 = vmatprep.mubr.bf16.mxu1 %v3360_v13  ;;  %v3300_v13 = vcombine.high %v253_v8, %v257_v9 }
  0xeb   : > { %1913 = vmatmul.mubr.bf16.gmra.mxu0 %v3357_v18  ;;  %v3297_v18 = vcombine.low %v252_v6, %v256_v7  ;;  %v4451_v7 = vshrl.u32 %v500_v63, 7 }
  0xec   : > { %2106 = vmatmul.mubr.bf16.gmra.mxu1 %v3359_v19  ;;  %1922 = vmatprep.mubr.bf16.mxu0 %v3366_v20  ;;  %v3299_v19 = vcombine.low %v253_v8, %v257_v9  ;;  %v3306_v20 = vcombine.high %v260_v14, %v264_v15  ;;  %v498_v8 = vld [vmem:[%s4453_s4] ss:$4 sm:$0x3] }
  0xed   : > { %2115 = vmatprep.mubr.bf16.mxu1 %v3368_v21  ;;  %v3308_v21 = vcombine.high %v261_v16, %v265_v17  ;;  %5739 = vst [vmem:[#allocation12_spill] sm:$0xff] %v4451_v7  ;;  %v4457_v9 = vsub.s32 0, %v4451_v7 }
  0xef   : > { %5740 = vst [vmem:[#allocation13_spill] sm:$0xff] %v4457_v9 }
  0xf3   : > { %1923 = vmatmul.mubr.bf16.gmra.mxu0 %v3365_v26  ;;  %v3305_v26 = vcombine.low %v260_v14, %v264_v15  ;;  %v4460_v14 = vsub.s32 1, %v4451_v7  ;;  %v3353_v15 = vcombine.low %v308_v62, %v312_v0 }
  0xf4   : > { %2116 = vmatmul.mubr.bf16.gmra.mxu1 %v3367_v27  ;;  %1932 = vmatprep.mubr.bf16.mxu0 %v3374_v28  ;;  %v3307_v27 = vcombine.low %v261_v16, %v265_v17  ;;  %v3314_v28 = vcombine.high %v268_v22, %v272_v23  ;;  %v4463_v17 = vrot.slane %v498_v8, %v4457_v9 }
  0xf5   : > { %2125 = vmatprep.mubr.bf16.mxu1 %v3376_v29  ;;  %v3316_v29 = vcombine.high %v269_v24, %v273_v25  ;;  %5741 = vst [vmem:[#allocation14_spill] sm:$0xff] %v4460_v14 }
  0xfb   : > { %1933 = vmatmul.mubr.bf16.gmra.mxu0 %v3373_v34  ;;  %v3313_v34 = vcombine.low %v268_v22, %v272_v23 }
  0xfc   : > { %2126 = vmatmul.mubr.bf16.gmra.mxu1 %v3375_v35  ;;  %1942 = vmatprep.mubr.bf16.mxu0 %v3382_v36  ;;  %v3315_v35 = vcombine.low %v269_v24, %v273_v25  ;;  %v3322_v36 = vcombine.high %v276_v30, %v280_v31  ;;  %v324_v24 = vld [vmem:[#allocation2 + $0x290] sm:$0xff] }
  0xfd   : > { %2135 = vmatprep.mubr.bf16.mxu1 %v3384_v37  ;;  %v3324_v37 = vcombine.high %v277_v32, %v281_v33 }
 0x103   : > { %1943 = vmatmul.mubr.bf16.gmra.mxu0 %v3381_v42  ;;  %v3321_v42 = vcombine.low %v276_v30, %v280_v31 }
 0x104   : > { %2136 = vmatmul.mubr.bf16.gmra.mxu1 %v3383_v43  ;;  %1952 = vmatprep.mubr.bf16.mxu0 %v3390_v44  ;;  %v3323_v43 = vcombine.low %v277_v32, %v281_v33  ;;  %v3330_v44 = vcombine.high %v284_v38, %v288_v39 }
 0x105   : > { %2145 = vmatprep.mubr.bf16.mxu1 %v3392_v45  ;;  %v3332_v45 = vcombine.high %v285_v40, %v289_v41 }
 0x10b   : > { %1953 = vmatmul.mubr.bf16.gmra.mxu0 %v3389_v50  ;;  %v3329_v50 = vcombine.low %v284_v38, %v288_v39 }
 0x10c   : > { %2146 = vmatmul.mubr.bf16.gmra.mxu1 %v3391_v51  ;;  %1962 = vmatprep.mubr.bf16.mxu0 %v3398_v52  ;;  %v3331_v51 = vcombine.low %v285_v40, %v289_v41  ;;  %v3338_v52 = vcombine.high %v292_v46, %v296_v47 }
 0x10d   : > { %2155 = vmatprep.mubr.bf16.mxu1 %v3400_v53  ;;  %v3340_v53 = vcombine.high %v293_v48, %v297_v49 }
 0x113   : > { %1963 = vmatmul.mubr.bf16.gmra.mxu0 %v3397_v58  ;;  %v3337_v58 = vcombine.low %v292_v46, %v296_v47 }
 0x114   : > { %2156 = vmatmul.mubr.bf16.gmra.mxu1 %v3399_v59  ;;  %1972 = vmatprep.mubr.bf16.mxu0 %v3406_v60  ;;  %v3339_v59 = vcombine.low %v293_v48, %v297_v49  ;;  %v3346_v60 = vcombine.high %v300_v54, %v304_v55  ;;  %v332_v48 = vld [vmem:[#allocation2 + $0x2d0] sm:$0xff] }
 0x115   : > { %2165 = vmatprep.mubr.bf16.mxu1 %v3408_v61  ;;  %v3348_v61 = vcombine.high %v301_v56, %v305_v57 }
 0x11b   : > { %1973 = vmatmul.mubr.bf16.gmra.mxu0 %v3405_v2  ;;  %v313_v2 = vld [vmem:[#allocation2 + $0x238] sm:$0xff] }
 0x11c   : > { %2166 = vmatmul.mubr.bf16.gmra.mxu1 %v3407_v3  ;;  %2208 = vmatprep.mubr.bf16.mxu0 %v3290_v4  ;;  %v3345_v3 = vcombine.low %v300_v54, %v304_v55  ;;  %v3347_v4 = vcombine.low %v301_v56, %v305_v57  ;;  %v3356_v6 = vcombine.high %v309_v1, %v313_v2 }
 0x11d   : > { %2401 = vmatprep.mubr.bf16.mxu1 %v3292_v5  ;;  %v3354_v5 = vcombine.high %v308_v62, %v312_v0  ;;  %v3355_v16 = vcombine.low %v309_v1, %v313_v2 }
 0x123   : > { %2209 = vmatmul.mubr.bf16.vlgmr.msra.gmra.mxu0 %v3289_v10  ;;  %v316_v10 = vld [vmem:[#allocation2 + $0x250] sm:$0xff] }
 0x124   : > { %2402 = vmatmul.mubr.bf16.vlgmr.msra.gmra.mxu1 %v3291_v11  ;;  %2218 = vmatprep.mubr.bf16.mxu0 %v3298_v12  ;;  %v320_v11 = vld [vmem:[#allocation2 + $0x270] sm:$0xff]  ;;  %v317_v12 = vld [vmem:[#allocation2 + $0x258] sm:$0xff] }
 0x125   : > { %2411 = vmatprep.mubr.bf16.mxu1 %v3300_v13  ;;  %v321_v13 = vld [vmem:[#allocation2 + $0x278] sm:$0xff] }
 0x12b   : > { %2219 = vmatmul.mubr.bf16.gmra.mxu0 %v3297_v18  ;;  %v3362_v18 = vcombine.high %v316_v10, %v320_v11 }
 0x12c   : > { %2412 = vmatmul.mubr.bf16.gmra.mxu1 %v3299_v19  ;;  %2228 = vmatprep.mubr.bf16.mxu0 %v3306_v20  ;;  %v3364_v19 = vcombine.high %v317_v12, %v321_v13  ;;  %v4466_v20 = vrot.slane %v498_v8, %v4460_v14 }
 0x12d   : > { %2421 = vmatprep.mubr.bf16.mxu1 %v3308_v21 }
 0x133   : > { %2229 = vmatmul.mubr.bf16.gmra.mxu0 %v3305_v26 }
 0x134   : > { %2422 = vmatmul.mubr.bf16.gmra.mxu1 %v3307_v27  ;;  %2238 = vmatprep.mubr.bf16.mxu0 %v3314_v28  ;;  %v328_v27 = vld [vmem:[#allocation2 + $0x2b0] sm:$0xff]  ;;  %v325_v28 = vld [vmem:[#allocation2 + $0x298] sm:$0xff] }
 0x135   : > { %2431 = vmatprep.mubr.bf16.mxu1 %v3316_v29  ;;  %v329_v29 = vld [vmem:[#allocation2 + $0x2b8] sm:$0xff]  ;;  %v3370_v38 = vcombine.high %v324_v24, %v328_v27 }
 0x136   : > { %v3372_v39 = vcombine.high %v325_v28, %v329_v29 }
 0x13b   : > { %2239 = vmatmul.mubr.bf16.gmra.mxu0 %v3313_v34  ;;  %v3361_v34 = vcombine.low %v316_v10, %v320_v11  ;;  %v340_v10 = vld [vmem:[#allocation2 + $0x310] sm:$0xff] }
 0x13c   : > { %2432 = vmatmul.mubr.bf16.gmra.mxu1 %v3315_v35  ;;  %2248 = vmatprep.mubr.bf16.mxu0 %v3322_v36  ;;  %v3363_v35 = vcombine.low %v317_v12, %v321_v13  ;;  %v344_v13 = vld [vmem:[#allocation2 + $0x330] sm:$0xff] }
 0x13d   : > { %2441 = vmatprep.mubr.bf16.mxu1 %v3324_v37 }
 0x143   : > { %2249 = vmatmul.mubr.bf16.gmra.mxu0 %v3321_v42 }
 0x144   : > { %2442 = vmatmul.mubr.bf16.gmra.mxu1 %v3323_v43  ;;  %2258 = vmatprep.mubr.bf16.mxu0 %v3330_v44 }
 0x145   : > { %2451 = vmatprep.mubr.bf16.mxu1 %v3332_v45 }
 0x14b   : > { %2259 = vmatmul.mubr.bf16.gmra.mxu0 %v3329_v50 }
 0x14c   : > { %2452 = vmatmul.mubr.bf16.gmra.mxu1 %v3331_v51  ;;  %2268 = vmatprep.mubr.bf16.mxu0 %v3338_v52  ;;  %v336_v51 = vld [vmem:[#allocation2 + $0x2f0] sm:$0xff]  ;;  %v333_v52 = vld [vmem:[#allocation2 + $0x2d8] sm:$0xff] }
 0x14d   : > { %2461 = vmatprep.mubr.bf16.mxu1 %v3340_v53  ;;  %v337_v53 = vld [vmem:[#allocation2 + $0x2f8] sm:$0xff]  ;;  %v3378_v62 = vcombine.high %v332_v48, %v336_v51 }
 0x14e   : > { %v3380_v63 = vcombine.high %v333_v52, %v337_v53 }
 0x153   : > { %2269 = vmatmul.mubr.bf16.gmra.mxu0 %v3337_v58  ;;  %v3369_v58 = vcombine.low %v324_v24, %v328_v27  ;;  %v3379_v24 = vcombine.low %v333_v52, %v337_v53  ;;  %v3386_v27 = vcombine.high %v340_v10, %v344_v13 }
 0x154   : > { %2462 = vmatmul.mubr.bf16.gmra.mxu1 %v3339_v59  ;;  %2278 = vmatprep.mubr.bf16.mxu0 %v3346_v60  ;;  %v3371_v59 = vcombine.low %v325_v28, %v329_v29 }
 0x155   : > { %2471 = vmatprep.mubr.bf16.mxu1 %v3348_v61 }
 0x15b   : > { %2279 = vmatmul.mubr.bf16.gmra.mxu0 %v3345_v3 }
 0x15c   : > { %2472 = vmatmul.mubr.bf16.gmra.mxu1 %v3347_v4  ;;  %2288 = vmatprep.mubr.bf16.mxu0 %v3354_v5 }
 0x15d   : > { %2481 = vmatprep.mubr.bf16.mxu1 %v3356_v6 }
 0x163   : > { %v1824_v21 = vpop.f32.mrf.mxu0  ;;  %2289 = vmatmul.mubr.bf16.gmra.mxu0 %v3353_v15  ;;  %v341_v15 = vld [vmem:[#allocation2 + $0x318] sm:$0xff] }
 0x164   : > { %v2017_v22 = vpop.f32.mrf.mxu1  ;;  %2482 = vmatmul.mubr.bf16.gmra.mxu1 %v3355_v16  ;;  %v1825_v23 = vadd.f32 %v1824_v21, %v4463_v17  ;;  %2298 = vmatprep.mubr.bf16.mxu0 %v3362_v18  ;;  %v345_v16 = vld [vmem:[#allocation2 + $0x338] sm:$0xff] }
 0x165   : > { %2491 = vmatprep.mubr.bf16.mxu1 %v3364_v19  ;;  %v1826_v25 = vpop.f32.mrf.mxu0  ;;  %v3388_v28 = vcombine.high %v341_v15, %v345_v16  ;;  %v3387_v52 = vcombine.low %v341_v15, %v345_v16 }
 0x166   : > { %v2019_v26 = vpop.f32.mrf.mxu1  ;;  %v4469_v30 = vadd.f32 %v2017_v22, %v1825_v23  ;;  %v1827_v31 = vadd.f32 %v1826_v25, %v4466_v20  ;;  %v3377_v23 = vcombine.low %v332_v48, %v336_v51  ;;  %v3385_v51 = vcombine.low %v340_v10, %v344_v13  ;;  %v360_v10 = vld [vmem:[#allocation2 + $0x3b0] sm:$0xff] }
 0x167   : > { %v1828_v32 = vpop.f32.mrf.mxu0 }
 0x168   : > { %v2021_v33 = vpop.f32.mrf.mxu1  ;;  %v4472_v36 = vadd.f32 %v2019_v26, %v1827_v31  ;;  %v1829_v37 = vadd.f32 %v1828_v32, %v4463_v17 }
 0x169   : > { %v1830_v40 = vpop.f32.mrf.mxu0 }
 0x16a   : > { %v2023_v41 = vpop.f32.mrf.mxu1  ;;  %v4475_v42 = vadd.f32 %v2021_v33, %v1829_v37  ;;  %v1831_v43 = vadd.f32 %v1830_v40, %v4466_v20 }
 0x16b   : > { %v1834_v44 = vpop.f32.mrf.mxu0  ;;  %2299 = vmatmul.mubr.bf16.gmra.mxu0 %v3361_v34 }
 0x16c   : > { %v2027_v45 = vpop.f32.mrf.mxu1  ;;  %2492 = vmatmul.mubr.bf16.gmra.mxu1 %v3363_v35  ;;  %v4478_v46 = vadd.f32 %v2023_v41, %v1831_v43  ;;  %v1835_v47 = vadd.f32 %v1834_v44, %v4463_v17  ;;  %2308 = vmatprep.mubr.bf16.mxu0 %v3370_v38  ;;  %v352_v43 = vld [vmem:[#allocation2 + $0x370] sm:$0xff]  ;;  %v349_v44 = vld [vmem:[#allocation2 + $0x358] sm:$0xff] }
 0x16d   : > { %2501 = vmatprep.mubr.bf16.mxu1 %v3372_v39  ;;  %v1836_v49 = vpop.f32.mrf.mxu0  ;;  %v348_v39 = vld [vmem:[#allocation2 + $0x350] sm:$0xff] }
 0x16e   : > { %v2029_v50 = vpop.f32.mrf.mxu1  ;;  %v4481_v54 = vadd.f32 %v2027_v45, %v1835_v47  ;;  %v1837_v55 = vadd.f32 %v1836_v49, %v4466_v20  ;;  %v353_v45 = vld [vmem:[#allocation2 + $0x378] sm:$0xff] }
 0x16f   : > { %v1838_v56 = vpop.f32.mrf.mxu0 }
 0x170   : > { %v2031_v57 = vpop.f32.mrf.mxu1  ;;  %v4484_v60 = vadd.f32 %v2029_v50, %v1837_v55  ;;  %v1839_v61 = vadd.f32 %v1838_v56, %v4463_v17  ;;  %v3394_v56 = vcombine.high %v348_v39, %v352_v43 }
 0x171   : > { %v1840_v0 = vpop.f32.mrf.mxu0 }
 0x172   : > { %v2033_v1 = vpop.f32.mrf.mxu1  ;;  %v4487_v2 = vadd.f32 %v2031_v57, %v1839_v61  ;;  %v1841_v3 = vadd.f32 %v1840_v0, %v4466_v20  ;;  %v3396_v57 = vcombine.high %v349_v44, %v353_v45 }
 0x173   : > { %v1844_v4 = vpop.f32.mrf.mxu0  ;;  %2309 = vmatmul.mubr.bf16.gmra.mxu0 %v3369_v58 }
 0x174   : > { %v2037_v5 = vpop.f32.mrf.mxu1  ;;  %2502 = vmatmul.mubr.bf16.gmra.mxu1 %v3371_v59  ;;  %v4490_v6 = vadd.f32 %v2033_v1, %v1841_v3  ;;  %v1845_v8 = vadd.f32 %v1844_v4, %v4463_v17  ;;  %2318 = vmatprep.mubr.bf16.mxu0 %v3378_v62  ;;  %v356_v4 = vld [vmem:[#allocation2 + $0x390] sm:$0xff] }
 0x175   : > { %2511 = vmatprep.mubr.bf16.mxu1 %v3380_v63  ;;  %v1846_v11 = vpop.f32.mrf.mxu0 }
 0x176   : > { %v2039_v12 = vpop.f32.mrf.mxu1  ;;  %v4493_v18 = vadd.f32 %v2037_v5, %v1845_v8  ;;  %v1847_v19 = vadd.f32 %v1846_v11, %v4466_v20  ;;  %v357_v11 = vld [vmem:[#allocation2 + $0x398] sm:$0xff] }
 0x177   : > { %v1848_v21 = vpop.f32.mrf.mxu0 }
 0x178   : > { %v2041_v22 = vpop.f32.mrf.mxu1  ;;  %v4496_v25 = vadd.f32 %v2039_v12, %v1847_v19  ;;  %v1849_v26 = vadd.f32 %v1848_v21, %v4463_v17  ;;  %v361_v12 = vld [vmem:[#allocation2 + $0x3b8] sm:$0xff]  ;;  %v3393_v21 = vcombine.low %v348_v39, %v352_v43 }
 0x179   : > { %v1850_v29 = vpop.f32.mrf.mxu0 }
 0x17a   : > { %v2043_v31 = vpop.f32.mrf.mxu1  ;;  %v4499_v32 = vadd.f32 %v2041_v22, %v1849_v26  ;;  %v1851_v33 = vadd.f32 %v1850_v29, %v4466_v20  ;;  %v3395_v22 = vcombine.low %v349_v44, %v353_v45  ;;  %v3402_v26 = vcombine.high %v356_v4, %v360_v10  ;;  %v368_v44 = vld [vmem:[#allocation2 + $0x3f0] sm:$0xff]  ;;  %v365_v45 = vld [vmem:[#allocation2 + $0x3d8] sm:$0xff] }
 0x17b   : > { %v1854_v34 = vpop.f32.mrf.mxu0  ;;  %2319 = vmatmul.mubr.bf16.gmra.mxu0 %v3377_v23 }
 0x17c   : > { %v2047_v35 = vpop.f32.mrf.mxu1  ;;  %2512 = vmatmul.mubr.bf16.gmra.mxu1 %v3379_v24  ;;  %v4502_v37 = vadd.f32 %v2043_v31, %v1851_v33  ;;  %v1855_v38 = vadd.f32 %v1854_v34, %v4463_v17  ;;  %2328 = vmatprep.mubr.bf16.mxu0 %v3386_v27  ;;  %v3404_v27 = vcombine.high %v357_v11, %v361_v12 }
 0x17d   : > { %2521 = vmatprep.mubr.bf16.mxu1 %v3388_v28  ;;  %v1856_v40 = vpop.f32.mrf.mxu0 }
 0x17e   : > { %v2049_v41 = vpop.f32.mrf.mxu1  ;;  %v4505_v47 = vadd.f32 %v2047_v35, %v1855_v38  ;;  %v1857_v48 = vadd.f32 %v1856_v40, %v4466_v20  ;;  %v364_v40 = vld [vmem:[#allocation2 + $0x3d0] sm:$0xff] }
 0x17f   : > { %v1858_v49 = vpop.f32.mrf.mxu0 }
 0x180   : > { %v2051_v50 = vpop.f32.mrf.mxu1  ;;  %v4508_v53 = vadd.f32 %v2049_v41, %v1857_v48  ;;  %v1859_v55 = vadd.f32 %v1858_v49, %v4463_v17  ;;  %v369_v48 = vld [vmem:[#allocation2 + $0x3f8] sm:$0xff] }
 0x181   : > { %v1860_v58 = vpop.f32.mrf.mxu0 }
 0x182   : > { %v2053_v59 = vpop.f32.mrf.mxu1  ;;  %v4511_v61 = vadd.f32 %v2051_v50, %v1859_v55  ;;  %v1861_v62 = vadd.f32 %v1860_v58, %v4466_v20  ;;  %v3401_v55 = vcombine.low %v356_v4, %v360_v10 }
 0x183   : > { %v1864_v63 = vpop.f32.mrf.mxu0  ;;  %2329 = vmatmul.mubr.bf16.gmra.mxu0 %v3385_v51 }
 0x184   : > { %v2057_v0 = vpop.f32.mrf.mxu1  ;;  %2522 = vmatmul.mubr.bf16.gmra.mxu1 %v3387_v52  ;;  %v4514_v1 = vadd.f32 %v2053_v59, %v1861_v62  ;;  %v1865_v3 = vadd.f32 %v1864_v63, %v4463_v17  ;;  %2338 = vmatprep.mubr.bf16.mxu0 %v3394_v56  ;;  %v3403_v56 = vcombine.low %v357_v11, %v361_v12 }
 0x185   : > { %2531 = vmatprep.mubr.bf16.mxu1 %v3396_v57  ;;  %v1866_v5 = vpop.f32.mrf.mxu0  ;;  %v3410_v59 = vcombine.high %v364_v40, %v368_v44  ;;  %v3412_v62 = vcombine.high %v365_v45, %v369_v48 }
 0x186   : > { %v2059_v8 = vpop.f32.mrf.mxu1  ;;  %v4517_v13 = vadd.f32 %v2057_v0, %v1865_v3  ;;  %v1867_v15 = vadd.f32 %v1866_v5, %v4466_v20 }
 0x187   : > { %v1868_v16 = vpop.f32.mrf.mxu0 }
 0x188   : > { %v2061_v19 = vpop.f32.mrf.mxu1  ;;  %v4520_v23 = vadd.f32 %v2059_v8, %v1867_v15  ;;  %v1869_v24 = vadd.f32 %v1868_v16, %v4463_v17 }
 0x189   : > { %v1870_v28 = vpop.f32.mrf.mxu0 }
 0x18a   : > { %v2063_v29 = vpop.f32.mrf.mxu1  ;;  %v4523_v31 = vadd.f32 %v2061_v19, %v1869_v24  ;;  %v1871_v33 = vadd.f32 %v1870_v28, %v4466_v20  ;;  %v3409_v24 = vcombine.low %v364_v40, %v368_v44 }
 0x18b   : > { %v1874_v34 = vpop.f32.mrf.mxu0  ;;  %2339 = vmatmul.mubr.bf16.gmra.mxu0 %v3393_v21 }
 0x18c   : > { %v2067_v35 = vpop.f32.mrf.mxu1  ;;  %2532 = vmatmul.mubr.bf16.gmra.mxu1 %v3395_v22  ;;  %v4526_v38 = vadd.f32 %v2063_v29, %v1871_v33  ;;  %v1875_v39 = vadd.f32 %v1874_v34, %v4463_v17  ;;  %2348 = vmatprep.mubr.bf16.mxu0 %v3402_v26  ;;  %v3411_v26 = vcombine.low %v365_v45, %v369_v48 }
 0x18d   : > { %2541 = vmatprep.mubr.bf16.mxu1 %v3404_v27  ;;  %v1876_v41 = vpop.f32.mrf.mxu0 }
 0x18e   : > { %v2069_v43 = vpop.f32.mrf.mxu1  ;;  %v4529_v49 = vadd.f32 %v2067_v35, %v1875_v39  ;;  %v1877_v50 = vadd.f32 %v1876_v41, %v4466_v20 }
 0x18f   : > { %v1878_v51 = vpop.f32.mrf.mxu0 }
 0x190   : > { %v2071_v52 = vpop.f32.mrf.mxu1  ;;  %v4532_v57 = vadd.f32 %v2069_v43, %v1877_v50  ;;  %v1879_v58 = vadd.f32 %v1878_v51, %v4463_v17 }
 0x191   : > { %v1880_v63 = vpop.f32.mrf.mxu0 }
 0x192   : > { %v2073_v0 = vpop.f32.mrf.mxu1  ;;  %v4535_v3 = vadd.f32 %v2071_v52, %v1879_v58  ;;  %v1881_v5 = vadd.f32 %v1880_v63, %v4466_v20 }
 0x193   : > { %v1884_v8 = vpop.f32.mrf.mxu0  ;;  %2349 = vmatmul.mubr.bf16.gmra.mxu0 %v3401_v55 }
 0x194   : > { %v2077_v15 = vpop.f32.mrf.mxu1  ;;  %2542 = vmatmul.mubr.bf16.gmra.mxu1 %v3403_v56  ;;  %v4538_v16 = vadd.f32 %v2073_v0, %v1881_v5  ;;  %v1885_v4 = vadd.f32 %v1884_v8, %v4463_v17  ;;  %2358 = vmatprep.mubr.bf16.mxu0 %v3410_v59 }
 0x195   : > { %2551 = vmatprep.mubr.bf16.mxu1 %v3412_v62  ;;  %v1886_v10 = vpop.f32.mrf.mxu0 }
 0x196   : > { %v2079_v11 = vpop.f32.mrf.mxu1  ;;  %v4541_v12 = vadd.f32 %v2077_v15, %v1885_v4  ;;  %v1887_v19 = vadd.f32 %v1886_v10, %v4466_v20 }
 0x197   : > { %v1888_v21 = vpop.f32.mrf.mxu0 }
 0x198   : > { %v2081_v22 = vpop.f32.mrf.mxu1  ;;  %v4544_v27 = vadd.f32 %v2079_v11, %v1887_v19  ;;  %v1889_v28 = vadd.f32 %v1888_v21, %v4463_v17 }
 0x199   : > { %v1890_v29 = vpop.f32.mrf.mxu0 }
 0x19a   : > { %v2083_v33 = vpop.f32.mrf.mxu1  ;;  %v4547_v34 = vadd.f32 %v2081_v22, %v1889_v28  ;;  %v1891_v35 = vadd.f32 %v1890_v29, %v4466_v20 }
 0x19b   : > { %v1894_v39 = vpop.f32.mrf.mxu0  ;;  %2359 = vmatmul.mubr.bf16.gmra.mxu0 %v3409_v24 }
 0x19c   : > { %v2087_v41 = vpop.f32.mrf.mxu1  ;;  %2552 = vmatmul.mubr.bf16.gmra.mxu1 %v3411_v26  ;;  %v4550_v43 = vadd.f32 %v2083_v33, %v1891_v35  ;;  %v1895_v50 = vadd.f32 %v1894_v39, %v4463_v17 }
 0x19d   : > { %v1896_v40 = vpop.f32.mrf.mxu0 }
 0x19e   : > { %v2089_v44 = vpop.f32.mrf.mxu1  ;;  %v4553_v45 = vadd.f32 %v2087_v41, %v1895_v50  ;;  %v1897_v48 = vadd.f32 %v1896_v40, %v4466_v20 }
 0x19f   : > { %v1898_v51 = vpop.f32.mrf.mxu0 }
 0x1a0   : > { %v2091_v52 = vpop.f32.mrf.mxu1  ;;  %v4556_v55 = vadd.f32 %v2089_v44, %v1897_v48  ;;  %v1899_v56 = vadd.f32 %v1898_v51, %v4463_v17 }
 0x1a1   : > { %v1900_v58 = vpop.f32.mrf.mxu0 }
 0x1a2   : > { %v2093_v59 = vpop.f32.mrf.mxu1  ;;  %v4559_v62 = vadd.f32 %v2091_v52, %v1899_v56  ;;  %v1901_v63 = vadd.f32 %v1900_v58, %v4466_v20 }
 0x1a3   : > { %v1904_v0 = vpop.f32.mrf.mxu0 }
 0x1a4   : > { %5742 = vst [vmem:[#allocation15_spill] sm:$0xff] %v4559_v62  ;;  %v2097_v5 = vpop.f32.mrf.mxu1  ;;  %v4562_v8 = vadd.f32 %v2093_v59, %v1901_v63  ;;  %v1905_v15 = vadd.f32 %v1904_v0, %v4463_v17 }
 0x1a5   : > { %v1906_v4 = vpop.f32.mrf.mxu0 }
 0x1a6   : > { %5743 = vst [vmem:[#allocation16_spill] sm:$0xff] %v4562_v8  ;;  %v2099_v10 = vpop.f32.mrf.mxu1  ;;  %v4565_v11 = vadd.f32 %v2097_v5, %v1905_v15  ;;  %v1907_v19 = vadd.f32 %v1906_v4, %v4466_v20 }
 0x1a7   : > { %v1908_v21 = vpop.f32.mrf.mxu0 }
 0x1a8   : > { %5744 = vst [vmem:[#allocation17_spill] sm:$0xff] %v4565_v11  ;;  %v2101_v22 = vpop.f32.mrf.mxu1  ;;  %v4568_v24 = vadd.f32 %v2099_v10, %v1907_v19  ;;  %v1909_v26 = vadd.f32 %v1908_v21, %v4463_v17 }
 0x1a9   : > { %v1910_v28 = vpop.f32.mrf.mxu0 }
 0x1aa   : > { %5745 = vst [vmem:[#allocation18_spill] sm:$0xff] %v4568_v24  ;;  %v2103_v29 = vpop.f32.mrf.mxu1  ;;  %v4571_v33 = vadd.f32 %v2101_v22, %v1909_v26  ;;  %v1911_v35 = vadd.f32 %v1910_v28, %v4466_v20 }
 0x1ab   : > { %v1914_v39 = vpop.f32.mrf.mxu0 }
 0x1ac   : > { %5746 = vst [vmem:[#allocation19_spill] sm:$0xff] %v4571_v33  ;;  %v2107_v41 = vpop.f32.mrf.mxu1  ;;  %v4574_v50 = vadd.f32 %v2103_v29, %v1911_v35  ;;  %v1915_v40 = vadd.f32 %v1914_v39, %v4463_v17 }
 0x1ad   : > { %v1916_v44 = vpop.f32.mrf.mxu0 }
 0x1ae   : > { %5747 = vst [vmem:[#allocation20_spill] sm:$0xff] %v4574_v50  ;;  %v2109_v48 = vpop.f32.mrf.mxu1  ;;  %v4577_v51 = vadd.f32 %v2107_v41, %v1915_v40  ;;  %v1917_v52 = vadd.f32 %v1916_v44, %v4466_v20 }
 0x1af   : > { %v1918_v56 = vpop.f32.mrf.mxu0 }
 0x1b0   : > { %5748 = vst [vmem:[#allocation21_spill] sm:$0xff] %v4577_v51  ;;  %v2111_v58 = vpop.f32.mrf.mxu1  ;;  %v4580_v59 = vadd.f32 %v2109_v48, %v1917_v52  ;;  %v1919_v63 = vadd.f32 %v1918_v56, %v4463_v17 }
 0x1b1   : > { %v1920_v0 = vpop.f32.mrf.mxu0 }
 0x1b2   : > { %5749 = vst [vmem:[#allocation22_spill] sm:$0xff] %v4580_v59  ;;  %v2113_v5 = vpop.f32.mrf.mxu1  ;;  %v4583_v15 = vadd.f32 %v2111_v58, %v1919_v63  ;;  %v1921_v4 = vadd.f32 %v1920_v0, %v4466_v20 }
 0x1b3   : > { %v1924_v10 = vpop.f32.mrf.mxu0 }
 0x1b4   : > { %5750 = vst [vmem:[#allocation23_spill] sm:$0xff] %v4583_v15  ;;  %v2117_v19 = vpop.f32.mrf.mxu1  ;;  %v4586_v21 = vadd.f32 %v2113_v5, %v1921_v4  ;;  %v1925_v22 = vadd.f32 %v1924_v10, %v4463_v17 }
 0x1b5   : > { %v1926_v26 = vpop.f32.mrf.mxu0 }
 0x1b6   : > { %5751 = vst [vmem:[#allocation24_spill] sm:$0xff] %v4586_v21  ;;  %v2119_v28 = vpop.f32.mrf.mxu1  ;;  %v4589_v29 = vadd.f32 %v2117_v19, %v1925_v22  ;;  %v1927_v35 = vadd.f32 %v1926_v26, %v4466_v20 }
 0x1b7   : > { %v1928_v39 = vpop.f32.mrf.mxu0 }
 0x1b8   : > { %5752 = vst [vmem:[#allocation25_spill] sm:$0xff] %v4589_v29  ;;  %v2121_v41 = vpop.f32.mrf.mxu1  ;;  %v4592_v40 = vadd.f32 %v2119_v28, %v1927_v35  ;;  %v1929_v44 = vadd.f32 %v1928_v39, %v4463_v17 }
 0x1b9   : > { %v1930_v48 = vpop.f32.mrf.mxu0 }
 0x1ba   : > { %5753 = vst [vmem:[#allocation26_spill] sm:$0xff] %v4592_v40  ;;  %v2123_v52 = vpop.f32.mrf.mxu1  ;;  %v4595_v56 = vadd.f32 %v2121_v41, %v1929_v44  ;;  %v1931_v58 = vadd.f32 %v1930_v48, %v4466_v20 }
 0x1bb   : > { %v1934_v63 = vpop.f32.mrf.mxu0 }
 0x1bc   : > { %5754 = vst [vmem:[#allocation27_spill] sm:$0xff] %v4595_v56  ;;  %v2127_v0 = vpop.f32.mrf.mxu1  ;;  %v4598_v5 = vadd.f32 %v2123_v52, %v1931_v58  ;;  %v1935_v4 = vadd.f32 %v1934_v63, %v4463_v17 }
 0x1bd   : > { %v1936_v10 = vpop.f32.mrf.mxu0 }
 0x1be   : > { %5755 = vst [vmem:[#allocation28_spill] sm:$0xff] %v4598_v5  ;;  %v2129_v19 = vpop.f32.mrf.mxu1  ;;  %v4601_v22 = vadd.f32 %v2127_v0, %v1935_v4  ;;  %v1937_v26 = vadd.f32 %v1936_v10, %v4466_v20 }
 0x1bf   : > { %v1938_v28 = vpop.f32.mrf.mxu0 }
 0x1c0   : > { %5756 = vst [vmem:[#allocation29_spill] sm:$0xff] %v4601_v22  ;;  %v2131_v35 = vpop.f32.mrf.mxu1  ;;  %v4604_v39 = vadd.f32 %v2129_v19, %v1937_v26  ;;  %v1939_v41 = vadd.f32 %v1938_v28, %v4463_v17 }
 0x1c1   : > { %v1940_v44 = vpop.f32.mrf.mxu0 }
 0x1c2   : > { %5757 = vst [vmem:[#allocation30_spill] sm:$0xff] %v4604_v39  ;;  %v2133_v48 = vpop.f32.mrf.mxu1  ;;  %v4607_v14 = vadd.f32 %v2131_v35, %v1939_v41  ;;  %v1941_v52 = vadd.f32 %v1940_v44, %v4466_v20 }
 0x1c3   : > { %v1944_v58 = vpop.f32.mrf.mxu0 }
 0x1c4   : > { %5758 = vst [vmem:[#allocation31_spill] sm:$0xff] %v4607_v14  ;;  %v2137_v63 = vpop.f32.mrf.mxu1  ;;  %v4610_v9 = vadd.f32 %v2133_v48, %v1941_v52  ;;  %v1945_v0 = vadd.f32 %v1944_v58, %v4463_v17 }
 0x1c5   : > { %v1946_v4 = vpop.f32.mrf.mxu0 }
 0x1c6   : > { %5759 = vst [vmem:[#allocation32_spill] sm:$0xff] %v4610_v9  ;;  %v2139_v10 = vpop.f32.mrf.mxu1  ;;  %v4613_v7 = vadd.f32 %v2137_v63, %v1945_v0  ;;  %v1947_v19 = vadd.f32 %v1946_v4, %v4466_v20 }
 0x1c7   : > { %v1948_v26 = vpop.f32.mrf.mxu0 }
 0x1c8   : > { %5760 = vst [vmem:[#allocation33_spill] sm:$0xff] %v4613_v7  ;;  %v2141_v28 = vpop.f32.mrf.mxu1  ;;  %v4616_v39 = vadd.f32 %v2139_v10, %v1947_v19  ;;  %v1949_v35 = vadd.f32 %v1948_v26, %v4463_v17 }
 0x1c9   : > { %v1950_v41 = vpop.f32.mrf.mxu0 }
 0x1ca   : > { %5761 = vst [vmem:[#allocation34_spill] sm:$0xff] %v4616_v39  ;;  %v2143_v44 = vpop.f32.mrf.mxu1  ;;  %v4619_v14 = vadd.f32 %v2141_v28, %v1949_v35  ;;  %v1951_v48 = vadd.f32 %v1950_v41, %v4466_v20 }
 0x1cb   : > { %v1954_v52 = vpop.f32.mrf.mxu0 }
 0x1cc   : > { %5762 = vst [vmem:[#allocation35_spill] sm:$0xff] %v4619_v14  ;;  %v2147_v58 = vpop.f32.mrf.mxu1  ;;  %v4622_v9 = vadd.f32 %v2143_v44, %v1951_v48  ;;  %v1955_v63 = vadd.f32 %v1954_v52, %v4463_v17 }
 0x1cd   : > { %v1956_v0 = vpop.f32.mrf.mxu0 }
 0x1ce   : > { %5763 = vst [vmem:[#allocation36_spill] sm:$0xff] %v4622_v9  ;;  %v2149_v4 = vpop.f32.mrf.mxu1  ;;  %v4625_v7 = vadd.f32 %v2147_v58, %v1955_v63  ;;  %v1957_v10 = vadd.f32 %v1956_v0, %v4466_v20 }
 0x1cf   : > { %v1958_v19 = vpop.f32.mrf.mxu0 }
 0x1d0   : > { %5764 = vst [vmem:[#allocation37_spill] sm:$0xff] %v4625_v7  ;;  %v2151_v26 = vpop.f32.mrf.mxu1  ;;  %v4628_v39 = vadd.f32 %v2149_v4, %v1957_v10  ;;  %v1959_v28 = vadd.f32 %v1958_v19, %v4463_v17 }
 0x1d1   : > { %v1960_v35 = vpop.f32.mrf.mxu0 }
 0x1d2   : > { %5765 = vst [vmem:[#allocation38_spill] sm:$0xff] %v4628_v39  ;;  %v2153_v41 = vpop.f32.mrf.mxu1  ;;  %v4631_v14 = vadd.f32 %v2151_v26, %v1959_v28  ;;  %v1961_v44 = vadd.f32 %v1960_v35, %v4466_v20 }
 0x1d3   : > { %v1964_v48 = vpop.f32.mrf.mxu0 }
 0x1d4   : > { %5766 = vst [vmem:[#allocation39_spill] sm:$0xff] %v4631_v14  ;;  %v2157_v52 = vpop.f32.mrf.mxu1  ;;  %v4634_v9 = vadd.f32 %v2153_v41, %v1961_v44  ;;  %v1965_v58 = vadd.f32 %v1964_v48, %v4463_v17 }
 0x1d5   : > { %v1966_v63 = vpop.f32.mrf.mxu0 }
 0x1d6   : > { %5767 = vst [vmem:[#allocation40_spill] sm:$0xff] %v4634_v9  ;;  %v2159_v0 = vpop.f32.mrf.mxu1  ;;  %v4637_v7 = vadd.f32 %v2157_v52, %v1965_v58  ;;  %v1967_v4 = vadd.f32 %v1966_v63, %v4466_v20 }
 0x1d7   : > { %v1968_v10 = vpop.f32.mrf.mxu0 }
 0x1d8   : > { %5768 = vst [vmem:[#allocation41_spill] sm:$0xff] %v4637_v7  ;;  %v2161_v19 = vpop.f32.mrf.mxu1  ;;  %v4640_v39 = vadd.f32 %v2159_v0, %v1967_v4  ;;  %v1969_v26 = vadd.f32 %v1968_v10, %v4463_v17 }
 0x1d9   : > { %v1970_v28 = vpop.f32.mrf.mxu0 }
 0x1da   : > { %5769 = vst [vmem:[#allocation42_spill] sm:$0xff] %v4640_v39  ;;  %v2163_v35 = vpop.f32.mrf.mxu1  ;;  %v4643_v14 = vadd.f32 %v2161_v19, %v1969_v26  ;;  %v1971_v41 = vadd.f32 %v1970_v28, %v4466_v20 }
 0x1db   : > { %v1974_v44 = vpop.f32.mrf.mxu0 }
 0x1dc   : > { %5770 = vst [vmem:[#allocation43_spill] sm:$0xff] %v4643_v14  ;;  %v2167_v48 = vpop.f32.mrf.mxu1  ;;  %v4646_v9 = vadd.f32 %v2163_v35, %v1971_v41  ;;  %v1975_v52 = vadd.f32 %v1974_v44, %v4463_v17 }
 0x1dd   : > { %v1976_v58 = vpop.f32.mrf.mxu0 }
 0x1de   : > { %5771 = vst [vmem:[#allocation44_spill] sm:$0xff] %v4646_v9  ;;  %v2169_v63 = vpop.f32.mrf.mxu1  ;;  %v4649_v7 = vadd.f32 %v2167_v48, %v1975_v52  ;;  %v1977_v0 = vadd.f32 %v1976_v58, %v4466_v20 }
 0x1df   : > { %v1978_v4 = vpop.f32.mrf.mxu0 }
 0x1e0   : > { %5772 = vst [vmem:[#allocation45_spill] sm:$0xff] %v4649_v7  ;;  %v2171_v10 = vpop.f32.mrf.mxu1  ;;  %v4652_v39 = vadd.f32 %v2169_v63, %v1977_v0  ;;  %v1979_v19 = vadd.f32 %v1978_v4, %v4463_v17 }
 0x1e1   : > { %v1980_v26 = vpop.f32.mrf.mxu0 }
 0x1e2   : > { %5773 = vst [vmem:[#allocation46_spill] sm:$0xff] %v4652_v39  ;;  %v2173_v28 = vpop.f32.mrf.mxu1  ;;  %v4655_v14 = vadd.f32 %v2171_v10, %v1979_v19  ;;  %v1981_v35 = vadd.f32 %v1980_v26, %v4466_v20 }
 0x1e3   : > { %v2210_v41 = vpop.f32.mrf.mxu0 }
 0x1e4   : > { %5774 = vst [vmem:[#allocation47_spill] sm:$0xff] %v4655_v14  ;;  %v2403_v44 = vpop.f32.mrf.mxu1  ;;  %v4658_v9 = vadd.f32 %v2173_v28, %v1981_v35  ;;  %v2211_v48 = vadd.f32 %v2210_v41, %v4469_v30 }
 0x1e5   : > { %v2212_v52 = vpop.f32.mrf.mxu0 }
 0x1e6   : > { %5775 = vst [vmem:[#allocation48_spill] sm:$0xff] %v4658_v9  ;;  %v2405_v58 = vpop.f32.mrf.mxu1  ;;  %v2404_v7 = vadd.f32 %v2403_v44, %v2211_v48  ;;  %v2213_v63 = vadd.f32 %v2212_v52, %v4472_v36 }
 0x1e7   : > { %v2214_v0 = vpop.f32.mrf.mxu0 }
 0x1e8   : > { %v2407_v39 = vpop.f32.mrf.mxu1  ;;  %v2406_v17 = vadd.f32 %v2405_v58, %v2213_v63  ;;  %v2215_v36 = vadd.f32 %v2214_v0, %v4475_v42  ;;  %3814 = vtanh.f32 %v2404_v7 }
 0x1e9   : > { %v2216_v4 = vpop.f32.mrf.mxu0 }
 0x1ea   : > { %v2409_v22 = vpop.f32.mrf.mxu1  ;;  %v2217_v63 = vadd.f32 %v2216_v4, %v4478_v46  ;;  %v2408_v15 = vadd.f32 %v2407_v39, %v2215_v36 }
 0x1eb   : > { %v2220_v10 = vpop.f32.mrf.mxu0 }
 0x1ec   : > { %v2413_v19 = vpop.f32.mrf.mxu1  ;;  %v2221_v40 = vadd.f32 %v2220_v10, %v4481_v54  ;;  %v2410_v33 = vadd.f32 %v2409_v22, %v2217_v63  ;;  %3816 = vtanh.f32 %v2408_v15 }
 0x1ed   : > { %v2222_v14 = vpop.f32.mrf.mxu0 }
 0x1ee   : > { %v2415_v20 = vpop.f32.mrf.mxu1  ;;  %v2223_v59 = vadd.f32 %v2222_v14, %v4484_v60  ;;  %v2414_v11 = vadd.f32 %v2413_v19, %v2221_v40  ;;  %3818 = vtanh.f32 %v2410_v33 }
 0x1ef   : > { %v2224_v26 = vpop.f32.mrf.mxu0 }
 0x1f0   : > { %v2417_v5 = vpop.f32.mrf.mxu1  ;;  %v2225_v24 = vadd.f32 %v2224_v26, %v4487_v2  ;;  %v2416_v46 = vadd.f32 %v2415_v20, %v2223_v59  ;;  %3820 = vtanh.f32 %v2414_v11 }
 0x1f1   : > { %v2226_v28 = vpop.f32.mrf.mxu0  ;;  %3822 = vtanh.f32 %v2406_v17 }
 0x1f2   : > { %v2419_v35 = vpop.f32.mrf.mxu1  ;;  %v2227_v42 = vadd.f32 %v2226_v28, %v4490_v6  ;;  %v2418_v4 = vadd.f32 %v2417_v5, %v2225_v24  ;;  %3824 = vtanh.f32 %v2416_v46 }
 0x1f3   : > { %v2230_v9 = vpop.f32.mrf.mxu0 }
 0x1f4   : > { %v2423_v30 = vpop.f32.mrf.mxu1  ;;  %v2231_v39 = vadd.f32 %v2230_v9, %v4493_v18  ;;  %v2420_v2 = vadd.f32 %v2419_v35, %v2227_v42  ;;  %3826 = vtanh.f32 %v2418_v4 }
 0x1f5   : > { %v2232_v41 = vpop.f32.mrf.mxu0 }
 0x1f6   : > { %v2425_v56 = vpop.f32.mrf.mxu1  ;;  %v2233_v14 = vadd.f32 %v2232_v41, %v4496_v25  ;;  %v2424_v59 = vadd.f32 %v2423_v30, %v2231_v39  ;;  %3828 = vtanh.f32 %v2420_v2 }
 0x1f7   : > { %v2234_v44 = vpop.f32.mrf.mxu0 }
 0x1f8   : > { %v2427_v48 = vpop.f32.mrf.mxu1  ;;  %v2235_v7 = vadd.f32 %v2234_v44, %v4499_v32  ;;  %v2426_v15 = vadd.f32 %v2425_v56, %v2233_v14  ;;  %3830 = vtanh.f32 %v2424_v59 }
 0x1f9   : > { %v2236_v52 = vpop.f32.mrf.mxu0 }
 0x1fa   : > { %v2429_v58 = vpop.f32.mrf.mxu1  ;;  %v2237_v33 = vadd.f32 %v2236_v52, %v4502_v37  ;;  %v2428_v18 = vadd.f32 %v2427_v48, %v2235_v7  ;;  %3832 = vtanh.f32 %v2426_v15  ;;  %v4680_v37 = vpop.eup %3814 }
 0x1fb   : > { %v2240_v29 = vpop.f32.mrf.mxu0 }
 0x1fc   : > { %v2433_v21 = vpop.f32.mrf.mxu1  ;;  %v2241_v9 = vadd.f32 %v2240_v29, %v4505_v47  ;;  %v2430_v32 = vadd.f32 %v2429_v58, %v2237_v33  ;;  %3834 = vtanh.f32 %v2428_v18  ;;  %v4685_v29 = vpop.eup %3816 }
 0x1fd   : > { %v2242_v51 = vpop.f32.mrf.mxu0  ;;  %v4688_v35 = vpop.eup %3818  ;;  %v2702_v44 = vmul.f32 %v4685_v29, %v4685_v29  ;;  %v2626_v4 = vadd.f32 %v4685_v29, %v4680_v37 }
 0x1fe   : > { %v2435_v50 = vpop.f32.mrf.mxu1  ;;  %v2243_v17 = vadd.f32 %v2242_v51, %v4508_v53  ;;  %v2434_v56 = vadd.f32 %v2433_v21, %v2241_v9  ;;  %5776 = vst [vmem:[#allocation49_spill] sm:$0xff] %v4688_v35  ;;  %3836 = vtanh.f32 %v2430_v32  ;;  %v4693_v41 = vpop.eup %3820 }
 0x1ff   : > { %v2244_v8 = vpop.f32.mrf.mxu0  ;;  %v2704_v63 = vmul.f32 %v4693_v41, %v4693_v41  ;;  %v2627_v33 = vadd.f32 %v4693_v41, %v2626_v4 }
 0x200   : > { %v2437_v62 = vpop.f32.mrf.mxu1  ;;  %v2245_v20 = vadd.f32 %v2244_v8, %v4511_v61  ;;  %v2436_v53 = vadd.f32 %v2435_v50, %v2243_v17  ;;  %3838 = vtanh.f32 %v2434_v56  ;;  %v4696_v8 = vpop.eup %3822 }
 0x201   : > { %v2246_v0 = vpop.f32.mrf.mxu0  ;;  %5777 = vst [vmem:[#allocation50_spill] sm:$0xff] %v4696_v8  ;;  %v4702_v50 = vpop.eup %3824  ;;  %v2663_v59 = vadd.f32 %v4696_v8, %v4688_v35 }
 0x202   : > { %v2439_v54 = vpop.f32.mrf.mxu1  ;;  %v2247_v28 = vadd.f32 %v2246_v0, %v4514_v1  ;;  %v2438_v1 = vadd.f32 %v2437_v62, %v2245_v20  ;;  %5778 = vst [vmem:[#allocation51_spill] sm:$0xff] %v4702_v50  ;;  %v4706_v58 = vpop.eup %3826  ;;  %3840 = vtanh.f32 %v2436_v53  ;;  %v2701_v0 = vmul.f32 %v4696_v8, %v4696_v8 }
 0x203   : > { %v2250_v60 = vpop.f32.mrf.mxu0  ;;  %v4719_v14 = vpop.eup %3828  ;;  %v2705_v2 = vmul.f32 %v4702_v50, %v4702_v50  ;;  %v2664_v20 = vadd.f32 %v4702_v50, %v2663_v59 }
 0x204   : > { %v2443_v22 = vpop.f32.mrf.mxu1  ;;  %v2251_v51 = vadd.f32 %v2250_v60, %v4517_v13  ;;  %v2703_v13 = vmul.f32 %v4688_v35, %v4688_v35  ;;  %v2440_v52 = vadd.f32 %v2439_v54, %v2247_v28  ;;  %5779 = vst [vmem:[#allocation52_spill] sm:$0xff] %v4719_v14  ;;  %3842 = vtanh.f32 %v2438_v1 }
 0x205   : > { %v2252_v40 = vpop.f32.mrf.mxu0  ;;  %v2707_v32 = vmul.f32 %v4719_v14, %v4719_v14 }
 0x206   : > { %v2445_v6 = vpop.f32.mrf.mxu1  ;;  %v2253_v61 = vadd.f32 %v2252_v40, %v4520_v23  ;;  %v2700_v23 = vmul.f32 %v4680_v37, %v4680_v37  ;;  %v2444_v42 = vadd.f32 %v2443_v22, %v2251_v51  ;;  %v2801_v15 = vadd.f32 %v2703_v13, %v2701_v0 }
 0x207   : > { %v2254_v24 = vpop.f32.mrf.mxu0  ;;  %3844 = vtanh.f32 %v2440_v52 }
 0x208   : > { %v4672_v5 = vpop.f32.mrf.mxu1  ;;  %v2446_v54 = vadd.f32 %v2445_v6, %v2253_v61  ;;  %v2255_v39 = vadd.f32 %v2254_v24, %v4523_v31  ;;  %v2764_v60 = vadd.f32 %v2702_v44, %v2700_v23  ;;  %v2706_v6 = vmul.f32 %v4706_v58, %v4706_v58  ;;  %v4730_v31 = vpop.eup %3830 }
 0x209   : > { %v2256_v25 = vpop.f32.mrf.mxu0  ;;  %3846 = vtanh.f32 %v2444_v42  ;;  %v2802_v28 = vadd.f32 %v2801_v15, %v2705_v2  ;;  %v2628_v44 = vadd.f32 %v4706_v58, %v2627_v33  ;;  %v2708_v13 = vmul.f32 %v4730_v31, %v4730_v31 }
 0x20a   : > { %v4675_v11 = vpop.f32.mrf.mxu1  ;;  %v2257_v22 = vadd.f32 %v2256_v25, %v4526_v38  ;;  %v2765_v24 = vadd.f32 %v2764_v60, %v2704_v63  ;;  %v4734_v25 = vpop.eup %3832  ;;  %3848 = vtanh.f32 %v2446_v54  ;;  %v2448_v17 = vadd.f32 %v4672_v5, %v2255_v39 }
 0x20b   : > { %v2260_v10 = vpop.f32.mrf.mxu0  ;;  %5780 = vst [vmem:[#allocation53_spill] sm:$0xff] %v4734_v25  ;;  %v4743_v61 = vpop.eup %3834  ;;  %v2803_v63 = vadd.f32 %v2802_v28, %v2707_v32  ;;  %v2629_v42 = vadd.f32 %v4730_v31, %v2628_v44 }
 0x20c   : > { %v4678_v19 = vpop.f32.mrf.mxu1  ;;  %v2261_v9 = vadd.f32 %v2260_v10, %v4529_v49  ;;  %v2450_v53 = vadd.f32 %v4675_v11, %v2257_v22  ;;  %v2766_v1 = vadd.f32 %v2765_v24, %v2706_v6  ;;  %v4754_v23 = vpop.eup %3836  ;;  %3850 = vtanh.f32 %v2448_v17 }
 0x20d   : > { %v2262_v26 = vpop.f32.mrf.mxu0  ;;  %5781 = vst [vmem:[#allocation54_spill] sm:$0xff] %v4754_v23  ;;  %v2711_v22 = vmul.f32 %v4754_v23, %v4754_v23 }
 0x20e   : > { %v4683_v47 = vpop.f32.mrf.mxu1  ;;  %v2263_v56 = vadd.f32 %v2262_v26, %v4532_v57  ;;  %v2665_v57 = vadd.f32 %v4719_v14, %v2664_v20  ;;  %v2709_v26 = vmul.f32 %v4734_v25, %v4734_v25  ;;  %v2454_v11 = vadd.f32 %v4678_v19, %v2261_v9 }
 0x20f   : > { %v2264_v30 = vpop.f32.mrf.mxu0  ;;  %3852 = vtanh.f32 %v2450_v53  ;;  %v2767_v54 = vadd.f32 %v2766_v1, %v2708_v13 }
 0x210   : > { %v4691_v21 = vpop.f32.mrf.mxu1  ;;  %v2265_v51 = vadd.f32 %v2264_v30, %v4535_v3  ;;  %v2456_v0 = vadd.f32 %v4683_v47, %v2263_v56  ;;  %v2666_v39 = vadd.f32 %v4734_v25, %v2665_v57  ;;  %v2804_v47 = vadd.f32 %v2803_v63, %v2709_v26  ;;  %v5786_v26 = vld [vmem:[#allocation16_spill] sm:$0xff] }
 0x211   : > { %v2266_v48 = vpop.f32.mrf.mxu0  ;;  %3854 = vtanh.f32 %v2454_v11 }
 0x212   : > { %v4700_v36 = vpop.f32.mrf.mxu1  ;;  %v2267_v5 = vadd.f32 %v2266_v48, %v4538_v16  ;;  %v4758_v16 = vpop.eup %3838  ;;  %v2710_v48 = vmul.f32 %v4743_v61, %v4743_v61  ;;  %v2458_v19 = vadd.f32 %v4691_v21, %v2265_v51  ;;  %3856 = vtanh.f32 %v2456_v0  ;;  %v5787_v0 = vld [vmem:[#allocation17_spill] sm:$0xff] }
 0x213   : > { %v2270_v62 = vpop.f32.mrf.mxu0  ;;  %v4770_v6 = vpop.eup %3840  ;;  %v2667_v32 = vadd.f32 %v4754_v23, %v2666_v39  ;;  %v2805_v28 = vadd.f32 %v2804_v47, %v2711_v22  ;;  %v5789_v47 = vld [vmem:[#allocation19_spill] sm:$0xff] }
 0x214   : > { %v4712_v46 = vpop.f32.mrf.mxu1  ;;  %v2271_v3 = vadd.f32 %v2270_v62, %v4541_v12  ;;  %v2460_v60 = vadd.f32 %v4700_v36, %v2267_v5  ;;  %5782 = vst [vmem:[#allocation55_spill] sm:$0xff] %v4770_v6  ;;  %3858 = vtanh.f32 %v2458_v19 }
 0x215   : > { %v2272_v7 = vpop.f32.mrf.mxu0 }
 0x216   : > { %v4724_v40 = vpop.f32.mrf.mxu1  ;;  %v2273_v12 = vadd.f32 %v2272_v7, %v4544_v27  ;;  %v2464_v59 = vadd.f32 %v4712_v46, %v2271_v3  ;;  %v2630_v27 = vadd.f32 %v4743_v61, %v2629_v42  ;;  %v2712_v7 = vmul.f32 %v4758_v16, %v4758_v16 }
 0x217   : > { %v2274_v38 = vpop.f32.mrf.mxu0  ;;  %3860 = vtanh.f32 %v2460_v60 }
 0x218   : > { %v2467_v18 = vpop.f32.mrf.mxu1  ;;  %v2275_v2 = vadd.f32 %v2274_v38, %v4547_v34  ;;  %v2768_v34 = vadd.f32 %v2767_v54, %v2710_v48  ;;  %v2466_v33 = vadd.f32 %v4724_v40, %v2273_v12  ;;  %v4778_v38 = vpop.eup %3842  ;;  %3862 = vtanh.f32 %v2464_v59  ;;  %v5784_v40 = vld [vmem:[#allocation15_spill] sm:$0xff] }
 0x219   : > { %v2276_v49 = vpop.f32.mrf.mxu0  ;;  %v4782_v20 = vpop.eup %3844  ;;  %v2631_v44 = vadd.f32 %v4758_v16, %v2630_v27  ;;  %v2714_v5 = vmul.f32 %v4778_v38, %v4778_v38 }
 0x21a   : > { %v2469_v10 = vpop.f32.mrf.mxu1  ;;  %v2277_v36 = vadd.f32 %v2276_v49, %v4550_v43  ;;  %v2468_v17 = vadd.f32 %v2467_v18, %v2275_v2  ;;  %5783 = vst [vmem:[#allocation56_spill] sm:$0xff] %v4782_v20  ;;  %v2713_v43 = vmul.f32 %v4770_v6, %v4770_v6  ;;  %v4787_v49 = vpop.eup %3846  ;;  %v2769_v1 = vadd.f32 %v2768_v34, %v2712_v7 }
 0x21b   : > { %v2280_v30 = vpop.f32.mrf.mxu0  ;;  %v2668_v18 = vadd.f32 %v4770_v6, %v2667_v32  ;;  %3864 = vtanh.f32 %v2466_v33  ;;  %v2715_v63 = vmul.f32 %v4782_v20, %v4782_v20 }
 0x21c   : > { %v2473_v52 = vpop.f32.mrf.mxu1  ;;  %v2281_v24 = vadd.f32 %v2280_v30, %v4553_v45  ;;  %v2470_v13 = vadd.f32 %v2469_v10, %v2277_v36  ;;  %3866 = vtanh.f32 %v2468_v17  ;;  %v2806_v19 = vadd.f32 %v2805_v28, %v2713_v43 }
 0x21d   : > { %v2282_v62 = vpop.f32.mrf.mxu0  ;;  %v2632_v10 = vadd.f32 %v4778_v38, %v2631_v44  ;;  %v2770_v59 = vadd.f32 %v2769_v1, %v2714_v5 }
 0x21e   : > { %v2475_v4 = vpop.f32.mrf.mxu1  ;;  %v2283_v56 = vadd.f32 %v2282_v62, %v4556_v55  ;;  %v4791_v55 = vpop.eup %3848  ;;  %v2474_v57 = vadd.f32 %v2473_v52, %v2281_v24  ;;  %v5788_v62 = vld [vmem:[#allocation18_spill] sm:$0xff]  ;;  %v2716_v52 = vmul.f32 %v4787_v49, %v4787_v49  ;;  %3868 = vtanh.f32 %v2470_v13  ;;  %v5791_v24 = vld [vmem:[#allocation20_spill] sm:$0xff] }
 0x21f   : > { %v2284_v15 = vpop.f32.mrf.mxu0  ;;  %5785 = vst [vmem:[#allocation15_spill] sm:$0xff] %v4791_v55  ;;  %v2717_v2 = vmul.f32 %v4791_v55, %v4791_v55  ;;  %v2807_v34 = vadd.f32 %v2806_v19, %v2715_v63  ;;  %v2633_v32 = vadd.f32 %v4787_v49, %v2632_v10 }
 0x220   : > { %v2477_v21 = vpop.f32.mrf.mxu1  ;;  %v2285_v53 = vadd.f32 %v2284_v15, %v5784_v40  ;;  %v2476_v42 = vadd.f32 %v2475_v4, %v2283_v56  ;;  %v4806_v4 = vpop.eup %3850  ;;  %v2669_v15 = vadd.f32 %v4782_v20, %v2668_v18  ;;  %3870 = vtanh.f32 %v2474_v57  ;;  %v5793_v18 = vld [vmem:[#allocation21_spill] sm:$0xff] }
 0x221   : > { %v2286_v9 = vpop.f32.mrf.mxu0  ;;  %v4809_v36 = vpop.eup %3852  ;;  %v2771_v40 = vadd.f32 %v2770_v59, %v2716_v52 }
 0x222   : > { %v2479_v46 = vpop.f32.mrf.mxu1  ;;  %v2287_v11 = vadd.f32 %v2286_v9, %v5786_v26  ;;  %v2478_v12 = vadd.f32 %v2477_v21, %v2285_v53  ;;  %5790 = vst [vmem:[#allocation16_spill] sm:$0xff] %v4809_v36  ;;  %3872 = vtanh.f32 %v2476_v42  ;;  %v4813_v43 = vpop.eup %3854  ;;  %v2808_v53 = vadd.f32 %v2807_v34, %v2717_v2 }
 0x223   : > { %v2290_v45 = vpop.f32.mrf.mxu0  ;;  %v4816_v44 = vpop.eup %3856  ;;  %v2719_v1 = vmul.f32 %v4809_v36, %v4809_v36 }
 0x224   : > { %v2483_v51 = vpop.f32.mrf.mxu1  ;;  %v2291_v48 = vadd.f32 %v2290_v45, %v5787_v0  ;;  %v2480_v21 = vadd.f32 %v2479_v46, %v2287_v11  ;;  %3874 = vtanh.f32 %v2478_v12  ;;  %v2670_v46 = vadd.f32 %v4791_v55, %v2669_v15  ;;  %5792 = vst [vmem:[#allocation17_spill] sm:$0xff] %v4816_v44  ;;  %v4823_v26 = vpop.eup %3858 }
 0x225   : > { %v2292_v3 = vpop.f32.mrf.mxu0  ;;  %v2634_v11 = vadd.f32 %v4806_v4, %v2633_v32  ;;  %v4827_v42 = vpop.eup %3860  ;;  %v2722_v59 = vmul.f32 %v4823_v26, %v4823_v26 }
 0x226   : > { %v2485_v30 = vpop.f32.mrf.mxu1  ;;  %v2293_v54 = vadd.f32 %v2292_v3, %v5788_v62  ;;  %v2484_v33 = vadd.f32 %v2483_v51, %v2291_v48  ;;  %v2718_v51 = vmul.f32 %v4806_v4, %v4806_v4  ;;  %3876 = vtanh.f32 %v2480_v21  ;;  %5795 = vst [vmem:[#allocation18_spill] sm:$0xff] %v4827_v42  ;;  %v4832_v62 = vpop.eup %3862 }
 0x227   : > { %v2294_v39 = vpop.f32.mrf.mxu0  ;;  %v2671_v0 = vadd.f32 %v4809_v36, %v2670_v46  ;;  %v2720_v48 = vmul.f32 %v4813_v43, %v4813_v43  ;;  %v2723_v34 = vmul.f32 %v4827_v42, %v4827_v42  ;;  %v2724_v32 = vmul.f32 %v4832_v62, %v4832_v62 }
 0x228   : > { %v2487_v60 = vpop.f32.mrf.mxu1  ;;  %v2295_v22 = vadd.f32 %v2294_v39, %v5789_v47  ;;  %v2486_v17 = vadd.f32 %v2485_v30, %v2293_v54  ;;  %3878 = vtanh.f32 %v2484_v33  ;;  %v5794_v30 = vld [vmem:[#allocation22_spill] sm:$0xff]  ;;  %v2721_v54 = vmul.f32 %v4816_v44, %v4816_v44 }
 0x229   : > { %v2296_v27 = vpop.f32.mrf.mxu0  ;;  %v2772_v2 = vadd.f32 %v2771_v40, %v2718_v51  ;;  %v2809_v47 = vadd.f32 %v2808_v53, %v2719_v1 }
 0x22a   : > { %v2489_v7 = vpop.f32.mrf.mxu1  ;;  %v2297_v9 = vadd.f32 %v2296_v27, %v5791_v24  ;;  %v2488_v45 = vadd.f32 %v2487_v60, %v2295_v22  ;;  %3880 = vtanh.f32 %v2486_v17  ;;  %v5796_v60 = vld [vmem:[#allocation23_spill] sm:$0xff]  ;;  %v2635_v22 = vadd.f32 %v4813_v43, %v2634_v11  ;;  %v4840_v27 = vpop.eup %3864  ;;  %v5798_v17 = vld [vmem:[#allocation24_spill] sm:$0xff] }
 0x22b   : > { %v2300_v56 = vpop.f32.mrf.mxu0  ;;  %5797 = vst [vmem:[#allocation19_spill] sm:$0xff] %v4840_v27  ;;  %v4845_v24 = vpop.eup %3866  ;;  %v2810_v46 = vadd.f32 %v2809_v47, %v2721_v54 }
 0x22c   : > { %v2493_v28 = vpop.f32.mrf.mxu1  ;;  %v2301_v13 = vadd.f32 %v2300_v56, %v5793_v18  ;;  %v2490_v3 = vadd.f32 %v2489_v7, %v2297_v9  ;;  %3882 = vtanh.f32 %v2488_v45  ;;  %v2672_v7 = vadd.f32 %v4816_v44, %v2671_v0  ;;  %v4852_v51 = vpop.eup %3868 }
 0x22d   : > { %v2302_v5 = vpop.f32.mrf.mxu0  ;;  %v2773_v9 = vadd.f32 %v2772_v2, %v2720_v48  ;;  %v2636_v53 = vadd.f32 %v4823_v26, %v2635_v22  ;;  %5799 = vst [vmem:[#allocation20_spill] sm:$0xff] %v4852_v51  ;;  %v2726_v0 = vmul.f32 %v4845_v24, %v4845_v24  ;;  %v5801_v48 = vld [vmem:[#allocation26_spill] sm:$0xff]  ;;  %v2727_v22 = vmul.f32 %v4852_v51, %v4852_v51 }
 0x22e   : > { %v2495_v57 = vpop.f32.mrf.mxu1  ;;  %v2303_v63 = vadd.f32 %v2302_v5, %v5794_v30  ;;  %v2494_v19 = vadd.f32 %v2493_v28, %v2301_v13  ;;  %3884 = vtanh.f32 %v2490_v3  ;;  %v2673_v45 = vadd.f32 %v4827_v42, %v2672_v7  ;;  %v5800_v13 = vld [vmem:[#allocation25_spill] sm:$0xff]  ;;  %v4855_v3 = vpop.eup %3870 }
 0x22f   : > { %v2304_v10 = vpop.f32.mrf.mxu0  ;;  %v2774_v1 = vadd.f32 %v2773_v9, %v2722_v59  ;;  %v2811_v30 = vadd.f32 %v2810_v46, %v2723_v34  ;;  %v2728_v34 = vmul.f32 %v4855_v3, %v4855_v3 }
 0x230   : > { %v2497_v12 = vpop.f32.mrf.mxu1  ;;  %v2496_v39 = vadd.f32 %v2495_v57, %v2303_v63  ;;  %v2305_v52 = vadd.f32 %v2304_v10, %v5796_v60  ;;  %3886 = vtanh.f32 %v2494_v19  ;;  %v2725_v63 = vmul.f32 %v4840_v27, %v4840_v27  ;;  %v4862_v10 = vpop.eup %3872 }
 0x231   : > { %v2306_v15 = vpop.f32.mrf.mxu0  ;;  %5802 = vst [vmem:[#allocation21_spill] sm:$0xff] %v4862_v10  ;;  %v2775_v54 = vadd.f32 %v2774_v1, %v2724_v32  ;;  %v4866_v47 = vpop.eup %3874  ;;  %v5805_v1 = vld [vmem:[#allocation28_spill] sm:$0xff] }
 0x232   : > { %v2499_v21 = vpop.f32.mrf.mxu1  ;;  %v2498_v33 = vadd.f32 %v2497_v12, %v2305_v52  ;;  %v2307_v56 = vadd.f32 %v2306_v15, %v5798_v17  ;;  %3888 = vtanh.f32 %v2496_v39  ;;  %v2637_v12 = vadd.f32 %v4832_v62, %v2636_v53  ;;  %v5803_v15 = vld [vmem:[#allocation27_spill] sm:$0xff] }
 0x233   : > { %v2310_v28 = vpop.f32.mrf.mxu0  ;;  %v2674_v39 = vadd.f32 %v4840_v27, %v2673_v45  ;;  %v4874_v32 = vpop.eup %3876  ;;  %v2812_v17 = vadd.f32 %v2811_v30, %v2725_v63  ;;  %v2729_v53 = vmul.f32 %v4862_v10, %v4862_v10  ;;  %v2730_v45 = vmul.f32 %v4866_v47, %v4866_v47  ;;  %v5807_v63 = vld [vmem:[#allocation29_spill] sm:$0xff] }
 0x234   : > { %v2503_v40 = vpop.f32.mrf.mxu1  ;;  %3890 = vtanh.f32 %v2498_v33  ;;  %v2500_v18 = vadd.f32 %v2499_v21, %v2307_v56  ;;  %v2311_v5 = vadd.f32 %v2310_v28, %v5800_v13  ;;  %v2638_v7 = vadd.f32 %v4845_v24, %v2637_v12  ;;  %5804 = vst [vmem:[#allocation22_spill] sm:$0xff] %v4874_v32 }
 0x235   : > { %v2312_v57 = vpop.f32.mrf.mxu0  ;;  %v2776_v56 = vadd.f32 %v2775_v54, %v2726_v0  ;;  %v2675_v28 = vadd.f32 %v4852_v51, %v2674_v39  ;;  %v4877_v46 = vpop.eup %3878  ;;  %v2731_v54 = vmul.f32 %v4874_v32, %v4874_v32 }
 0x236   : > { %v2505_v11 = vpop.f32.mrf.mxu1  ;;  %v2313_v19 = vadd.f32 %v2312_v57, %v5801_v48  ;;  %v2504_v60 = vadd.f32 %v2503_v40, %v2311_v5  ;;  %3892 = vtanh.f32 %v2500_v18  ;;  %v2639_v30 = vadd.f32 %v4855_v3, %v2638_v7 }
 0x237   : > { %v2314_v52 = vpop.f32.mrf.mxu0  ;;  %v4884_v57 = vpop.eup %3880  ;;  %v2676_v12 = vadd.f32 %v4862_v10, %v2675_v28 }
 0x238   : > { %v2507_v2 = vpop.f32.mrf.mxu1  ;;  %v2506_v59 = vadd.f32 %v2505_v11, %v2313_v19  ;;  %v2315_v21 = vadd.f32 %v2314_v52, %v5803_v15  ;;  %3894 = vtanh.f32 %v2504_v60  ;;  %5806 = vst [vmem:[#allocation23_spill] sm:$0xff] %v4884_v57  ;;  %v2813_v11 = vadd.f32 %v2812_v17, %v2727_v22  ;;  %v5808_v15 = vld [vmem:[#allocation30_spill] sm:$0xff] }
 0x239   : > { %v2316_v33 = vpop.f32.mrf.mxu0  ;;  %v4888_v48 = vpop.eup %3882  ;;  %v2777_v19 = vadd.f32 %v2776_v56, %v2728_v34  ;;  %v2732_v22 = vmul.f32 %v4877_v46, %v4877_v46  ;;  %v2677_v17 = vadd.f32 %v4874_v32, %v2676_v12 }
 0x23a   : > { %v2509_v9 = vpop.f32.mrf.mxu1  ;;  %v2508_v40 = vadd.f32 %v2507_v2, %v2315_v21  ;;  %3896 = vtanh.f32 %v2506_v59  ;;  %v2317_v18 = vadd.f32 %v2316_v33, %v5805_v1  ;;  %v2640_v2 = vadd.f32 %v4866_v47, %v2639_v30 }
 0x23b   : > { %v2320_v13 = vpop.f32.mrf.mxu0  ;;  %v4897_v7 = vpop.eup %3884  ;;  %v2814_v33 = vadd.f32 %v2813_v11, %v2729_v53  ;;  %v2778_v34 = vadd.f32 %v2777_v19, %v2730_v45  ;;  %v2734_v1 = vmul.f32 %v4888_v48, %v4888_v48  ;;  %v5812_v45 = vld [vmem:[#allocation31_spill] sm:$0xff]  ;;  %v2678_v12 = vadd.f32 %v4884_v57, %v2677_v17 }
 0x23c   : > { %v2513_v5 = vpop.f32.mrf.mxu1  ;;  %3898 = vtanh.f32 %v2508_v40  ;;  %v2321_v0 = vadd.f32 %v2320_v13, %v5807_v63  ;;  %v2510_v39 = vadd.f32 %v2509_v9, %v2317_v18  ;;  %5809 = vst [vmem:[#allocation24_spill] sm:$0xff] %v4897_v7  ;;  %v2733_v40 = vmul.f32 %v4884_v57, %v4884_v57 }
 0x23d   : > { %v2322_v60 = vpop.f32.mrf.mxu0  ;;  %v4900_v9 = vpop.eup %3886  ;;  %v2641_v53 = vadd.f32 %v4877_v46, %v2640_v2  ;;  %v2779_v19 = vadd.f32 %v2778_v34, %v2732_v22  ;;  %v5814_v2 = vld [vmem:[#allocation32_spill] sm:$0xff]  ;;  %v2679_v22 = vadd.f32 %v4897_v7, %v2678_v12  ;;  %v5815_v34 = vld [vmem:[#allocation33_spill] sm:$0xff] }
 0x23e   : > { %v2515_v52 = vpop.f32.mrf.mxu1  ;;  %v2514_v59 = vadd.f32 %v2513_v5, %v2321_v0  ;;  %v2323_v21 = vadd.f32 %v2322_v60, %v5808_v15  ;;  %3900 = vtanh.f32 %v2510_v39  ;;  %5810 = vst [vmem:[#allocation25_spill] sm:$0xff] %v4900_v9  ;;  %v2815_v5 = vadd.f32 %v2814_v33, %v2731_v54 }
 0x23f   : > { %v2324_v56 = vpop.f32.mrf.mxu0  ;;  %v4906_v13 = vpop.eup %3888  ;;  %v2735_v39 = vmul.f32 %v4897_v7, %v4897_v7  ;;  %v2642_v60 = vadd.f32 %v4888_v48, %v2641_v53  ;;  %v2736_v54 = vmul.f32 %v4900_v9, %v4900_v9 }
 0x240   : > { %v2517_v28 = vpop.f32.mrf.mxu1  ;;  %3902 = vtanh.f32 %v2514_v59  ;;  %v2516_v18 = vadd.f32 %v2515_v52, %v2323_v21  ;;  %5811 = vst [vmem:[#allocation26_spill] sm:$0xff] %v4906_v13  ;;  %v2325_v11 = vadd.f32 %v2324_v56, %v5812_v45  ;;  %v2816_v33 = vadd.f32 %v2815_v5, %v2733_v40 }
 0x241   : > { %v2326_v30 = vpop.f32.mrf.mxu0  ;;  %v4910_v0 = vpop.eup %3890  ;;  %v2780_v56 = vadd.f32 %v2779_v19, %v2734_v1  ;;  %v2643_v1 = vadd.f32 %v4900_v9, %v2642_v60  ;;  %v5818_v19 = vld [vmem:[#allocation34_spill] sm:$0xff] }
 0x242   : > { %v2519_v63 = vpop.f32.mrf.mxu1  ;;  %5813 = vst [vmem:[#allocation27_spill] sm:$0xff] %v4910_v0  ;;  %3904 = vtanh.f32 %v2516_v18  ;;  %v2518_v52 = vadd.f32 %v2517_v28, %v2325_v11  ;;  %v2327_v59 = vadd.f32 %v2326_v30, %v5814_v2  ;;  %v2737_v18 = vmul.f32 %v4906_v13, %v4906_v13 }
 0x243   : > { %v2330_v15 = vpop.f32.mrf.mxu0  ;;  %v4921_v45 = vpop.eup %3892  ;;  %v2738_v53 = vmul.f32 %v4910_v0, %v4910_v0  ;;  %v2817_v40 = vadd.f32 %v2816_v33, %v2735_v39 }
 0x244   : > { %v2523_v21 = vpop.f32.mrf.mxu1  ;;  %v2331_v17 = vadd.f32 %v2330_v15, %v5815_v34  ;;  %5816 = vst [vmem:[#allocation28_spill] sm:$0xff] %v4921_v45  ;;  %3906 = vtanh.f32 %v2518_v52  ;;  %v2520_v28 = vadd.f32 %v2519_v63, %v2327_v59  ;;  %v2781_v15 = vadd.f32 %v2780_v56, %v2736_v54  ;;  %v5820_v56 = vld [vmem:[#allocation35_spill] sm:$0xff] }
 0x245   : > { %v2332_v11 = vpop.f32.mrf.mxu0  ;;  %v4927_v2 = vpop.eup %3894  ;;  %v2680_v34 = vadd.f32 %v4906_v13, %v2679_v22  ;;  %v2644_v59 = vadd.f32 %v4910_v0, %v2643_v1  ;;  %v2739_v39 = vmul.f32 %v4921_v45, %v4921_v45  ;;  %v2818_v54 = vadd.f32 %v2817_v40, %v2737_v18 }
 0x246   : > { %v2525_v30 = vpop.f32.mrf.mxu1  ;;  %5817 = vst [vmem:[#allocation29_spill] sm:$0xff] %v4927_v2  ;;  %v2524_v5 = vadd.f32 %v2523_v21, %v2331_v17  ;;  %v2333_v12 = vadd.f32 %v2332_v11, %v5818_v19  ;;  %v2740_v7 = vmul.f32 %v4927_v2, %v4927_v2  ;;  %3908 = vtanh.f32 %v2520_v28 }
 0x247   : > { %v2334_v57 = vpop.f32.mrf.mxu0  ;;  %v4934_v63 = vpop.eup %3896  ;;  %v2782_v33 = vadd.f32 %v2781_v15, %v2738_v53  ;;  %v2681_v28 = vadd.f32 %v4921_v45, %v2680_v34  ;;  %v2645_v19 = vadd.f32 %v4927_v2, %v2644_v59  ;;  %v2819_v15 = vadd.f32 %v2818_v54, %v2739_v39 }
 0x248   : > { %v2527_v52 = vpop.f32.mrf.mxu1  ;;  %5819 = vst [vmem:[#allocation30_spill] sm:$0xff] %v4934_v63  ;;  %3910 = vtanh.f32 %v2524_v5  ;;  %v2526_v60 = vadd.f32 %v2525_v30, %v2333_v12  ;;  %v2335_v22 = vadd.f32 %v2334_v57, %v5820_v56  ;;  %v2741_v30 = vmul.f32 %v4934_v63, %v4934_v63  ;;  %v5821_v12 = vld [vmem:[#allocation36_spill] sm:$0xff]  ;;  %v5823_v56 = vld [vmem:[#allocation37_spill] sm:$0xff] }
 0x249   : > { %v4939_v21 = vpop.eup %3898  ;;  %v2336_v17 = vpop.f32.mrf.mxu0  ;;  %v2783_v13 = vadd.f32 %v2782_v33, %v2740_v7  ;;  %v2682_v34 = vadd.f32 %v4934_v63, %v2681_v28  ;;  %v5824_v28 = vld [vmem:[#allocation38_spill] sm:$0xff] }
 0x24a   : > { %v2529_v11 = vpop.f32.mrf.mxu1  ;;  %v2742_v1 = vmul.f32 %v4939_v21, %v4939_v21  ;;  %3912 = vtanh.f32 %v2526_v60  ;;  %v2528_v5 = vadd.f32 %v2527_v52, %v2335_v22  ;;  %v2337_v18 = vadd.f32 %v2336_v17, %v5821_v12 }
 0x24b   : > { %v2340_v53 = vpop.f32.mrf.mxu0  ;;  %v4949_v57 = vpop.eup %3900  ;;  %v2646_v59 = vadd.f32 %v4939_v21, %v2645_v19 }
 0x24c   : > { %v2533_v40 = vpop.f32.mrf.mxu1  ;;  %5822 = vst [vmem:[#allocation31_spill] sm:$0xff] %v4949_v57  ;;  %v2341_v45 = vadd.f32 %v2340_v53, %v5823_v56  ;;  %v2784_v7 = vadd.f32 %v2783_v13, %v2742_v1  ;;  %v2743_v60 = vmul.f32 %v4949_v57, %v4949_v57  ;;  %3914 = vtanh.f32 %v2528_v5 }
 0x24d   : > { %v4954_v32 = vpop.eup %3902  ;;  %v2530_v52 = vadd.f32 %v2529_v11, %v2337_v18  ;;  %v2342_v33 = vpop.f32.mrf.mxu0  ;;  %v2820_v53 = vadd.f32 %v2819_v15, %v2741_v30  ;;  %v2683_v56 = vadd.f32 %v4949_v57, %v2682_v34  ;;  %v5827_v15 = vld [vmem:[#allocation40_spill] sm:$0xff] }
 0x24e   : > { %v2535_v22 = vpop.f32.mrf.mxu1  ;;  %v2647_v17 = vadd.f32 %v4954_v32, %v2646_v59  ;;  %v2744_v39 = vmul.f32 %v4954_v32, %v4954_v32  ;;  %v2534_v54 = vadd.f32 %v2533_v40, %v2341_v45  ;;  %v2343_v19 = vadd.f32 %v2342_v33, %v5824_v28  ;;  %v5826_v59 = vld [vmem:[#allocation39_spill] sm:$0xff] }
 0x24f   : > { %v4962_v12 = vpop.eup %3904  ;;  %3916 = vtanh.f32 %v2530_v52  ;;  %v2344_v13 = vpop.f32.mrf.mxu0  ;;  %v2821_v33 = vadd.f32 %v2820_v53, %v2743_v60 }
 0x250   : > { %5825 = vst [vmem:[#allocation32_spill] sm:$0xff] %v4962_v12  ;;  %v2537_v1 = vpop.f32.mrf.mxu1  ;;  %v2785_v5 = vadd.f32 %v2784_v7, %v2744_v39  ;;  %v2745_v11 = vmul.f32 %v4962_v12, %v4962_v12  ;;  %3918 = vtanh.f32 %v2534_v54  ;;  %v2536_v18 = vadd.f32 %v2535_v22, %v2343_v19 }
 0x251   : > { %v2345_v63 = vadd.f32 %v2344_v13, %v5826_v59  ;;  %v2346_v10 = vpop.f32.mrf.mxu0  ;;  %v4968_v40 = vpop.eup %3906  ;;  %v2684_v30 = vadd.f32 %v4962_v12, %v2683_v56  ;;  %v5829_v59 = vld [vmem:[#allocation41_spill] sm:$0xff] }
 0x252   : > { %v2539_v45 = vpop.f32.mrf.mxu1  ;;  %v2347_v52 = vadd.f32 %v2346_v10, %v5827_v15  ;;  %v2648_v28 = vadd.f32 %v4968_v40, %v2647_v17  ;;  %v2746_v34 = vmul.f32 %v4968_v40, %v4968_v40  ;;  %3920 = vtanh.f32 %v2536_v18  ;;  %v5831_v15 = vld [vmem:[#allocation42_spill] sm:$0xff] }
 0x253   : > { %v2538_v7 = vadd.f32 %v2537_v1, %v2345_v63  ;;  %v2350_v39 = vpop.f32.mrf.mxu0  ;;  %v4975_v54 = vpop.eup %3908  ;;  %v2822_v19 = vadd.f32 %v2821_v33, %v2745_v11 }
 0x254   : > { %v2543_v22 = vpop.f32.mrf.mxu1  ;;  %5828 = vst [vmem:[#allocation33_spill] sm:$0xff] %v4975_v54  ;;  %v2540_v13 = vadd.f32 %v2539_v45, %v2347_v52  ;;  %v2351_v57 = vadd.f32 %v2350_v39, %v5829_v59  ;;  %v2786_v53 = vadd.f32 %v2785_v5, %v2746_v34  ;;  %v2685_v10 = vadd.f32 %v4975_v54, %v2684_v30  ;;  %v5832_v59 = vld [vmem:[#allocation43_spill] sm:$0xff] }
 0x255   : > { %v4978_v60 = vpop.eup %3910  ;;  %v2747_v17 = vmul.f32 %v4975_v54, %v4975_v54  ;;  %3922 = vtanh.f32 %v2538_v7  ;;  %v2352_v56 = vpop.f32.mrf.mxu0 }
 0x256   : > { %v2545_v18 = vpop.f32.mrf.mxu1  ;;  %v2649_v63 = vadd.f32 %v4978_v60, %v2648_v28  ;;  %v2748_v1 = vmul.f32 %v4978_v60, %v4978_v60  ;;  %3924 = vtanh.f32 %v2540_v13  ;;  %v2544_v11 = vadd.f32 %v2543_v22, %v2351_v57 }
 0x257   : > { %v4986_v45 = vpop.eup %3912  ;;  %v2823_v33 = vadd.f32 %v2822_v19, %v2747_v17  ;;  %v2353_v5 = vadd.f32 %v2352_v56, %v5831_v15  ;;  %v2354_v52 = vpop.f32.mrf.mxu0  ;;  %v5833_v19 = vld [vmem:[#allocation44_spill] sm:$0xff] }
 0x258   : > { %5830 = vst [vmem:[#allocation34_spill] sm:$0xff] %v4986_v45  ;;  %v2547_v30 = vpop.f32.mrf.mxu1  ;;  %v2787_v34 = vadd.f32 %v2786_v53, %v2748_v1  ;;  %v2686_v39 = vadd.f32 %v4986_v45, %v2685_v10  ;;  %v2749_v7 = vmul.f32 %v4986_v45, %v4986_v45  ;;  %3926 = vtanh.f32 %v2544_v11 }
 0x259   : > { %v2546_v28 = vadd.f32 %v2545_v18, %v2353_v5  ;;  %v2355_v12 = vadd.f32 %v2354_v52, %v5832_v59  ;;  %v2356_v51 = vpop.f32.mrf.mxu0  ;;  %v4993_v57 = vpop.eup %3914  ;;  %v5835_v5 = vld [vmem:[#allocation45_spill] sm:$0xff] }
 0x25a   : > { %v2549_v13 = vpop.f32.mrf.mxu1  ;;  %v2824_v22 = vadd.f32 %v2823_v33, %v2749_v7  ;;  %v2357_v17 = vadd.f32 %v2356_v51, %v5833_v19  ;;  %v2650_v56 = vadd.f32 %v4993_v57, %v2649_v63  ;;  %v2750_v53 = vmul.f32 %v4993_v57, %v4993_v57  ;;  %v5836_v19 = vld [vmem:[#allocation46_spill] sm:$0xff] }
 0x25b   : > { %3928 = vtanh.f32 %v2546_v28  ;;  %v2548_v10 = vadd.f32 %v2547_v30, %v2355_v12  ;;  %v2360_v1 = vpop.f32.mrf.mxu0 }
 0x25c   : > { %v2553_v15 = vpop.f32.mrf.mxu1  ;;  %v4999_v11 = vpop.eup %3916  ;;  %v2550_v18 = vadd.f32 %v2549_v13, %v2357_v17  ;;  %v2361_v52 = vadd.f32 %v2360_v1, %v5835_v5  ;;  %v2788_v27 = vadd.f32 %v2787_v34, %v2750_v53  ;;  %v5838_v5 = vld [vmem:[#allocation47_spill] sm:$0xff] }
 0x25d   : > { %5834 = vst [vmem:[#allocation35_spill] sm:$0xff] %v4999_v11  ;;  %v5002_v59 = vpop.eup %3918  ;;  %v2687_v33 = vadd.f32 %v4999_v11, %v2686_v39  ;;  %v2751_v51 = vmul.f32 %v4999_v11, %v4999_v11  ;;  %3930 = vtanh.f32 %v2548_v10  ;;  %v2362_v63 = vpop.f32.mrf.mxu0 }
 0x25e   : > { %v2555_v7 = vpop.f32.mrf.mxu1  ;;  %v2651_v12 = vadd.f32 %v5002_v59, %v2650_v56  ;;  %v2752_v30 = vmul.f32 %v5002_v59, %v5002_v59  ;;  %3932 = vtanh.f32 %v2550_v18  ;;  %v2554_v28 = vadd.f32 %v2553_v15, %v2361_v52  ;;  %v5839_v15 = vld [vmem:[#allocation48_spill] sm:$0xff] }
 0x25f   : > { %v2825_v13 = vadd.f32 %v2824_v22, %v2751_v51  ;;  %v2363_v17 = vadd.f32 %v2362_v63, %v5836_v19  ;;  %v2364_v1 = vpop.f32.mrf.mxu0  ;;  %v5011_v53 = vpop.eup %3920 }
 0x260   : > { %v2557_v34 = vpop.f32.mrf.mxu1  ;;  %5837 = vst [vmem:[#allocation36_spill] sm:$0xff] %v5011_v53  ;;  %v2789_v39 = vadd.f32 %v2788_v27, %v2752_v30  ;;  %3934 = vtanh.f32 %v2554_v28  ;;  %v2365_v10 = vadd.f32 %v2364_v1, %v5838_v5  ;;  %v2688_v42 = vadd.f32 %v5011_v53, %v2687_v33 }
 0x261   : > { %v2753_v56 = vmul.f32 %v5011_v53, %v5011_v53  ;;  %v2556_v44 = vadd.f32 %v2555_v7, %v2363_v17  ;;  %v2366_v36 = vpop.f32.mrf.mxu0 }
 0x262   : > { %v5017_v18 = vpop.eup %3922  ;;  %v2558_v22 = vadd.f32 %v2557_v34, %v2365_v10  ;;  %v2367_v52 = vadd.f32 %v2366_v36, %v5839_v15  ;;  %v2559_v33 = vpop.f32.mrf.mxu1 }
 0x263   : > { %v5020_v51 = vpop.eup %3924  ;;  %v2826_v63 = vadd.f32 %v2825_v13, %v2753_v56  ;;  %v2652_v27 = vadd.f32 %v5017_v18, %v2651_v12  ;;  %v2754_v30 = vmul.f32 %v5017_v18, %v5017_v18  ;;  %3936 = vtanh.f32 %v2556_v44 }
 0x264   : > { %5840 = vst [vmem:[#allocation37_spill] sm:$0xff] %v5020_v51  ;;  %v2689_v28 = vadd.f32 %v5020_v51, %v2688_v42  ;;  %v2755_v7 = vmul.f32 %v5020_v51, %v5020_v51  ;;  %3938 = vtanh.f32 %v2558_v22  ;;  %v2560_v19 = vadd.f32 %v2559_v33, %v2367_v52 }
 0x265   : > { %v5028_v17 = vpop.eup %3926  ;;  %v2790_v36 = vadd.f32 %v2789_v39, %v2754_v30 }
 0x266   : > { %v2827_v1 = vadd.f32 %v2826_v63, %v2755_v7  ;;  %v2653_v13 = vadd.f32 %v5028_v17, %v2652_v27  ;;  %v2756_v12 = vmul.f32 %v5028_v17, %v5028_v17  ;;  %3940 = vtanh.f32 %v2560_v19 }
 0x268   : > { %v5033_v34 = vpop.eup %3928  ;;  %v2791_v44 = vadd.f32 %v2790_v36, %v2756_v12 }
 0x269   : > { %5841 = vst [vmem:[#allocation38_spill] sm:$0xff] %v5033_v34  ;;  %v2690_v42 = vadd.f32 %v5033_v34, %v2689_v28  ;;  %v2757_v5 = vmul.f32 %v5033_v34, %v5033_v34 }
 0x26a   : > { %v5038_v10 = vpop.eup %3930 }
 0x26b   : > { %v5040_v56 = vpop.eup %3932  ;;  %v2828_v39 = vadd.f32 %v2827_v1, %v2757_v5  ;;  %v2654_v22 = vadd.f32 %v5038_v10, %v2653_v13  ;;  %v2758_v15 = vmul.f32 %v5038_v10, %v5038_v10 }
 0x26c   : > { %5842 = vst [vmem:[#allocation39_spill] sm:$0xff] %v5040_v56  ;;  %v2691_v52 = vadd.f32 %v5040_v56, %v2690_v42  ;;  %v2759_v63 = vmul.f32 %v5040_v56, %v5040_v56 }
 0x26d   : > { %v5048_v27 = vpop.eup %3934  ;;  %v2792_v30 = vadd.f32 %v2791_v44, %v2758_v15 }
 0x26e   : > { %v2829_v33 = vadd.f32 %v2828_v39, %v2759_v63  ;;  %v2655_v28 = vadd.f32 %v5048_v27, %v2654_v22  ;;  %v2760_v7 = vmul.f32 %v5048_v27, %v5048_v27 }
 0x270   : > { %v5053_v19 = vpop.eup %3936  ;;  %v2793_v36 = vadd.f32 %v2792_v30, %v2760_v7 }
 0x271   : > { %5843 = vst [vmem:[#allocation40_spill] sm:$0xff] %v5053_v19  ;;  %v5055_v1 = vpop.eup %3938  ;;  %v2692_v13 = vadd.f32 %v5053_v19, %v2691_v52  ;;  %v2761_v12 = vmul.f32 %v5053_v19, %v5053_v19 }
 0x272   : > { %v2656_v42 = vadd.f32 %v5055_v1, %v2655_v28  ;;  %v2762_v44 = vmul.f32 %v5055_v1, %v5055_v1 }
 0x273   : > { %v5063_v5 = vpop.eup %3940  ;;  %v2830_v39 = vadd.f32 %v2829_v33, %v2761_v12 }
 0x274   : > { %v2657_v22 = vrot.slane %v2656_v42, 4  ;;  %v2794_v15 = vadd.f32 %v2793_v36, %v2762_v44  ;;  %v2693_v63 = vadd.f32 %v5063_v5, %v2692_v13  ;;  %v2763_v30 = vmul.f32 %v5063_v5, %v5063_v5 }
 0x276   : > { %v2658_v7 = vadd.f32 %v2657_v22, %v2656_v42  ;;  %v2795_v52 = vrot.slane %v2794_v15, 4  ;;  %v2694_v55 = vrot.slane %v2693_v63, 4  ;;  %v2831_v20 = vadd.f32 %v2830_v39, %v2763_v30 }
 0x278   : > { %v2659_v6 = vrot.slane %v2658_v7, 2  ;;  %v2796_v23 = vadd.f32 %v2795_v52, %v2794_v15  ;;  %v2695_v28 = vadd.f32 %v2694_v55, %v2693_v63  ;;  %v2832_v25 = vrot.slane %v2831_v20, 4 }
 0x27a   : > { %v2660_v14 = vadd.f32 %v2659_v6, %v2658_v7  ;;  %v2797_v50 = vrot.slane %v2796_v23, 2  ;;  %v2696_v35 = vrot.slane %v2695_v28, 2  ;;  %v2833_v8 = vadd.f32 %v2832_v25, %v2831_v20 }
 0x27c   : > { %v2661_v33 = vrot.slane %v2660_v14, 1  ;;  %v2798_v12 = vadd.f32 %v2797_v50, %v2796_v23  ;;  %v2697_v13 = vadd.f32 %v2696_v35, %v2695_v28  ;;  %v2834_v2 = vrot.slane %v2833_v8, 2  ;;  %v5861_v35 = vld [vmem:[#allocation17_spill] sm:$0xff]  ;;  %v5863_v50 = vld [vmem:[#allocation19_spill] sm:$0xff] }
 0x27e   : > { %v2662_v36 = vadd.f32 %v2661_v33, %v2660_v14  ;;  %v2799_v44 = vrot.slane %v2798_v12, 1  ;;  %v2698_v6 = vrot.slane %v2697_v13, 1  ;;  %v2835_v22 = vadd.f32 %v2834_v2, %v2833_v8  ;;  %v5851_v8 = vld [vmem:[#allocation50_spill] sm:$0xff] }
 0x280   : > { %v2800_v0 = vadd.f32 %v2799_v44, %v2798_v12  ;;  %v5068_v9 = vmul.f32 0.00390625, %v2662_v36  ;;  %v2699_v25 = vadd.f32 %v2698_v6, %v2697_v13  ;;  %v2836_v20 = vrot.slane %v2835_v22, 1 }
 0x282   : > { %v2840_v42 = vmul.f32 0.00390625, %v2800_v0  ;;  %v2842_v39 = vmul.f32 %v5068_v9, %v5068_v9  ;;  %v2837_v52 = vadd.f32 %v2836_v20, %v2835_v22  ;;  %v5094_v28 = vmul.f32 0.00390625, %v2699_v25  ;;  %v5852_v0 = vld [vmem:[#allocation49_spill] sm:$0xff] }
 0x283   : > { %v2871_v20 = vsub.f32 %v4680_v37, %v5068_v9  ;;  %v2881_v37 = vsub.f32 %v4743_v61, %v5068_v9  ;;  %v2893_v61 = vsub.f32 %v4823_v26, %v5068_v9  ;;  %v2895_v7 = vsub.f32 %v4832_v62, %v5068_v9  ;;  %v5848_v26 = vld [vmem:[#allocation25_spill] sm:$0xff]  ;;  %v5849_v62 = vld [vmem:[#allocation27_spill] sm:$0xff] }
 0x284   : > { %v2844_v15 = vsub.f32 %v2840_v42, %v2842_v39  ;;  %v2841_v33 = vmul.f32 0.00390625, %v2837_v52  ;;  %v2843_v12 = vmul.f32 %v5094_v28, %v5094_v28  ;;  %v4106_v39 = vmov 1966171168  }
 0x285   : > { %v2856_v6 = vunpack.c.l.s4 %v4106_v39  ;;  %v5844_v39 = vld [vmem:[#allocation12_spill] sm:$0xff]  ;;  %v2873_v52 = vsub.f32 %v4685_v29, %v5068_v9  ;;  %v2899_v30 = vsub.f32 %v4855_v3, %v5068_v9  ;;  %v2907_v63 = vsub.f32 %v5848_v26, %v5068_v9  ;;  %v3541_v3 = vld [vmem:[%s4453_s4 + $0x1] ss:$4 sm:$0x3] }
 0x286   : > { %v2848_v44 = vadd.f32 1e-05, %v2844_v15  ;;  %v2845_v13 = vsub.f32 %v2841_v33, %v2843_v12  ;;  %v5845_v15 = vld [vmem:[#allocation13_spill] sm:$0xff]  ;;  %v5847_v33 = vld [vmem:[#allocation14_spill] sm:$0xff]  ;;  %v2892_v34 = vsub.f32 %v5861_v35, %v5094_v28  ;;  %v2896_v53 = vsub.f32 %v5863_v50, %v5094_v28  ;;  %v5868_v50 = vld [vmem:[#allocation24_spill] sm:$0xff] }
 0x288   : > { %v2849_v42 = vadd.f32 1e-05, %v2845_v13  ;;  %3942 = vrsqrt.f32 %v2848_v44  ;;  %v2857_v13 = vunpack.c.0.s8 %v2856_v6  ;;  %v2875_v44 = vsub.f32 %v4693_v41, %v5068_v9 }
 0x289   : > { %v2877_v6 = vsub.f32 %v4706_v58, %v5068_v9  ;;  %v2887_v41 = vsub.f32 %v4787_v49, %v5068_v9  ;;  %v2889_v58 = vsub.f32 %v4806_v4, %v5068_v9  ;;  %v2901_v49 = vsub.f32 %v4866_v47, %v5068_v9  ;;  %v5864_v47 = vld [vmem:[#allocation20_spill] sm:$0xff] }
 0x28a   : > { %3944 = vrsqrt.f32 %v2849_v42  ;;  %v3542_v42 = vld [vmem:[%s4453_s4 + $0x2] ss:$4 sm:$0x3]  ;;  %v2860_v25 = vsub.s32 %v2857_v13, %v5844_v39  ;;  %v2879_v13 = vsub.f32 %v4730_v31, %v5068_v9  ;;  %v2883_v39 = vsub.f32 %v4758_v16, %v5068_v9 }
 0x28b   : > { %v5123_v22 = vrot.slane %v3542_v42, %v5845_v15  ;;  %v5126_v55 = vrot.slane %v3542_v42, %v5847_v33  ;;  %v2885_v42 = vsub.f32 %v4778_v38, %v5068_v9  ;;  %v2891_v31 = vsub.f32 %v4813_v43, %v5068_v9 }
 0x28c   : > { %v2897_v38 = vsub.f32 %v4845_v24, %v5068_v9  ;;  %v2903_v4 = vsub.f32 %v4877_v46, %v5068_v9  ;;  %v2905_v43 = vsub.f32 %v4888_v48, %v5068_v9  ;;  %v5850_v24 = vld [vmem:[#allocation29_spill] sm:$0xff]  ;;  %v2898_v11 = vsub.f32 %v5864_v47, %v5094_v28  ;;  %v5866_v48 = vld [vmem:[#allocation22_spill] sm:$0xff] }
 0x28d   : > { %5846 = vst [vmem:[#allocation41_spill] sm:$0xff] %v5123_v22  ;;  %v2911_v2 = vsub.f32 %v5850_v24, %v5068_v9  ;;  %v5865_v46 = vld [vmem:[#allocation21_spill] sm:$0xff]  ;;  %v2902_v54 = vsub.f32 %v5866_v48, %v5094_v28  ;;  %v5869_v47 = vld [vmem:[#allocation26_spill] sm:$0xff] }
 0x28e   : > { %v2900_v45 = vsub.f32 %v5865_v46, %v5094_v28  ;;  %v5870_v46 = vld [vmem:[#allocation28_spill] sm:$0xff]  ;;  %v5871_v48 = vld [vmem:[#allocation30_spill] sm:$0xff] }
 0x28f   : > { %v2910_v19 = vsub.f32 %v5870_v46, %v5094_v28  ;;  %v2912_v22 = vsub.f32 %v5871_v48, %v5094_v28 }
 0x295   : > { %v3943_v12 = vpop.eup %3942 }
 0x297   : > { %v3945_v29 = vpop.eup %3944 }
 0x298   : > { %v2854_v16 = vcombine.low %v3943_v12, %v3945_v29  ;;  %v2909_v12 = vsub.f32 %v5849_v62, %v5068_v9  ;;  %v5862_v62 = vld [vmem:[#allocation18_spill] sm:$0xff] }
 0x299   : > { %v2894_v51 = vsub.f32 %v5862_v62, %v5094_v28 }
 0x29a   : > { %v2861_v29 = vrot.slane %v2854_v16, %v2860_v25 }
 0x29c   : > { %v2868_v14 = vrot.slane %v2861_v29, %v2860_v25  ;;  %v2906_v29 = vsub.f32 %v5868_v50, %v5094_v28  ;;  %v2908_v25 = vsub.f32 %v5869_v47, %v5094_v28 }
 0x29e   : > { %v2870_v56 = vmul.f32 %v3541_v3, %v2868_v14  ;;  %v5867_v14 = vld [vmem:[#allocation23_spill] sm:$0xff] }
 0x29f   : > { %v2904_v3 = vsub.f32 %v5867_v14, %v5094_v28  ;;  %v5872_v14 = vld [vmem:[#allocation31_spill] sm:$0xff] }
 0x2a0   : > { %v2939_v35 = vrot.slane %v2870_v56, %v5845_v15  ;;  %v5204_v62 = vrot.slane %v2870_v56, %v5847_v33  ;;  %v2914_v36 = vsub.f32 %v5872_v14, %v5094_v28  ;;  %v5873_v15 = vld [vmem:[#allocation32_spill] sm:$0xff]  ;;  %v5874_v56 = vsub.f32 %v5063_v5, %v5094_v28 }
 0x2a1   : > { %v2916_v24 = vsub.f32 %v5873_v15, %v5094_v28 }
 0x2a2   : > { %v3009_v33 = vmul.f32 %v5204_v62, %v5874_v56  ;;  %v5222_v50 = vmul.f32 %v2939_v35, %v2871_v20  ;;  %v5224_v47 = vmul.f32 %v2939_v35, %v2873_v52  ;;  %v5226_v16 = vmul.f32 %v2939_v35, %v2875_v44 }
 0x2a3   : > { %v5228_v46 = vmul.f32 %v2939_v35, %v2877_v6  ;;  %v5230_v48 = vmul.f32 %v2939_v35, %v2879_v13  ;;  %v5232_v26 = vmul.f32 %v2939_v35, %v2881_v37  ;;  %v5234_v14 = vmul.f32 %v2939_v35, %v2883_v39 }
 0x2a4   : > { %v3086_v15 = vadd.f32 %v5126_v55, %v3009_v33  ;;  %v5237_v23 = vmul.f32 %v2939_v35, %v2885_v42  ;;  %v5239_v5 = vmul.f32 %v2939_v35, %v2887_v41  ;;  %v5241_v20 = vmul.f32 %v2939_v35, %v2889_v58 }
 0x2a5   : > { %v5243_v52 = vmul.f32 %v2939_v35, %v2891_v31  ;;  %v5245_v44 = vmul.f32 %v2939_v35, %v2893_v61  ;;  %v5247_v6 = vmul.f32 %v2939_v35, %v2895_v7  ;;  %v5249_v13 = vmul.f32 %v2939_v35, %v2897_v38 }
 0x2a6   : > { %3150 = vst [vmem:[%s5251_s17 + $0x1f8] sm:$0xff] %v3086_v15  ;;  %v5254_v37 = vmul.f32 %v2939_v35, %v2899_v30  ;;  %v5256_v39 = vmul.f32 %v2939_v35, %v2901_v49  ;;  %v5258_v42 = vmul.f32 %v2939_v35, %v2903_v4  ;;  %v5260_v41 = vmul.f32 %v2939_v35, %v2905_v43 }
 0x2a7   : > { %v5262_v58 = vmul.f32 %v2939_v35, %v2907_v63  ;;  %v5264_v31 = vmul.f32 %v2939_v35, %v2909_v12  ;;  %v5266_v7 = vmul.f32 %v2939_v35, %v2911_v2  ;;  %v5875_v61 = vsub.f32 %v4939_v21, %v5068_v9 }
 0x2a8   : > { %v5876_v30 = vsub.f32 %v4954_v32, %v5068_v9  ;;  %v5877_v4 = vsub.f32 %v4968_v40, %v5068_v9  ;;  %v5878_v63 = vsub.f32 %v4978_v60, %v5068_v9  ;;  %v5879_v21 = vsub.f32 %v4993_v57, %v5068_v9 }
 0x2a9   : > { %v5271_v38 = vmul.f32 %v2939_v35, %v5875_v61  ;;  %v5881_v32 = vsub.f32 %v5002_v59, %v5068_v9  ;;  %v5883_v40 = vsub.f32 %v5017_v18, %v5068_v9  ;;  %v5885_v60 = vsub.f32 %v5028_v17, %v5068_v9 }
 0x2aa   : > { %v5276_v49 = vmul.f32 %v2939_v35, %v5876_v30  ;;  %v5281_v43 = vmul.f32 %v2939_v35, %v5877_v4  ;;  %v5286_v2 = vmul.f32 %v2939_v35, %v5878_v63  ;;  %v5291_v12 = vmul.f32 %v2939_v35, %v5879_v21 }
 0x2ab   : > { %v5296_v56 = vmul.f32 %v2939_v35, %v5881_v32  ;;  %v5301_v33 = vmul.f32 %v2939_v35, %v5883_v40  ;;  %v5306_v15 = vmul.f32 %v2939_v35, %v5885_v60  ;;  %v5887_v57 = vsub.f32 %v5038_v10, %v5068_v9  ;;  %v5895_v32 = vld [vmem:[#allocation51_spill] sm:$0xff]  ;;  %v5897_v60 = vld [vmem:[#allocation52_spill] sm:$0xff] }
 0x2ac   : > { %5880 = vst [vmem:[#allocation42_spill] sm:$0xff] %v5291_v12  ;;  %v5889_v59 = vsub.f32 %v5048_v27, %v5068_v9  ;;  %v5891_v18 = vsub.f32 %v5055_v1, %v5068_v9  ;;  %v5893_v17 = vsub.f32 %v5851_v8, %v5094_v28  ;;  %v5894_v10 = vsub.f32 %v5852_v0, %v5094_v28 }
 0x2ad   : > { %5882 = vst [vmem:[#allocation43_spill] sm:$0xff] %v5296_v56  ;;  %5884 = vst [vmem:[#allocation44_spill] sm:$0xff] %v5301_v33  ;;  %v5311_v61 = vmul.f32 %v2939_v35, %v5887_v57  ;;  %v5896_v27 = vsub.f32 %v5895_v32, %v5094_v28  ;;  %v5898_v9 = vsub.f32 %v5897_v60, %v5094_v28 }
 0x2ae   : > { %5886 = vst [vmem:[#allocation45_spill] sm:$0xff] %v5306_v15  ;;  %v5316_v30 = vmul.f32 %v2939_v35, %v5889_v59  ;;  %v5321_v4 = vmul.f32 %v2939_v35, %v5891_v18  ;;  %v2947_v63 = vmul.f32 %v5204_v62, %v5893_v17  ;;  %v2949_v21 = vmul.f32 %v5204_v62, %v5894_v10  ;;  %v5899_v35 = vld [vmem:[#allocation53_spill] sm:$0xff]  ;;  %v5901_v59 = vld [vmem:[#allocation54_spill] sm:$0xff]  ;;  %v5903_v17 = vld [vmem:[#allocation55_spill] sm:$0xff] }
 0x2af   : > { %5888 = vst [vmem:[#allocation46_spill] sm:$0xff] %v5311_v61  ;;  %v2951_v40 = vmul.f32 %v5204_v62, %v5896_v27  ;;  %v2953_v1 = vmul.f32 %v5204_v62, %v5898_v9  ;;  %v5900_v8 = vsub.f32 %v5899_v35, %v5094_v28  ;;  %v5902_v0 = vsub.f32 %v5901_v59, %v5094_v28  ;;  %v5905_v27 = vld [vmem:[#allocation56_spill] sm:$0xff] }
 0x2b0   : > { %5890 = vst [vmem:[#allocation47_spill] sm:$0xff] %v5316_v30  ;;  %5892 = vst [vmem:[#allocation48_spill] sm:$0xff] %v5321_v4  ;;  %v5904_v10 = vsub.f32 %v5903_v17, %v5094_v28  ;;  %v5906_v60 = vsub.f32 %v5905_v27, %v5094_v28  ;;  %v5907_v4 = vld [vmem:[#allocation15_spill] sm:$0xff]  ;;  %v5909_v30 = vld [vmem:[#allocation16_spill] sm:$0xff]  ;;  %v2967_v61 = vmul.f32 %v5204_v62, %v2892_v34 }
 0x2b1   : > { %v2955_v57 = vmul.f32 %v5204_v62, %v5900_v8  ;;  %v2957_v18 = vmul.f32 %v5204_v62, %v5902_v0  ;;  %v5908_v35 = vsub.f32 %v5907_v4, %v5094_v28  ;;  %v5910_v59 = vsub.f32 %v5909_v30, %v5094_v28 }
 0x2b2   : > { %v2959_v32 = vmul.f32 %v5204_v62, %v5904_v10  ;;  %v2961_v9 = vmul.f32 %v5204_v62, %v5906_v60  ;;  %v2969_v17 = vmul.f32 %v5204_v62, %v2894_v51  ;;  %v2971_v10 = vmul.f32 %v5204_v62, %v2896_v53  ;;  %v5911_v51 = vld [vmem:[#allocation33_spill] sm:$0xff] }
 0x2b3   : > { %v2963_v8 = vmul.f32 %v5204_v62, %v5908_v35  ;;  %v2965_v0 = vmul.f32 %v5204_v62, %v5910_v59  ;;  %v5367_v27 = vmul.f32 %v5204_v62, %v2898_v11  ;;  %v5370_v60 = vmul.f32 %v5204_v62, %v2900_v45 }
 0x2b4   : > { %v5373_v4 = vmul.f32 %v5204_v62, %v2902_v54  ;;  %v5376_v35 = vmul.f32 %v5204_v62, %v2904_v3  ;;  %v5379_v30 = vmul.f32 %v5204_v62, %v2906_v29  ;;  %v5382_v34 = vmul.f32 %v5204_v62, %v2908_v25  ;;  %v5913_v25 = vld [vmem:[#allocation34_spill] sm:$0xff] }
 0x2b5   : > { %v5385_v53 = vmul.f32 %v5204_v62, %v2910_v19  ;;  %v5388_v11 = vmul.f32 %v5204_v62, %v2912_v22  ;;  %v5391_v45 = vmul.f32 %v5204_v62, %v2914_v36  ;;  %v5394_v54 = vmul.f32 %v5204_v62, %v2916_v24  ;;  %v5915_v22 = vld [vmem:[#allocation35_spill] sm:$0xff]  ;;  %v5918_v24 = vld [vmem:[#allocation36_spill] sm:$0xff] }
 0x2b6   : > { %v5912_v3 = vsub.f32 %v5911_v51, %v5094_v28  ;;  %v5914_v59 = vsub.f32 %v5913_v25, %v5094_v28  ;;  %v5916_v15 = vsub.f32 %v5915_v22, %v5094_v28  ;;  %v5919_v33 = vsub.f32 %v5918_v24, %v5094_v28  ;;  %v5926_v22 = vld [vmem:[#allocation39_spill] sm:$0xff] }
 0x2b7   : > { %v5927_v24 = vsub.f32 %v5926_v22, %v5094_v28  ;;  %v3026_v22 = vadd.f32 %v5126_v55, %v2949_v21 }
 0x2b8   : > { %v5400_v29 = vmul.f32 %v5204_v62, %v5912_v3  ;;  %v5406_v19 = vmul.f32 %v5204_v62, %v5914_v59  ;;  %v5412_v36 = vmul.f32 %v5204_v62, %v5916_v15  ;;  %v5418_v51 = vmul.f32 %v5204_v62, %v5919_v33  ;;  %v5921_v3 = vld [vmem:[#allocation37_spill] sm:$0xff]  ;;  %v5924_v59 = vld [vmem:[#allocation38_spill] sm:$0xff] }
 0x2b9   : > { %v5922_v56 = vsub.f32 %v5921_v3, %v5094_v28  ;;  %v5925_v12 = vsub.f32 %v5924_v59, %v5094_v28  ;;  %v5436_v33 = vmul.f32 %v5204_v62, %v5927_v24  ;;  %3090 = vst [vmem:[%s5251_s17 + $0x18] sm:$0xff] %v3026_v22  ;;  %v5937_v22 = vld [vmem:[#allocation45_spill] sm:$0xff] }
 0x2ba   : > { %5917 = vst [vmem:[#allocation12_spill] sm:$0xff] %v5412_v36  ;;  %5920 = vst [vmem:[#allocation13_spill] sm:$0xff] %v5418_v51  ;;  %v5928_v51 = vld [vmem:[#allocation40_spill] sm:$0xff]  ;;  %v3024_v36 = vadd.f32 %v5126_v55, %v2947_v63 }
 0x2bb   : > { %v5424_v25 = vmul.f32 %v5204_v62, %v5922_v56  ;;  %v5430_v15 = vmul.f32 %v5204_v62, %v5925_v12  ;;  %v5929_v3 = vsub.f32 %v5928_v51, %v5094_v28  ;;  %v3028_v28 = vadd.f32 %v5126_v55, %v2951_v40  ;;  %v5935_v51 = vld [vmem:[#allocation44_spill] sm:$0xff] }
 0x2bc   : > { %3088 = vst [vmem:[%s5251_s17 + $0x8] sm:$0xff] %v3024_v36  ;;  %v3036_v40 = vadd.f32 %v5126_v55, %v2959_v32 }
 0x2bd   : > { %5923 = vst [vmem:[#allocation14_spill] sm:$0xff] %v5424_v25  ;;  %v5442_v56 = vmul.f32 %v5204_v62, %v5929_v3  ;;  %v5930_v25 = vld [vmem:[#allocation41_spill] sm:$0xff]  ;;  %3092 = vst [vmem:[%s5251_s17 + $0x28] sm:$0xff] %v3028_v28  ;;  %v3080_v28 = vadd.f32 %v5126_v55, %v5430_v15  ;;  %v5939_v15 = vld [vmem:[#allocation47_spill] sm:$0xff] }
 0x2be   : > { %v3023_v59 = vadd.f32 %v5930_v25, %v5222_v50  ;;  %v3025_v12 = vadd.f32 %v5930_v25, %v5224_v47  ;;  %v3027_v24 = vadd.f32 %v5930_v25, %v5226_v16  ;;  %v3029_v62 = vadd.f32 %v5930_v25, %v5228_v46  ;;  %3100 = vst [vmem:[%s5251_s17 + $0x68] sm:$0xff] %v3036_v40 }
 0x2bf   : > { %v3030_v50 = vadd.f32 %v5126_v55, %v2953_v1  ;;  %v3031_v63 = vadd.f32 %v5930_v25, %v5230_v48  ;;  %v3032_v47 = vadd.f32 %v5126_v55, %v2955_v57  ;;  %v3033_v21 = vadd.f32 %v5930_v25, %v5232_v26  ;;  %3144 = vst [vmem:[%s5251_s17 + $0x1c8] sm:$0xff] %v3080_v28 }
 0x2c0   : > { %3087 = vst [vmem:[%s5251_s17] sm:$0xff] %v3023_v59  ;;  %3089 = vst [vmem:[%s5251_s17 + $0x10] sm:$0xff] %v3025_v12  ;;  %v3034_v16 = vadd.f32 %v5126_v55, %v2957_v18  ;;  %v3035_v46 = vadd.f32 %v5930_v25, %v5234_v14  ;;  %v3037_v48 = vadd.f32 %v5930_v25, %v5237_v23 }
 0x2c1   : > { %3091 = vst [vmem:[%s5251_s17 + $0x20] sm:$0xff] %v3027_v24  ;;  %3093 = vst [vmem:[%s5251_s17 + $0x30] sm:$0xff] %v3029_v62  ;;  %v3038_v26 = vadd.f32 %v5126_v55, %v2961_v9  ;;  %v3039_v1 = vadd.f32 %v5930_v25, %v5239_v5  ;;  %v3040_v14 = vadd.f32 %v5126_v55, %v2963_v8  ;;  %v5934_v36 = vld [vmem:[#allocation13_spill] sm:$0xff]  ;;  %v5938_v62 = vld [vmem:[#allocation46_spill] sm:$0xff] }
 0x2c2   : > { %v3041_v57 = vadd.f32 %v5930_v25, %v5241_v20  ;;  %3094 = vst [vmem:[%s5251_s17 + $0x38] sm:$0xff] %v3030_v50  ;;  %3095 = vst [vmem:[%s5251_s17 + $0x40] sm:$0xff] %v3031_v63  ;;  %v3042_v23 = vadd.f32 %v5126_v55, %v2965_v0  ;;  %v3043_v18 = vadd.f32 %v5930_v25, %v5243_v52 }
 0x2c3   : > { %3096 = vst [vmem:[%s5251_s17 + $0x48] sm:$0xff] %v3032_v47  ;;  %3097 = vst [vmem:[%s5251_s17 + $0x50] sm:$0xff] %v3033_v21  ;;  %v3044_v5 = vadd.f32 %v5126_v55, %v2967_v61  ;;  %v3045_v32 = vadd.f32 %v5930_v25, %v5245_v44  ;;  %v3046_v20 = vadd.f32 %v5126_v55, %v2969_v17 }
 0x2c4   : > { %3098 = vst [vmem:[%s5251_s17 + $0x58] sm:$0xff] %v3034_v16  ;;  %3099 = vst [vmem:[%s5251_s17 + $0x60] sm:$0xff] %v3035_v46  ;;  %v3047_v9 = vadd.f32 %v5930_v25, %v5247_v6  ;;  %v3048_v52 = vadd.f32 %v5126_v55, %v2971_v10  ;;  %v3049_v61 = vadd.f32 %v5930_v25, %v5249_v13  ;;  %v5936_v59 = vld [vmem:[#allocation14_spill] sm:$0xff]  ;;  %v5940_v16 = vld [vmem:[#allocation48_spill] sm:$0xff] }
 0x2c5   : > { %3101 = vst [vmem:[%s5251_s17 + $0x70] sm:$0xff] %v3037_v48  ;;  %3102 = vst [vmem:[%s5251_s17 + $0x78] sm:$0xff] %v3038_v26  ;;  %v3050_v44 = vadd.f32 %v5126_v55, %v5367_v27  ;;  %v3051_v8 = vadd.f32 %v5930_v25, %v5254_v37  ;;  %v3052_v6 = vadd.f32 %v5126_v55, %v5370_v60 }
 0x2c6   : > { %3103 = vst [vmem:[%s5251_s17 + $0x80] sm:$0xff] %v3039_v1  ;;  %3104 = vst [vmem:[%s5251_s17 + $0x88] sm:$0xff] %v3040_v14  ;;  %v3053_v13 = vadd.f32 %v5930_v25, %v5256_v39  ;;  %v3054_v0 = vadd.f32 %v5126_v55, %v5373_v4  ;;  %v3055_v37 = vadd.f32 %v5930_v25, %v5258_v42 }
 0x2c7   : > { %3105 = vst [vmem:[%s5251_s17 + $0x90] sm:$0xff] %v3041_v57  ;;  %3106 = vst [vmem:[%s5251_s17 + $0x98] sm:$0xff] %v3042_v23  ;;  %v3056_v17 = vadd.f32 %v5126_v55, %v5376_v35  ;;  %v3057_v39 = vadd.f32 %v5930_v25, %v5260_v41  ;;  %v3058_v10 = vadd.f32 %v5126_v55, %v5379_v30 }
 0x2c8   : > { %3107 = vst [vmem:[%s5251_s17 + $0xa0] sm:$0xff] %v3043_v18  ;;  %3108 = vst [vmem:[%s5251_s17 + $0xa8] sm:$0xff] %v3044_v5  ;;  %v3059_v42 = vadd.f32 %v5930_v25, %v5262_v58  ;;  %v3060_v27 = vadd.f32 %v5126_v55, %v5382_v34  ;;  %v3061_v41 = vadd.f32 %v5930_v25, %v5264_v31 }
 0x2c9   : > { %3109 = vst [vmem:[%s5251_s17 + $0xb0] sm:$0xff] %v3045_v32  ;;  %3110 = vst [vmem:[%s5251_s17 + $0xb8] sm:$0xff] %v3046_v20  ;;  %v3062_v60 = vadd.f32 %v5126_v55, %v5385_v53  ;;  %v3063_v58 = vadd.f32 %v5930_v25, %v5266_v7  ;;  %v3064_v4 = vadd.f32 %v5126_v55, %v5388_v11  ;;  %v5931_v11 = vld [vmem:[#allocation42_spill] sm:$0xff] }
 0x2ca   : > { %3111 = vst [vmem:[%s5251_s17 + $0xc0] sm:$0xff] %v3047_v9  ;;  %3112 = vst [vmem:[%s5251_s17 + $0xc8] sm:$0xff] %v3048_v52  ;;  %v3065_v31 = vadd.f32 %v5930_v25, %v5271_v38  ;;  %v3066_v35 = vadd.f32 %v5126_v55, %v5391_v45  ;;  %v3067_v7 = vadd.f32 %v5930_v25, %v5276_v49  ;;  %v5932_v45 = vld [vmem:[#allocation12_spill] sm:$0xff] }
 0x2cb   : > { %3113 = vst [vmem:[%s5251_s17 + $0xd0] sm:$0xff] %v3049_v61  ;;  %3114 = vst [vmem:[%s5251_s17 + $0xd8] sm:$0xff] %v3050_v44  ;;  %v3068_v30 = vadd.f32 %v5126_v55, %v5394_v54  ;;  %v3069_v38 = vadd.f32 %v5930_v25, %v5281_v43  ;;  %v3070_v34 = vadd.f32 %v5126_v55, %v5400_v29  ;;  %v5933_v29 = vld [vmem:[#allocation43_spill] sm:$0xff] }
 0x2cc   : > { %3115 = vst [vmem:[%s5251_s17 + $0xe0] sm:$0xff] %v3051_v8  ;;  %3116 = vst [vmem:[%s5251_s17 + $0xe8] sm:$0xff] %v3052_v6  ;;  %v3071_v49 = vadd.f32 %v5930_v25, %v5286_v2  ;;  %v3072_v53 = vadd.f32 %v5126_v55, %v5406_v19  ;;  %v3073_v43 = vadd.f32 %v5930_v25, %v5931_v11 }
 0x2cd   : > { %3117 = vst [vmem:[%s5251_s17 + $0xf0] sm:$0xff] %v3053_v13  ;;  %3118 = vst [vmem:[%s5251_s17 + $0xf8] sm:$0xff] %v3054_v0  ;;  %v3074_v54 = vadd.f32 %v5126_v55, %v5932_v45  ;;  %v3075_v2 = vadd.f32 %v5930_v25, %v5933_v29  ;;  %v3076_v19 = vadd.f32 %v5126_v55, %v5934_v36 }
 0x2ce   : > { %3119 = vst [vmem:[%s5251_s17 + $0x100] sm:$0xff] %v3055_v37  ;;  %3120 = vst [vmem:[%s5251_s17 + $0x108] sm:$0xff] %v3056_v17  ;;  %v3077_v3 = vadd.f32 %v5930_v25, %v5935_v51  ;;  %v3078_v12 = vadd.f32 %v5126_v55, %v5936_v59  ;;  %v3079_v24 = vadd.f32 %v5930_v25, %v5937_v22 }
 0x2cf   : > { %3121 = vst [vmem:[%s5251_s17 + $0x110] sm:$0xff] %v3057_v39  ;;  %3122 = vst [vmem:[%s5251_s17 + $0x118] sm:$0xff] %v3058_v10  ;;  %v3081_v50 = vadd.f32 %v5930_v25, %v5938_v62  ;;  %v3082_v63 = vadd.f32 %v5126_v55, %v5436_v33  ;;  %v3083_v47 = vadd.f32 %v5930_v25, %v5939_v15 }
 0x2d0   : > { %3123 = vst [vmem:[%s5251_s17 + $0x120] sm:$0xff] %v3059_v42  ;;  %3124 = vst [vmem:[%s5251_s17 + $0x128] sm:$0xff] %v3060_v27  ;;  %v3084_v21 = vadd.f32 %v5126_v55, %v5442_v56  ;;  %v3085_v46 = vadd.f32 %v5930_v25, %v5940_v16 }
 0x2d1   : > { %3125 = vst [vmem:[%s5251_s17 + $0x130] sm:$0xff] %v3061_v41  ;;  %3126 = vst [vmem:[%s5251_s17 + $0x138] sm:$0xff] %v3062_v60 }
 0x2d2   : > { %3127 = vst [vmem:[%s5251_s17 + $0x140] sm:$0xff] %v3063_v58  ;;  %3128 = vst [vmem:[%s5251_s17 + $0x148] sm:$0xff] %v3064_v4 }
 0x2d3   : > { %3129 = vst [vmem:[%s5251_s17 + $0x150] sm:$0xff] %v3065_v31  ;;  %3130 = vst [vmem:[%s5251_s17 + $0x158] sm:$0xff] %v3066_v35 }
 0x2d4   : > { %3131 = vst [vmem:[%s5251_s17 + $0x160] sm:$0xff] %v3067_v7  ;;  %3132 = vst [vmem:[%s5251_s17 + $0x168] sm:$0xff] %v3068_v30 }
 0x2d5   : > { %3133 = vst [vmem:[%s5251_s17 + $0x170] sm:$0xff] %v3069_v38  ;;  %3134 = vst [vmem:[%s5251_s17 + $0x178] sm:$0xff] %v3070_v34 }
 0x2d6   : > { %3135 = vst [vmem:[%s5251_s17 + $0x180] sm:$0xff] %v3071_v49  ;;  %3136 = vst [vmem:[%s5251_s17 + $0x188] sm:$0xff] %v3072_v53 }
 0x2d7   : > { %3137 = vst [vmem:[%s5251_s17 + $0x190] sm:$0xff] %v3073_v43  ;;  %3138 = vst [vmem:[%s5251_s17 + $0x198] sm:$0xff] %v3074_v54 }
 0x2d8   : > { %3139 = vst [vmem:[%s5251_s17 + $0x1a0] sm:$0xff] %v3075_v2  ;;  %3140 = vst [vmem:[%s5251_s17 + $0x1a8] sm:$0xff] %v3076_v19 }
 0x2d9   : > { %3141 = vst [vmem:[%s5251_s17 + $0x1b0] sm:$0xff] %v3077_v3  ;;  %3142 = vst [vmem:[%s5251_s17 + $0x1b8] sm:$0xff] %v3078_v12 }
 0x2da   : > { %3143 = vst [vmem:[%s5251_s17 + $0x1c0] sm:$0xff] %v3079_v24  ;;  %3145 = vst [vmem:[%s5251_s17 + $0x1d0] sm:$0xff] %v3081_v50 }
 0x2db   : > { %3146 = vst [vmem:[%s5251_s17 + $0x1d8] sm:$0xff] %v3082_v63  ;;  %3147 = vst [vmem:[%s5251_s17 + $0x1e0] sm:$0xff] %v3083_v47 }
 0x2dc   : > { %3148 = vst [vmem:[%s5251_s17 + $0x1e8] sm:$0xff] %v3084_v21  ;;  %3149 = vst [vmem:[%s5251_s17 + $0x1f0] sm:$0xff] %v3085_v46 }
 0x2dd   : > { %4041 = shalt.err (!%p4038_p3)
}
 0x2de   : > { %s4042_s24 = scalar_lea.hbm %s5593_s18, 8192  ;;  %s4046_s8 = scalar_lea.hbm %s5673_s3, 16384 }
 0x2df   : > { %p4043_p12 = scmp.ne.s32.totalorder %s5593_s18, %s4042_s24  ;;  %p4047_p7 = scmp.lt.s32.totalorder %s5593_s18, %s5673_s3 }
 0x2e0   : > { %p4048_p10 = scmp.lt.s32.totalorder %s4046_s8, %s4042_s24 }
 0x2e1   : > { %p4044_p13 = pnand %p4043_p12, %p5941_p4 }
 0x2e2   : > { %p4049_p6 = por %p4048_p10, %p4047_p7 }
 0x2e3   : > { %p4045_p8 = pneg %p4044_p13 }
 0x2e5   : > { %p4050_p2 = pnand %p4049_p6, %p4045_p8 }
 0x2e7   : > { %4053 = shalt.err (!%p4050_p2)
}
 0x2e8   : > { %s4108_s5 = smov 256   ;;  %s4109_s17 = smov 512  }
 0x2e9   : > { %s4110_s20 = smov 16  }
 0x2ea   : > { %3559 = dma.vmem_to_hbm [thread:$0]  (%p5941_p4), %s5607_s25, 8192, %s5593_s18, %s3152_s22, %s4108_s5, %s4109_s17, %s4110_s20  }
 0x2eb PF: > { %s3180_s10 = sand.u32 1, %s4084_s12   ;;  %p5942_p5 = scmp.ne.s32.totalorder %s5731_s28, 0 }
 0x2ec   : > { %p5943_p9 = scmp.ge.s32.totalorder %s4096_s15, 2  ;;  %s3181_s11 = scalar_lea.sflag [#allocation4], %s3180_s10 }
 0x2ee   : > { %p3573_p1 = pnand %p5943_p9, %p5942_p5 }
 0x2f0   : > { %p3574_p11 = pneg %p3573_p1 }
 0x2f2   : > { %4079 = dma.done.wait (%p3574_p11), %s3181_s11, 8192  }
 0x2f3   : > { %4081 = vsyncadd (%p3574_p11), %s3181_s11, 4294959104  ;;  %p17_p0 = scmp.ge.s32.totalorder %s4152_s16, 4   ;;  %s5944_s12 = smov %s4088_s13 }
 0x2f4   : > { %s5945_s13 = smov %s4092_s14  ;;  %s5946_s14 = smov %s4163_s19 }
 0x2f5   : > { %s5947_s15 = smov %s4152_s16  ;;  %19 = sbr.rel (!%p17_p0) target bundleno = 6 (0x6), region = 95 }
 0x2fa   :  { %3186 = vsyncpa [#allocation3], 1 }
 0x2fb   :  { %3188 = vsyncpa [#allocation3 + $0x1], 1 }
 0x2fc   :  { %3189 = vsyncpa [#allocation6], 1 }
 0x2fd   :  { %3191 = vsyncpa [#allocation6 + $0x1], 1 }
 0x2fe   :  { %3192 = vsyncpa [#allocation4], 1 }
 0x2ff   :  { %3194 = vsyncpa [#allocation4 + $0x1], 1 }

</bundles_post_ra>
